<compile_context>
chip_gen: v7x
topology: tpu7x:2x2x1
jax: 0.10.0
libtpu: 0.0.40
codegen_flags: <defaults>
</compile_context>

<pallas_src>
import functools

import jax
import jax.numpy as jnp
from jax import lax
from jax.experimental import pallas as pl
from jax.experimental.pallas import tpu as pltpu


# ------------------------------ fused kernel --------------------------------


def _lsk_kernel(x_ref, w0_ref, b0_ref, ws_ref, bs_ref,
                bw1_ref, bw2_ref, b12_ref, shm_ref, msq_ref,
                bq_ref, bwc_ref, bc_ref,
                o_ref,
                xpad_ref, apad_ref, aggpad_ref,
                *, H, W, C):
    Ch = C // 2
    WC = W * C
    WCh = W * Ch
    K0, P0 = 5, 2            # conv0:        5x5, pad 2
    KS, DS, PS = 7, 3, 9     # conv_spatial: 7x7, dilation 3, pad 9
    KQ, PQ = 7, 3            # conv_squeeze: 7x7, pad 3
    NACC = 4                 # independent partial accumulators per tap loop

    # One-time halo zeroing: the grid axis is sequential ("arbitrary"), the
    # scratch persists across grid steps, and the interiors are fully
    # rewritten every step, so the halo frame stays zero.
    @pl.when(pl.program_id(0) == 0)
    def _():
        xpad_ref[...] = jnp.zeros(xpad_ref.shape, jnp.float32)
        apad_ref[...] = jnp.zeros(apad_ref.shape, jnp.float32)
        aggpad_ref[...] = jnp.zeros(aggpad_ref.shape, jnp.float32)

    x = x_ref[0]                                         # (H, W*C)

    # ---------------- depthwise 5x5 (pad 2), VALU tap loop -------------------
    xpad_ref[P0:P0 + H, P0 * C:P0 * C + WC] = x
    accs = [None] * NACC
    t = 0
    for kh in range(K0):
        for kw in range(K0):
            r = kh * K0 + kw
            tap = xpad_ref[kh:kh + H, kw * C:kw * C + WC]      # streamed load
            prod = tap * w0_ref[r:r + 1, :]
            accs[t % NACC] = prod if accs[t % NACC] is None \
                else accs[t % NACC] + prod
            t += 1
    attn1 = ((accs[0] + accs[1]) + (accs[2] + accs[3])) + b0_ref[...]

    # ------------- depthwise 7x7, dilation 3 (pad 9), VALU tap loop ----------
    apad_ref[PS:PS + H, PS * C:PS * C + WC] = attn1
    accs = [None] * NACC
    t = 0
    for kh in range(KS):
        for kw in range(KS):
            r = kh * KS + kw
            tap = apad_ref[kh * DS:kh * DS + H,
                           kw * DS * C:kw * DS * C + WC]
            prod = tap * ws_ref[r:r + 1, :]
            accs[t % NACC] = prod if accs[t % NACC] is None \
                else accs[t % NACC] + prod
            t += 1
    attn2 = ((accs[0] + accs[1]) + (accs[2] + accs[3])) + bs_ref[...]

    # -------- 1x1 convs (dim -> dim/2) into concatenated [a1 || a2], MXU -----
    a12 = (jnp.dot(attn1, bw1_ref[...], preferred_element_type=jnp.float32)
           + jnp.dot(attn2, bw2_ref[...], preferred_element_type=jnp.float32)
           + b12_ref[...])                               # (H, 2*WCh = W*C)

    # ----------- channel stats: per-pixel sum (for mean) and max -------------
    a1h = a12[:, :WCh]
    a2h = a12[:, WCh:]
    ssum = a1h + a2h                                     # per-channel a1 + a2
    emax = jnp.maximum(a1h, a2h)
    # shift-by-1 / shift-by-2 max tree; the shift is an exact permutation
    # matmul (MXU) so the group max ends up at lane w*Ch with no ambiguity.
    t1 = jnp.maximum(
        emax, jnp.dot(emax, shm_ref[0], preferred_element_type=jnp.float32))
    gmax = jnp.maximum(
        t1, jnp.dot(t1, shm_ref[1], preferred_element_type=jnp.float32))
    # gmax[:, w*Ch] = max over all 2*Ch channels of pixel w

    aggpad_ref[PQ:PQ + H, 0:WCh] = ssum
    aggpad_ref[PQ:PQ + H, WCh:2 * WCh] = gmax

    # ------- conv_squeeze 7x7 (2->2) as 7 banded MXU matmuls + sigmoid -------
    # msq_ref[kh] contracts the [sum || max] row (mean scale and kw band are
    # folded into the matrix) into [s0 || s1], each broadcast across the Ch
    # lanes of its pixel group.
    s_cat = jnp.zeros((H, 2 * WCh), jnp.float32) + bq_ref[...]
    for kh in range(KQ):
        s_cat = s_cat + jnp.dot(aggpad_ref[kh:kh + H, :], msq_ref[kh],
                                preferred_element_type=jnp.float32)
    sig = pl.reciprocal(1.0 + jnp.exp(-s_cat), approx=False)   # [sig0 || sig1]

    # ---------- fuse, final 1x1 (dim/2 -> dim); both halves summed by bwc ----
    f = a12 * sig                                        # [a1*sig0 || a2*sig1]
    y = jnp.dot(f, bwc_ref[...], preferred_element_type=jnp.float32) + bc_ref[...]
    o_ref[0] = x * y


# -------------------------------- wrapper ------------------------------------


def lsk_block(x_nchw, p):
    """LSKblock forward.  x_nchw: (B, dim, H, W) float32 -> same shape."""
    B, C, H, W = x_nchw.shape
    assert C % 2 == 0, "dim must be even"
    Ch = C // 2
    WC, WCh = W * C, W * Ch
    K0, KS, KQ = 5, 7, 7
    P0, PS, PQ = 2, 9, 3
    f32 = jnp.float32

    # lane-dense interleaved flat view: flat[b, h, w*C + c] = x[b, h, w, c]
    x_flat = jnp.transpose(x_nchw, (0, 2, 3, 1)).reshape(B, H, WC)

    # ---- host/XLA-side prep of small weight tensors (traced, tiny) ----------
    eye_w = jnp.eye(W, dtype=f32)

    w0r = jnp.tile(p["w0"].reshape(K0 * K0, C), (1, W))          # (25, W*C)
    b0t = jnp.tile(p["b0"].reshape(1, C), (1, W))                # (1, W*C)
    wsr = jnp.tile(p["ws"].reshape(KS * KS, C), (1, W))          # (49, W*C)
    bst = jnp.tile(p["bs"].reshape(1, C), (1, W))

    # 1x1 convs into the concatenated [a1 || a2] layout (block-diag / kron).
    zpad = jnp.zeros((WC, WCh), f32)
    bw1p = jnp.concatenate([jnp.kron(eye_w, p["w1"]), zpad], axis=1)  # (WC, WC)
    bw2p = jnp.concatenate([zpad, jnp.kron(eye_w, p["w2"])], axis=1)  # (WC, WC)
    b12 = jnp.concatenate([jnp.tile(p["b1"].reshape(1, Ch), (1, W)),
                           jnp.tile(p["b2"].reshape(1, Ch), (1, W))], axis=1)

    # lane-shift permutation matrices for the channel-max tree:
    # (x @ eye(k=-s))[:, j] == x[:, j+s]
    shm = jnp.stack([jnp.eye(WCh, k=-1, dtype=f32),
                     jnp.eye(WCh, k=-2, dtype=f32)], axis=0)     # (2, WCh, WCh)

    # conv_squeeze as 7 banded matrices acting on [sum || max] rows.
    mean_blk = jnp.full((Ch, Ch), 1.0 / (2 * Ch), f32)   # sums all Ch lanes -> mean
    max_blk = jnp.zeros((Ch, Ch), f32).at[0, :].set(1.0)  # reads lane 0 (group max)
    msq_list = []
    for kh in range(KQ):
        bands = {}
        for j in range(2):          # input channel of squeeze: 0=avg, 1=max
            for o in range(2):      # output channel of squeeze
                m = jnp.zeros((W, W), f32)
                for kw in range(KQ):
                    m = m + p["wq"][kh, kw, j, o] * jnp.eye(W, k=PQ - kw, dtype=f32)
                bands[(j, o)] = m
        top = jnp.concatenate([jnp.kron(bands[(0, 0)], mean_blk),
                               jnp.kron(bands[(0, 1)], mean_blk)], axis=1)
        bot = jnp.concatenate([jnp.kron(bands[(1, 0)], max_blk),
                               jnp.kron(bands[(1, 1)], max_blk)], axis=1)
        msq_list.append(jnp.concatenate([top, bot], axis=0))     # (WC, WC)
    msq = jnp.stack(msq_list, axis=0)                            # (7, WC, WC)

    bqc = jnp.concatenate([jnp.broadcast_to(p["bq"][0], (1, WCh)),
                           jnp.broadcast_to(p["bq"][1], (1, WCh))], axis=1)

    kc = jnp.kron(eye_w, p["wc"])                                # (WCh, WC)
    bwc2 = jnp.concatenate([kc, kc], axis=0)                     # (WC, WC): sums halves
    bct = jnp.tile(p["bc"].reshape(1, C), (1, W))

    c2 = lambda shape: pl.BlockSpec(shape, lambda i: (0, 0))
    c3 = lambda shape: pl.BlockSpec(shape, lambda i: (0, 0, 0))
    in_specs = [
        pl.BlockSpec((1, H, WC), lambda i: (i, 0, 0)),           # x
        c2((K0 * K0, WC)), c2((1, WC)),                          # conv0 w, b
        c2((KS * KS, WC)), c2((1, WC)),                          # conv_spatial w, b
        c2((WC, WC)), c2((WC, WC)), c2((1, WC)),                 # conv1/conv2 (kron), b
        c3((2, WCh, WCh)),                                       # max-tree shifts
        c3((KQ, WC, WC)),                                        # squeeze banded mats
        c2((1, WC)),                                             # squeeze bias
        c2((WC, WC)), c2((1, WC)),                               # final conv (kron), b
    ]

    out_flat = pl.pallas_call(
        functools.partial(_lsk_kernel, H=H, W=W, C=C),
        out_shape=jax.ShapeDtypeStruct((B, H, WC), jnp.float32),
        grid=(B,),
        in_specs=in_specs,
        out_specs=pl.BlockSpec((1, H, WC), lambda i: (i, 0, 0)),
        scratch_shapes=[
            pltpu.VMEM((H + 2 * P0, (W + 2 * P0) * C), jnp.float32),  # conv0 halo
            pltpu.VMEM((H + 2 * PS, (W + 2 * PS) * C), jnp.float32),  # conv_spatial halo
            pltpu.VMEM((H + 2 * PQ, 2 * WCh), jnp.float32),           # squeeze agg halo
        ],
        compiler_params=pltpu.CompilerParams(
            dimension_semantics=("arbitrary",),
            vmem_limit_bytes=32 * 1024 * 1024),
    )(x_flat, w0r, b0t, wsr, bst, bw1p, bw2p, b12, shm, msq, bqc, bwc2, bct)

    return jnp.transpose(out_flat.reshape(B, H, W, C), (0, 3, 1, 2))


# --------------------------- pure-JAX reference ------------------------------


def _ref_lsk(x_nchw, p):
    x = jnp.transpose(x_nchw, (0, 2, 3, 1))
    C = x.shape[-1]
    dn = ("NHWC", "HWIO", "NHWC")
    conv = functools.partial(lax.conv_general_dilated, dimension_numbers=dn)
    attn1 = conv(x, p["w0"].reshape(5, 5, 1, C), (1, 1), ((2, 2), (2, 2)),
                 feature_group_count=C) + p["b0"]
    attn2 = conv(attn1, p["ws"].reshape(7, 7, 1, C), (1, 1), ((9, 9), (9, 9)),
                 rhs_dilation=(3, 3), feature_group_count=C) + p["bs"]
    a1 = conv(attn1, p["w1"][None, None], (1, 1), ((0, 0), (0, 0))) + p["b1"]
    a2 = conv(attn2, p["w2"][None, None], (1, 1), ((0, 0), (0, 0))) + p["b2"]
    attn = jnp.concatenate([a1, a2], axis=-1)
    avg = jnp.mean(attn, axis=-1, keepdims=True)
    mx = jnp.max(attn, axis=-1, keepdims=True)
    agg = jnp.concatenate([avg, mx], axis=-1)
    sig = jax.nn.sigmoid(
        conv(agg, p["wq"], (1, 1), ((3, 3), (3, 3))) + p["bq"])
    af = a1 * sig[..., 0:1] + a2 * sig[..., 1:2]
    y = conv(af, p["wc"][None, None], (1, 1), ((0, 0), (0, 0))) + p["bc"]
    return jnp.transpose(x * y, (0, 3, 1, 2))


# ---------------------------------- main -------------------------------------

if __name__ == "__main__":
    B, dim, H, W = 2, 8, 16, 16

    # deterministic parameter init (shapes follow LSKblock.__init__, stored in
    # NHWC-friendly layouts: depthwise -> (k,k,C), 1x1 -> (Cin,Cout),
    # conv_squeeze -> (k,k,Ci,Co), biases -> (C,)).
    ks = jax.random.split(jax.random.PRNGKey(42), 12)
    nrm = lambda k, s, sc: sc * jax.random.normal(k, s, jnp.float32)
    params = {
        "w0": nrm(ks[0], (5, 5, dim), 0.2),
        "b0": nrm(ks[1], (dim,), 0.1),
        "ws": nrm(ks[2], (7, 7, dim), 0.1),
        "bs": nrm(ks[3], (dim,), 0.1),
        "w1": nrm(ks[4], (dim, dim // 2), 0.2),
        "b1": nrm(ks[5], (dim // 2,), 0.1),
        "w2": nrm(ks[6], (dim, dim // 2), 0.2),
        "b2": nrm(ks[7], (dim // 2,), 0.1),
        "wq": nrm(ks[8], (7, 7, 2, 2), 0.2),
        "bq": nrm(ks[9], (2,), 0.1),
        "wc": nrm(ks[10], (dim // 2, dim), 0.2),
        "bc": nrm(ks[11], (dim,), 0.1),
    }

    x = jax.random.normal(jax.random.PRNGKey(0), (B, dim, H, W), jnp.float32)

    out = jax.block_until_ready(jax.jit(lsk_block)(x, params))
    ref = jax.block_until_ready(_ref_lsk(x, params))

    err = float(jnp.max(jnp.abs(out - ref)))
    scale = float(jnp.max(jnp.abs(ref))) + 1.0
    if err > 1e-2 * scale:
        raise AssertionError(f"Pallas/ref mismatch: max abs err = {err}")

    print("KERNEL_OK")
</pallas_src>

<mosaic_0001>
module attributes {stable_mosaic.version = 11 : i64} {
  func.func @_lsk_kernel(%arg0: i32, %arg1: memref<1x16x128xf32, #tpu.memory_space<vmem>>, %arg2: memref<25x128xf32, #tpu.memory_space<vmem>>, %arg3: memref<1x128xf32, #tpu.memory_space<vmem>>, %arg4: memref<49x128xf32, #tpu.memory_space<vmem>>, %arg5: memref<1x128xf32, #tpu.memory_space<vmem>>, %arg6: memref<128x128xf32, #tpu.memory_space<vmem>>, %arg7: memref<128x128xf32, #tpu.memory_space<vmem>>, %arg8: memref<1x128xf32, #tpu.memory_space<vmem>>, %arg9: memref<2x64x64xf32, #tpu.memory_space<vmem>>, %arg10: memref<7x128x128xf32, #tpu.memory_space<vmem>>, %arg11: memref<1x128xf32, #tpu.memory_space<vmem>>, %arg12: memref<128x128xf32, #tpu.memory_space<vmem>>, %arg13: memref<1x128xf32, #tpu.memory_space<vmem>>, %arg14: memref<1x16x128xf32, #tpu.memory_space<vmem>>, %arg15: memref<20x160xf32, #tpu.memory_space<vmem>>, %arg16: memref<34x272xf32, #tpu.memory_space<vmem>>, %arg17: memref<22x128xf32, #tpu.memory_space<vmem>>) attributes {dimension_semantics = [#tpu.dimension_semantics<arbitrary>], iteration_bounds = array<i64: 2>, scalar_prefetch = 0 : i64, scratch_operands = 3 : i64, tpu.core_type = #tpu.core_type<tc>, window_params = [{transform_indices = @transform_0, window_bounds = array<i64: 1, 16, 128>}, {pipeline_mode = #tpu.pipeline_mode<synchronous>, transform_indices = @transform_1, window_bounds = array<i64: 25, 128>}, {pipeline_mode = #tpu.pipeline_mode<synchronous>, transform_indices = @transform_2, window_bounds = array<i64: 1, 128>}, {pipeline_mode = #tpu.pipeline_mode<synchronous>, transform_indices = @transform_3, window_bounds = array<i64: 49, 128>}, {pipeline_mode = #tpu.pipeline_mode<synchronous>, transform_indices = @transform_4, window_bounds = array<i64: 1, 128>}, {pipeline_mode = #tpu.pipeline_mode<synchronous>, transform_indices = @transform_5, window_bounds = array<i64: 128, 128>}, {pipeline_mode = #tpu.pipeline_mode<synchronous>, transform_indices = @transform_6, window_bounds = array<i64: 128, 128>}, {pipeline_mode = #tpu.pipeline_mode<synchronous>, transform_indices = @transform_7, window_bounds = array<i64: 1, 128>}, {pipeline_mode = #tpu.pipeline_mode<synchronous>, transform_indices = @transform_8, window_bounds = array<i64: 2, 64, 64>}, {pipeline_mode = #tpu.pipeline_mode<synchronous>, transform_indices = @transform_9, window_bounds = array<i64: 7, 128, 128>}, {pipeline_mode = #tpu.pipeline_mode<synchronous>, transform_indices = @transform_10, window_bounds = array<i64: 1, 128>}, {pipeline_mode = #tpu.pipeline_mode<synchronous>, transform_indices = @transform_11, window_bounds = array<i64: 128, 128>}, {pipeline_mode = #tpu.pipeline_mode<synchronous>, transform_indices = @transform_12, window_bounds = array<i64: 1, 128>}, {transform_indices = @transform_13, window_bounds = array<i64: 1, 16, 128>}]} {
    %c0_i32 = arith.constant 0 : i32
    %0 = arith.cmpi eq, %arg0, %c0_i32 : i32
    %1 = arith.extui %0 : i1 to i32
    %c0_i32_0 = arith.constant 0 : i32
    %2 = arith.cmpi ne, %1, %c0_i32_0 : i32
    scf.if %2 {
      %cst_328 = arith.constant 0.000000e+00 : f32
      %458 = vector.broadcast %cst_328 : f32 to vector<20x160xf32>
      %c0_329 = arith.constant 0 : index
      %c0_330 = arith.constant 0 : index
      %459 = vector.load %arg15[%c0_329, %c0_330] : memref<20x160xf32, #tpu.memory_space<vmem>>, vector<20x160xf32>
      tpu.vector_store %arg15[%c0_329, %c0_330], %458 {strides = array<i32>} : memref<20x160xf32, #tpu.memory_space<vmem>>, vector<20x160xf32>,
      %cst_331 = arith.constant 0.000000e+00 : f32
      %460 = vector.broadcast %cst_331 : f32 to vector<34x272xf32>
      %c0_332 = arith.constant 0 : index
      %c0_333 = arith.constant 0 : index
      %461 = vector.load %arg16[%c0_332, %c0_333] : memref<34x272xf32, #tpu.memory_space<vmem>>, vector<34x272xf32>
      tpu.vector_store %arg16[%c0_332, %c0_333], %460 {strides = array<i32>} : memref<34x272xf32, #tpu.memory_space<vmem>>, vector<34x272xf32>,
      %cst_334 = arith.constant 0.000000e+00 : f32
      %462 = vector.broadcast %cst_334 : f32 to vector<22x128xf32>
      %c0_335 = arith.constant 0 : index
      %c0_336 = arith.constant 0 : index
      %463 = vector.load %arg17[%c0_335, %c0_336] : memref<22x128xf32, #tpu.memory_space<vmem>>, vector<22x128xf32>
      tpu.vector_store %arg17[%c0_335, %c0_336], %462 {strides = array<i32>} : memref<22x128xf32, #tpu.memory_space<vmem>>, vector<22x128xf32>,
    } else {
    }
    %c0 = arith.constant 0 : index
    %c0_1 = arith.constant 0 : index
    %c0_2 = arith.constant 0 : index
    %3 = vector.load %arg1[%c0, %c0_1, %c0_2] : memref<1x16x128xf32, #tpu.memory_space<vmem>>, vector<1x16x128xf32>
    %4 = vector.shape_cast %3 : vector<1x16x128xf32> to vector<16x128xf32>
    %c2 = arith.constant 2 : index
    %c16 = arith.constant 16 : index
    %5 = vector.load %arg15[%c2, %c16] : memref<20x160xf32, #tpu.memory_space<vmem>>, vector<16x128xf32>
    tpu.vector_store %arg15[%c2, %c16], %4 {strides = array<i32>} : memref<20x160xf32, #tpu.memory_space<vmem>>, vector<16x128xf32>,
    %c0_3 = arith.constant 0 : index
    %c0_4 = arith.constant 0 : index
    %6 = vector.load %arg15[%c0_3, %c0_4] : memref<20x160xf32, #tpu.memory_space<vmem>>, vector<16x128xf32>
    %c0_5 = arith.constant 0 : index
    %c0_6 = arith.constant 0 : index
    %7 = vector.load %arg2[%c0_5, %c0_6] : memref<25x128xf32, #tpu.memory_space<vmem>>, vector<1x128xf32>
    %8 = vector.broadcast %7 : vector<1x128xf32> to vector<16x128xf32>
    %9 = arith.mulf %6, %8 : vector<16x128xf32>
    %c0_7 = arith.constant 0 : index
    %c8 = arith.constant 8 : index
    %10 = vector.load %arg15[%c0_7, %c8] : memref<20x160xf32, #tpu.memory_space<vmem>>, vector<16x128xf32>
    %c1 = arith.constant 1 : index
    %c0_8 = arith.constant 0 : index
    %11 = vector.load %arg2[%c1, %c0_8] : memref<25x128xf32, #tpu.memory_space<vmem>>, vector<1x128xf32>
    %12 = vector.broadcast %11 : vector<1x128xf32> to vector<16x128xf32>
    %13 = arith.mulf %10, %12 : vector<16x128xf32>
    %c0_9 = arith.constant 0 : index
    %c16_10 = arith.constant 16 : index
    %14 = vector.load %arg15[%c0_9, %c16_10] : memref<20x160xf32, #tpu.memory_space<vmem>>, vector<16x128xf32>
    %c2_11 = arith.constant 2 : index
    %c0_12 = arith.constant 0 : index
    %15 = vector.load %arg2[%c2_11, %c0_12] : memref<25x128xf32, #tpu.memory_space<vmem>>, vector<1x128xf32>
    %16 = vector.broadcast %15 : vector<1x128xf32> to vector<16x128xf32>
    %17 = arith.mulf %14, %16 : vector<16x128xf32>
    %c0_13 = arith.constant 0 : index
    %c24 = arith.constant 24 : index
    %18 = vector.load %arg15[%c0_13, %c24] : memref<20x160xf32, #tpu.memory_space<vmem>>, vector<16x128xf32>
    %c3 = arith.constant 3 : index
    %c0_14 = arith.constant 0 : index
    %19 = vector.load %arg2[%c3, %c0_14] : memref<25x128xf32, #tpu.memory_space<vmem>>, vector<1x128xf32>
    %20 = vector.broadcast %19 : vector<1x128xf32> to vector<16x128xf32>
    %21 = arith.mulf %18, %20 : vector<16x128xf32>
    %c0_15 = arith.constant 0 : index
    %c32 = arith.constant 32 : index
    %22 = vector.load %arg15[%c0_15, %c32] : memref<20x160xf32, #tpu.memory_space<vmem>>, vector<16x128xf32>
    %c4 = arith.constant 4 : index
    %c0_16 = arith.constant 0 : index
    %23 = vector.load %arg2[%c4, %c0_16] : memref<25x128xf32, #tpu.memory_space<vmem>>, vector<1x128xf32>
    %24 = vector.broadcast %23 : vector<1x128xf32> to vector<16x128xf32>
    %25 = arith.mulf %22, %24 : vector<16x128xf32>
    %26 = arith.addf %9, %25 : vector<16x128xf32>
    %c1_17 = arith.constant 1 : index
    %c0_18 = arith.constant 0 : index
    %27 = vector.load %arg15[%c1_17, %c0_18] : memref<20x160xf32, #tpu.memory_space<vmem>>, vector<16x128xf32>
    %c5 = arith.constant 5 : index
    %c0_19 = arith.constant 0 : index
    %28 = vector.load %arg2[%c5, %c0_19] : memref<25x128xf32, #tpu.memory_space<vmem>>, vector<1x128xf32>
    %29 = vector.broadcast %28 : vector<1x128xf32> to vector<16x128xf32>
    %30 = arith.mulf %27, %29 : vector<16x128xf32>
    %31 = arith.addf %13, %30 : vector<16x128xf32>
    %c1_20 = arith.constant 1 : index
    %c8_21 = arith.constant 8 : index
    %32 = vector.load %arg15[%c1_20, %c8_21] : memref<20x160xf32, #tpu.memory_space<vmem>>, vector<16x128xf32>
    %c6 = arith.constant 6 : index
    %c0_22 = arith.constant 0 : index
    %33 = vector.load %arg2[%c6, %c0_22] : memref<25x128xf32, #tpu.memory_space<vmem>>, vector<1x128xf32>
    %34 = vector.broadcast %33 : vector<1x128xf32> to vector<16x128xf32>
    %35 = arith.mulf %32, %34 : vector<16x128xf32>
    %36 = arith.addf %17, %35 : vector<16x128xf32>
    %c1_23 = arith.constant 1 : index
    %c16_24 = arith.constant 16 : index
    %37 = vector.load %arg15[%c1_23, %c16_24] : memref<20x160xf32, #tpu.memory_space<vmem>>, vector<16x128xf32>
    %c7 = arith.constant 7 : index
    %c0_25 = arith.constant 0 : index
    %38 = vector.load %arg2[%c7, %c0_25] : memref<25x128xf32, #tpu.memory_space<vmem>>, vector<1x128xf32>
    %39 = vector.broadcast %38 : vector<1x128xf32> to vector<16x128xf32>
    %40 = arith.mulf %37, %39 : vector<16x128xf32>
    %41 = arith.addf %21, %40 : vector<16x128xf32>
    %c1_26 = arith.constant 1 : index
    %c24_27 = arith.constant 24 : index
    %42 = vector.load %arg15[%c1_26, %c24_27] : memref<20x160xf32, #tpu.memory_space<vmem>>, vector<16x128xf32>
    %c8_28 = arith.constant 8 : index
    %c0_29 = arith.constant 0 : index
    %43 = vector.load %arg2[%c8_28, %c0_29] : memref<25x128xf32, #tpu.memory_space<vmem>>, vector<1x128xf32>
    %44 = vector.broadcast %43 : vector<1x128xf32> to vector<16x128xf32>
    %45 = arith.mulf %42, %44 : vector<16x128xf32>
    %46 = arith.addf %26, %45 : vector<16x128xf32>
    %c1_30 = arith.constant 1 : index
    %c32_31 = arith.constant 32 : index
    %47 = vector.load %arg15[%c1_30, %c32_31] : memref<20x160xf32, #tpu.memory_space<vmem>>, vector<16x128xf32>
    %c9 = arith.constant 9 : index
    %c0_32 = arith.constant 0 : index
    %48 = vector.load %arg2[%c9, %c0_32] : memref<25x128xf32, #tpu.memory_space<vmem>>, vector<1x128xf32>
    %49 = vector.broadcast %48 : vector<1x128xf32> to vector<16x128xf32>
    %50 = arith.mulf %47, %49 : vector<16x128xf32>
    %51 = arith.addf %31, %50 : vector<16x128xf32>
    %c2_33 = arith.constant 2 : index
    %c0_34 = arith.constant 0 : index
    %52 = vector.load %arg15[%c2_33, %c0_34] : memref<20x160xf32, #tpu.memory_space<vmem>>, vector<16x128xf32>
    %c10 = arith.constant 10 : index
    %c0_35 = arith.constant 0 : index
    %53 = vector.load %arg2[%c10, %c0_35] : memref<25x128xf32, #tpu.memory_space<vmem>>, vector<1x128xf32>
    %54 = vector.broadcast %53 : vector<1x128xf32> to vector<16x128xf32>
    %55 = arith.mulf %52, %54 : vector<16x128xf32>
    %56 = arith.addf %36, %55 : vector<16x128xf32>
    %c2_36 = arith.constant 2 : index
    %c8_37 = arith.constant 8 : index
    %57 = vector.load %arg15[%c2_36, %c8_37] : memref<20x160xf32, #tpu.memory_space<vmem>>, vector<16x128xf32>
    %c11 = arith.constant 11 : index
    %c0_38 = arith.constant 0 : index
    %58 = vector.load %arg2[%c11, %c0_38] : memref<25x128xf32, #tpu.memory_space<vmem>>, vector<1x128xf32>
    %59 = vector.broadcast %58 : vector<1x128xf32> to vector<16x128xf32>
    %60 = arith.mulf %57, %59 : vector<16x128xf32>
    %61 = arith.addf %41, %60 : vector<16x128xf32>
    %c2_39 = arith.constant 2 : index
    %c16_40 = arith.constant 16 : index
    %62 = vector.load %arg15[%c2_39, %c16_40] : memref<20x160xf32, #tpu.memory_space<vmem>>, vector<16x128xf32>
    %c12 = arith.constant 12 : index
    %c0_41 = arith.constant 0 : index
    %63 = vector.load %arg2[%c12, %c0_41] : memref<25x128xf32, #tpu.memory_space<vmem>>, vector<1x128xf32>
    %64 = vector.broadcast %63 : vector<1x128xf32> to vector<16x128xf32>
    %65 = arith.mulf %62, %64 : vector<16x128xf32>
    %66 = arith.addf %46, %65 : vector<16x128xf32>
    %c2_42 = arith.constant 2 : index
    %c24_43 = arith.constant 24 : index
    %67 = vector.load %arg15[%c2_42, %c24_43] : memref<20x160xf32, #tpu.memory_space<vmem>>, vector<16x128xf32>
    %c13 = arith.constant 13 : index
    %c0_44 = arith.constant 0 : index
    %68 = vector.load %arg2[%c13, %c0_44] : memref<25x128xf32, #tpu.memory_space<vmem>>, vector<1x128xf32>
    %69 = vector.broadcast %68 : vector<1x128xf32> to vector<16x128xf32>
    %70 = arith.mulf %67, %69 : vector<16x128xf32>
    %71 = arith.addf %51, %70 : vector<16x128xf32>
    %c2_45 = arith.constant 2 : index
    %c32_46 = arith.constant 32 : index
    %72 = vector.load %arg15[%c2_45, %c32_46] : memref<20x160xf32, #tpu.memory_space<vmem>>, vector<16x128xf32>
    %c14 = arith.constant 14 : index
    %c0_47 = arith.constant 0 : index
    %73 = vector.load %arg2[%c14, %c0_47] : memref<25x128xf32, #tpu.memory_space<vmem>>, vector<1x128xf32>
    %74 = vector.broadcast %73 : vector<1x128xf32> to vector<16x128xf32>
    %75 = arith.mulf %72, %74 : vector<16x128xf32>
    %76 = arith.addf %56, %75 : vector<16x128xf32>
    %c3_48 = arith.constant 3 : index
    %c0_49 = arith.constant 0 : index
    %77 = vector.load %arg15[%c3_48, %c0_49] : memref<20x160xf32, #tpu.memory_space<vmem>>, vector<16x128xf32>
    %c15 = arith.constant 15 : index
    %c0_50 = arith.constant 0 : index
    %78 = vector.load %arg2[%c15, %c0_50] : memref<25x128xf32, #tpu.memory_space<vmem>>, vector<1x128xf32>
    %79 = vector.broadcast %78 : vector<1x128xf32> to vector<16x128xf32>
    %80 = arith.mulf %77, %79 : vector<16x128xf32>
    %81 = arith.addf %61, %80 : vector<16x128xf32>
    %c3_51 = arith.constant 3 : index
    %c8_52 = arith.constant 8 : index
    %82 = vector.load %arg15[%c3_51, %c8_52] : memref<20x160xf32, #tpu.memory_space<vmem>>, vector<16x128xf32>
    %c16_53 = arith.constant 16 : index
    %c0_54 = arith.constant 0 : index
    %83 = vector.load %arg2[%c16_53, %c0_54] : memref<25x128xf32, #tpu.memory_space<vmem>>, vector<1x128xf32>
    %84 = vector.broadcast %83 : vector<1x128xf32> to vector<16x128xf32>
    %85 = arith.mulf %82, %84 : vector<16x128xf32>
    %86 = arith.addf %66, %85 : vector<16x128xf32>
    %c3_55 = arith.constant 3 : index
    %c16_56 = arith.constant 16 : index
    %87 = vector.load %arg15[%c3_55, %c16_56] : memref<20x160xf32, #tpu.memory_space<vmem>>, vector<16x128xf32>
    %c17 = arith.constant 17 : index
    %c0_57 = arith.constant 0 : index
    %88 = vector.load %arg2[%c17, %c0_57] : memref<25x128xf32, #tpu.memory_space<vmem>>, vector<1x128xf32>
    %89 = vector.broadcast %88 : vector<1x128xf32> to vector<16x128xf32>
    %90 = arith.mulf %87, %89 : vector<16x128xf32>
    %91 = arith.addf %71, %90 : vector<16x128xf32>
    %c3_58 = arith.constant 3 : index
    %c24_59 = arith.constant 24 : index
    %92 = vector.load %arg15[%c3_58, %c24_59] : memref<20x160xf32, #tpu.memory_space<vmem>>, vector<16x128xf32>
    %c18 = arith.constant 18 : index
    %c0_60 = arith.constant 0 : index
    %93 = vector.load %arg2[%c18, %c0_60] : memref<25x128xf32, #tpu.memory_space<vmem>>, vector<1x128xf32>
    %94 = vector.broadcast %93 : vector<1x128xf32> to vector<16x128xf32>
    %95 = arith.mulf %92, %94 : vector<16x128xf32>
    %96 = arith.addf %76, %95 : vector<16x128xf32>
    %c3_61 = arith.constant 3 : index
    %c32_62 = arith.constant 32 : index
    %97 = vector.load %arg15[%c3_61, %c32_62] : memref<20x160xf32, #tpu.memory_space<vmem>>, vector<16x128xf32>
    %c19 = arith.constant 19 : index
    %c0_63 = arith.constant 0 : index
    %98 = vector.load %arg2[%c19, %c0_63] : memref<25x128xf32, #tpu.memory_space<vmem>>, vector<1x128xf32>
    %99 = vector.broadcast %98 : vector<1x128xf32> to vector<16x128xf32>
    %100 = arith.mulf %97, %99 : vector<16x128xf32>
    %101 = arith.addf %81, %100 : vector<16x128xf32>
    %c4_64 = arith.constant 4 : index
    %c0_65 = arith.constant 0 : index
    %102 = vector.load %arg15[%c4_64, %c0_65] : memref<20x160xf32, #tpu.memory_space<vmem>>, vector<16x128xf32>
    %c20 = arith.constant 20 : index
    %c0_66 = arith.constant 0 : index
    %103 = vector.load %arg2[%c20, %c0_66] : memref<25x128xf32, #tpu.memory_space<vmem>>, vector<1x128xf32>
    %104 = vector.broadcast %103 : vector<1x128xf32> to vector<16x128xf32>
    %105 = arith.mulf %102, %104 : vector<16x128xf32>
    %106 = arith.addf %86, %105 : vector<16x128xf32>
    %c4_67 = arith.constant 4 : index
    %c8_68 = arith.constant 8 : index
    %107 = vector.load %arg15[%c4_67, %c8_68] : memref<20x160xf32, #tpu.memory_space<vmem>>, vector<16x128xf32>
    %c21 = arith.constant 21 : index
    %c0_69 = arith.constant 0 : index
    %108 = vector.load %arg2[%c21, %c0_69] : memref<25x128xf32, #tpu.memory_space<vmem>>, vector<1x128xf32>
    %109 = vector.broadcast %108 : vector<1x128xf32> to vector<16x128xf32>
    %110 = arith.mulf %107, %109 : vector<16x128xf32>
    %111 = arith.addf %91, %110 : vector<16x128xf32>
    %c4_70 = arith.constant 4 : index
    %c16_71 = arith.constant 16 : index
    %112 = vector.load %arg15[%c4_70, %c16_71] : memref<20x160xf32, #tpu.memory_space<vmem>>, vector<16x128xf32>
    %c22 = arith.constant 22 : index
    %c0_72 = arith.constant 0 : index
    %113 = vector.load %arg2[%c22, %c0_72] : memref<25x128xf32, #tpu.memory_space<vmem>>, vector<1x128xf32>
    %114 = vector.broadcast %113 : vector<1x128xf32> to vector<16x128xf32>
    %115 = arith.mulf %112, %114 : vector<16x128xf32>
    %116 = arith.addf %96, %115 : vector<16x128xf32>
    %c4_73 = arith.constant 4 : index
    %c24_74 = arith.constant 24 : index
    %117 = vector.load %arg15[%c4_73, %c24_74] : memref<20x160xf32, #tpu.memory_space<vmem>>, vector<16x128xf32>
    %c23 = arith.constant 23 : index
    %c0_75 = arith.constant 0 : index
    %118 = vector.load %arg2[%c23, %c0_75] : memref<25x128xf32, #tpu.memory_space<vmem>>, vector<1x128xf32>
    %119 = vector.broadcast %118 : vector<1x128xf32> to vector<16x128xf32>
    %120 = arith.mulf %117, %119 : vector<16x128xf32>
    %121 = arith.addf %101, %120 : vector<16x128xf32>
    %c4_76 = arith.constant 4 : index
    %c32_77 = arith.constant 32 : index
    %122 = vector.load %arg15[%c4_76, %c32_77] : memref<20x160xf32, #tpu.memory_space<vmem>>, vector<16x128xf32>
    %c24_78 = arith.constant 24 : index
    %c0_79 = arith.constant 0 : index
    %123 = vector.load %arg2[%c24_78, %c0_79] : memref<25x128xf32, #tpu.memory_space<vmem>>, vector<1x128xf32>
    %124 = vector.broadcast %123 : vector<1x128xf32> to vector<16x128xf32>
    %125 = arith.mulf %122, %124 : vector<16x128xf32>
    %126 = arith.addf %106, %125 : vector<16x128xf32>
    %127 = arith.addf %126, %111 : vector<16x128xf32>
    %128 = arith.addf %116, %121 : vector<16x128xf32>
    %129 = arith.addf %127, %128 : vector<16x128xf32>
    %c0_80 = arith.constant 0 : index
    %c0_81 = arith.constant 0 : index
    %130 = vector.load %arg3[%c0_80, %c0_81] : memref<1x128xf32, #tpu.memory_space<vmem>>, vector<1x128xf32>
    %131 = vector.broadcast %130 : vector<1x128xf32> to vector<16x128xf32>
    %132 = arith.addf %129, %131 : vector<16x128xf32>
    %c9_82 = arith.constant 9 : index
    %c72 = arith.constant 72 : index
    %133 = vector.load %arg16[%c9_82, %c72] : memref<34x272xf32, #tpu.memory_space<vmem>>, vector<16x128xf32>
    tpu.vector_store %arg16[%c9_82, %c72], %132 {strides = array<i32>} : memref<34x272xf32, #tpu.memory_space<vmem>>, vector<16x128xf32>,
    %c0_83 = arith.constant 0 : index
    %c0_84 = arith.constant 0 : index
    %134 = vector.load %arg16[%c0_83, %c0_84] : memref<34x272xf32, #tpu.memory_space<vmem>>, vector<16x128xf32>
    %c0_85 = arith.constant 0 : index
    %c0_86 = arith.constant 0 : index
    %135 = vector.load %arg4[%c0_85, %c0_86] : memref<49x128xf32, #tpu.memory_space<vmem>>, vector<1x128xf32>
    %136 = vector.broadcast %135 : vector<1x128xf32> to vector<16x128xf32>
    %137 = arith.mulf %134, %136 : vector<16x128xf32>
    %c0_87 = arith.constant 0 : index
    %c24_88 = arith.constant 24 : index
    %138 = vector.load %arg16[%c0_87, %c24_88] : memref<34x272xf32, #tpu.memory_space<vmem>>, vector<16x128xf32>
    %c1_89 = arith.constant 1 : index
    %c0_90 = arith.constant 0 : index
    %139 = vector.load %arg4[%c1_89, %c0_90] : memref<49x128xf32, #tpu.memory_space<vmem>>, vector<1x128xf32>
    %140 = vector.broadcast %139 : vector<1x128xf32> to vector<16x128xf32>
    %141 = arith.mulf %138, %140 : vector<16x128xf32>
    %c0_91 = arith.constant 0 : index
    %c48 = arith.constant 48 : index
    %142 = vector.load %arg16[%c0_91, %c48] : memref<34x272xf32, #tpu.memory_space<vmem>>, vector<16x128xf32>
    %c2_92 = arith.constant 2 : index
    %c0_93 = arith.constant 0 : index
    %143 = vector.load %arg4[%c2_92, %c0_93] : memref<49x128xf32, #tpu.memory_space<vmem>>, vector<1x128xf32>
    %144 = vector.broadcast %143 : vector<1x128xf32> to vector<16x128xf32>
    %145 = arith.mulf %142, %144 : vector<16x128xf32>
    %c0_94 = arith.constant 0 : index
    %c72_95 = arith.constant 72 : index
    %146 = vector.load %arg16[%c0_94, %c72_95] : memref<34x272xf32, #tpu.memory_space<vmem>>, vector<16x128xf32>
    %c3_96 = arith.constant 3 : index
    %c0_97 = arith.constant 0 : index
    %147 = vector.load %arg4[%c3_96, %c0_97] : memref<49x128xf32, #tpu.memory_space<vmem>>, vector<1x128xf32>
    %148 = vector.broadcast %147 : vector<1x128xf32> to vector<16x128xf32>
    %149 = arith.mulf %146, %148 : vector<16x128xf32>
    %c0_98 = arith.constant 0 : index
    %c96 = arith.constant 96 : index
    %150 = vector.load %arg16[%c0_98, %c96] : memref<34x272xf32, #tpu.memory_space<vmem>>, vector<16x128xf32>
    %c4_99 = arith.constant 4 : index
    %c0_100 = arith.constant 0 : index
    %151 = vector.load %arg4[%c4_99, %c0_100] : memref<49x128xf32, #tpu.memory_space<vmem>>, vector<1x128xf32>
    %152 = vector.broadcast %151 : vector<1x128xf32> to vector<16x128xf32>
    %153 = arith.mulf %150, %152 : vector<16x128xf32>
    %154 = arith.addf %137, %153 : vector<16x128xf32>
    %c0_101 = arith.constant 0 : index
    %c120 = arith.constant 120 : index
    %155 = vector.load %arg16[%c0_101, %c120] : memref<34x272xf32, #tpu.memory_space<vmem>>, vector<16x128xf32>
    %c5_102 = arith.constant 5 : index
    %c0_103 = arith.constant 0 : index
    %156 = vector.load %arg4[%c5_102, %c0_103] : memref<49x128xf32, #tpu.memory_space<vmem>>, vector<1x128xf32>
    %157 = vector.broadcast %156 : vector<1x128xf32> to vector<16x128xf32>
    %158 = arith.mulf %155, %157 : vector<16x128xf32>
    %159 = arith.addf %141, %158 : vector<16x128xf32>
    %c0_104 = arith.constant 0 : index
    %c144 = arith.constant 144 : index
    %160 = vector.load %arg16[%c0_104, %c144] : memref<34x272xf32, #tpu.memory_space<vmem>>, vector<16x128xf32>
    %c6_105 = arith.constant 6 : index
    %c0_106 = arith.constant 0 : index
    %161 = vector.load %arg4[%c6_105, %c0_106] : memref<49x128xf32, #tpu.memory_space<vmem>>, vector<1x128xf32>
    %162 = vector.broadcast %161 : vector<1x128xf32> to vector<16x128xf32>
    %163 = arith.mulf %160, %162 : vector<16x128xf32>
    %164 = arith.addf %145, %163 : vector<16x128xf32>
    %c3_107 = arith.constant 3 : index
    %c0_108 = arith.constant 0 : index
    %165 = vector.load %arg16[%c3_107, %c0_108] : memref<34x272xf32, #tpu.memory_space<vmem>>, vector<16x128xf32>
    %c7_109 = arith.constant 7 : index
    %c0_110 = arith.constant 0 : index
    %166 = vector.load %arg4[%c7_109, %c0_110] : memref<49x128xf32, #tpu.memory_space<vmem>>, vector<1x128xf32>
    %167 = vector.broadcast %166 : vector<1x128xf32> to vector<16x128xf32>
    %168 = arith.mulf %165, %167 : vector<16x128xf32>
    %169 = arith.addf %149, %168 : vector<16x128xf32>
    %c3_111 = arith.constant 3 : index
    %c24_112 = arith.constant 24 : index
    %170 = vector.load %arg16[%c3_111, %c24_112] : memref<34x272xf32, #tpu.memory_space<vmem>>, vector<16x128xf32>
    %c8_113 = arith.constant 8 : index
    %c0_114 = arith.constant 0 : index
    %171 = vector.load %arg4[%c8_113, %c0_114] : memref<49x128xf32, #tpu.memory_space<vmem>>, vector<1x128xf32>
    %172 = vector.broadcast %171 : vector<1x128xf32> to vector<16x128xf32>
    %173 = arith.mulf %170, %172 : vector<16x128xf32>
    %174 = arith.addf %154, %173 : vector<16x128xf32>
    %c3_115 = arith.constant 3 : index
    %c48_116 = arith.constant 48 : index
    %175 = vector.load %arg16[%c3_115, %c48_116] : memref<34x272xf32, #tpu.memory_space<vmem>>, vector<16x128xf32>
    %c9_117 = arith.constant 9 : index
    %c0_118 = arith.constant 0 : index
    %176 = vector.load %arg4[%c9_117, %c0_118] : memref<49x128xf32, #tpu.memory_space<vmem>>, vector<1x128xf32>
    %177 = vector.broadcast %176 : vector<1x128xf32> to vector<16x128xf32>
    %178 = arith.mulf %175, %177 : vector<16x128xf32>
    %179 = arith.addf %159, %178 : vector<16x128xf32>
    %c3_119 = arith.constant 3 : index
    %c72_120 = arith.constant 72 : index
    %180 = vector.load %arg16[%c3_119, %c72_120] : memref<34x272xf32, #tpu.memory_space<vmem>>, vector<16x128xf32>
    %c10_121 = arith.constant 10 : index
    %c0_122 = arith.constant 0 : index
    %181 = vector.load %arg4[%c10_121, %c0_122] : memref<49x128xf32, #tpu.memory_space<vmem>>, vector<1x128xf32>
    %182 = vector.broadcast %181 : vector<1x128xf32> to vector<16x128xf32>
    %183 = arith.mulf %180, %182 : vector<16x128xf32>
    %184 = arith.addf %164, %183 : vector<16x128xf32>
    %c3_123 = arith.constant 3 : index
    %c96_124 = arith.constant 96 : index
    %185 = vector.load %arg16[%c3_123, %c96_124] : memref<34x272xf32, #tpu.memory_space<vmem>>, vector<16x128xf32>
    %c11_125 = arith.constant 11 : index
    %c0_126 = arith.constant 0 : index
    %186 = vector.load %arg4[%c11_125, %c0_126] : memref<49x128xf32, #tpu.memory_space<vmem>>, vector<1x128xf32>
    %187 = vector.broadcast %186 : vector<1x128xf32> to vector<16x128xf32>
    %188 = arith.mulf %185, %187 : vector<16x128xf32>
    %189 = arith.addf %169, %188 : vector<16x128xf32>
    %c3_127 = arith.constant 3 : index
    %c120_128 = arith.constant 120 : index
    %190 = vector.load %arg16[%c3_127, %c120_128] : memref<34x272xf32, #tpu.memory_space<vmem>>, vector<16x128xf32>
    %c12_129 = arith.constant 12 : index
    %c0_130 = arith.constant 0 : index
    %191 = vector.load %arg4[%c12_129, %c0_130] : memref<49x128xf32, #tpu.memory_space<vmem>>, vector<1x128xf32>
    %192 = vector.broadcast %191 : vector<1x128xf32> to vector<16x128xf32>
    %193 = arith.mulf %190, %192 : vector<16x128xf32>
    %194 = arith.addf %174, %193 : vector<16x128xf32>
    %c3_131 = arith.constant 3 : index
    %c144_132 = arith.constant 144 : index
    %195 = vector.load %arg16[%c3_131, %c144_132] : memref<34x272xf32, #tpu.memory_space<vmem>>, vector<16x128xf32>
    %c13_133 = arith.constant 13 : index
    %c0_134 = arith.constant 0 : index
    %196 = vector.load %arg4[%c13_133, %c0_134] : memref<49x128xf32, #tpu.memory_space<vmem>>, vector<1x128xf32>
    %197 = vector.broadcast %196 : vector<1x128xf32> to vector<16x128xf32>
    %198 = arith.mulf %195, %197 : vector<16x128xf32>
    %199 = arith.addf %179, %198 : vector<16x128xf32>
    %c6_135 = arith.constant 6 : index
    %c0_136 = arith.constant 0 : index
    %200 = vector.load %arg16[%c6_135, %c0_136] : memref<34x272xf32, #tpu.memory_space<vmem>>, vector<16x128xf32>
    %c14_137 = arith.constant 14 : index
    %c0_138 = arith.constant 0 : index
    %201 = vector.load %arg4[%c14_137, %c0_138] : memref<49x128xf32, #tpu.memory_space<vmem>>, vector<1x128xf32>
    %202 = vector.broadcast %201 : vector<1x128xf32> to vector<16x128xf32>
    %203 = arith.mulf %200, %202 : vector<16x128xf32>
    %204 = arith.addf %184, %203 : vector<16x128xf32>
    %c6_139 = arith.constant 6 : index
    %c24_140 = arith.constant 24 : index
    %205 = vector.load %arg16[%c6_139, %c24_140] : memref<34x272xf32, #tpu.memory_space<vmem>>, vector<16x128xf32>
    %c15_141 = arith.constant 15 : index
    %c0_142 = arith.constant 0 : index
    %206 = vector.load %arg4[%c15_141, %c0_142] : memref<49x128xf32, #tpu.memory_space<vmem>>, vector<1x128xf32>
    %207 = vector.broadcast %206 : vector<1x128xf32> to vector<16x128xf32>
    %208 = arith.mulf %205, %207 : vector<16x128xf32>
    %209 = arith.addf %189, %208 : vector<16x128xf32>
    %c6_143 = arith.constant 6 : index
    %c48_144 = arith.constant 48 : index
    %210 = vector.load %arg16[%c6_143, %c48_144] : memref<34x272xf32, #tpu.memory_space<vmem>>, vector<16x128xf32>
    %c16_145 = arith.constant 16 : index
    %c0_146 = arith.constant 0 : index
    %211 = vector.load %arg4[%c16_145, %c0_146] : memref<49x128xf32, #tpu.memory_space<vmem>>, vector<1x128xf32>
    %212 = vector.broadcast %211 : vector<1x128xf32> to vector<16x128xf32>
    %213 = arith.mulf %210, %212 : vector<16x128xf32>
    %214 = arith.addf %194, %213 : vector<16x128xf32>
    %c6_147 = arith.constant 6 : index
    %c72_148 = arith.constant 72 : index
    %215 = vector.load %arg16[%c6_147, %c72_148] : memref<34x272xf32, #tpu.memory_space<vmem>>, vector<16x128xf32>
    %c17_149 = arith.constant 17 : index
    %c0_150 = arith.constant 0 : index
    %216 = vector.load %arg4[%c17_149, %c0_150] : memref<49x128xf32, #tpu.memory_space<vmem>>, vector<1x128xf32>
    %217 = vector.broadcast %216 : vector<1x128xf32> to vector<16x128xf32>
    %218 = arith.mulf %215, %217 : vector<16x128xf32>
    %219 = arith.addf %199, %218 : vector<16x128xf32>
    %c6_151 = arith.constant 6 : index
    %c96_152 = arith.constant 96 : index
    %220 = vector.load %arg16[%c6_151, %c96_152] : memref<34x272xf32, #tpu.memory_space<vmem>>, vector<16x128xf32>
    %c18_153 = arith.constant 18 : index
    %c0_154 = arith.constant 0 : index
    %221 = vector.load %arg4[%c18_153, %c0_154] : memref<49x128xf32, #tpu.memory_space<vmem>>, vector<1x128xf32>
    %222 = vector.broadcast %221 : vector<1x128xf32> to vector<16x128xf32>
    %223 = arith.mulf %220, %222 : vector<16x128xf32>
    %224 = arith.addf %204, %223 : vector<16x128xf32>
    %c6_155 = arith.constant 6 : index
    %c120_156 = arith.constant 120 : index
    %225 = vector.load %arg16[%c6_155, %c120_156] : memref<34x272xf32, #tpu.memory_space<vmem>>, vector<16x128xf32>
    %c19_157 = arith.constant 19 : index
    %c0_158 = arith.constant 0 : index
    %226 = vector.load %arg4[%c19_157, %c0_158] : memref<49x128xf32, #tpu.memory_space<vmem>>, vector<1x128xf32>
    %227 = vector.broadcast %226 : vector<1x128xf32> to vector<16x128xf32>
    %228 = arith.mulf %225, %227 : vector<16x128xf32>
    %229 = arith.addf %209, %228 : vector<16x128xf32>
    %c6_159 = arith.constant 6 : index
    %c144_160 = arith.constant 144 : index
    %230 = vector.load %arg16[%c6_159, %c144_160] : memref<34x272xf32, #tpu.memory_space<vmem>>, vector<16x128xf32>
    %c20_161 = arith.constant 20 : index
    %c0_162 = arith.constant 0 : index
    %231 = vector.load %arg4[%c20_161, %c0_162] : memref<49x128xf32, #tpu.memory_space<vmem>>, vector<1x128xf32>
    %232 = vector.broadcast %231 : vector<1x128xf32> to vector<16x128xf32>
    %233 = arith.mulf %230, %232 : vector<16x128xf32>
    %234 = arith.addf %214, %233 : vector<16x128xf32>
    %c9_163 = arith.constant 9 : index
    %c0_164 = arith.constant 0 : index
    %235 = vector.load %arg16[%c9_163, %c0_164] : memref<34x272xf32, #tpu.memory_space<vmem>>, vector<16x128xf32>
    %c21_165 = arith.constant 21 : index
    %c0_166 = arith.constant 0 : index
    %236 = vector.load %arg4[%c21_165, %c0_166] : memref<49x128xf32, #tpu.memory_space<vmem>>, vector<1x128xf32>
    %237 = vector.broadcast %236 : vector<1x128xf32> to vector<16x128xf32>
    %238 = arith.mulf %235, %237 : vector<16x128xf32>
    %239 = arith.addf %219, %238 : vector<16x128xf32>
    %c9_167 = arith.constant 9 : index
    %c24_168 = arith.constant 24 : index
    %240 = vector.load %arg16[%c9_167, %c24_168] : memref<34x272xf32, #tpu.memory_space<vmem>>, vector<16x128xf32>
    %c22_169 = arith.constant 22 : index
    %c0_170 = arith.constant 0 : index
    %241 = vector.load %arg4[%c22_169, %c0_170] : memref<49x128xf32, #tpu.memory_space<vmem>>, vector<1x128xf32>
    %242 = vector.broadcast %241 : vector<1x128xf32> to vector<16x128xf32>
    %243 = arith.mulf %240, %242 : vector<16x128xf32>
    %244 = arith.addf %224, %243 : vector<16x128xf32>
    %c9_171 = arith.constant 9 : index
    %c48_172 = arith.constant 48 : index
    %245 = vector.load %arg16[%c9_171, %c48_172] : memref<34x272xf32, #tpu.memory_space<vmem>>, vector<16x128xf32>
    %c23_173 = arith.constant 23 : index
    %c0_174 = arith.constant 0 : index
    %246 = vector.load %arg4[%c23_173, %c0_174] : memref<49x128xf32, #tpu.memory_space<vmem>>, vector<1x128xf32>
    %247 = vector.broadcast %246 : vector<1x128xf32> to vector<16x128xf32>
    %248 = arith.mulf %245, %247 : vector<16x128xf32>
    %249 = arith.addf %229, %248 : vector<16x128xf32>
    %c9_175 = arith.constant 9 : index
    %c72_176 = arith.constant 72 : index
    %250 = vector.load %arg16[%c9_175, %c72_176] : memref<34x272xf32, #tpu.memory_space<vmem>>, vector<16x128xf32>
    %c24_177 = arith.constant 24 : index
    %c0_178 = arith.constant 0 : index
    %251 = vector.load %arg4[%c24_177, %c0_178] : memref<49x128xf32, #tpu.memory_space<vmem>>, vector<1x128xf32>
    %252 = vector.broadcast %251 : vector<1x128xf32> to vector<16x128xf32>
    %253 = arith.mulf %250, %252 : vector<16x128xf32>
    %254 = arith.addf %234, %253 : vector<16x128xf32>
    %c9_179 = arith.constant 9 : index
    %c96_180 = arith.constant 96 : index
    %255 = vector.load %arg16[%c9_179, %c96_180] : memref<34x272xf32, #tpu.memory_space<vmem>>, vector<16x128xf32>
    %c25 = arith.constant 25 : index
    %c0_181 = arith.constant 0 : index
    %256 = vector.load %arg4[%c25, %c0_181] : memref<49x128xf32, #tpu.memory_space<vmem>>, vector<1x128xf32>
    %257 = vector.broadcast %256 : vector<1x128xf32> to vector<16x128xf32>
    %258 = arith.mulf %255, %257 : vector<16x128xf32>
    %259 = arith.addf %239, %258 : vector<16x128xf32>
    %c9_182 = arith.constant 9 : index
    %c120_183 = arith.constant 120 : index
    %260 = vector.load %arg16[%c9_182, %c120_183] : memref<34x272xf32, #tpu.memory_space<vmem>>, vector<16x128xf32>
    %c26 = arith.constant 26 : index
    %c0_184 = arith.constant 0 : index
    %261 = vector.load %arg4[%c26, %c0_184] : memref<49x128xf32, #tpu.memory_space<vmem>>, vector<1x128xf32>
    %262 = vector.broadcast %261 : vector<1x128xf32> to vector<16x128xf32>
    %263 = arith.mulf %260, %262 : vector<16x128xf32>
    %264 = arith.addf %244, %263 : vector<16x128xf32>
    %c9_185 = arith.constant 9 : index
    %c144_186 = arith.constant 144 : index
    %265 = vector.load %arg16[%c9_185, %c144_186] : memref<34x272xf32, #tpu.memory_space<vmem>>, vector<16x128xf32>
    %c27 = arith.constant 27 : index
    %c0_187 = arith.constant 0 : index
    %266 = vector.load %arg4[%c27, %c0_187] : memref<49x128xf32, #tpu.memory_space<vmem>>, vector<1x128xf32>
    %267 = vector.broadcast %266 : vector<1x128xf32> to vector<16x128xf32>
    %268 = arith.mulf %265, %267 : vector<16x128xf32>
    %269 = arith.addf %249, %268 : vector<16x128xf32>
    %c12_188 = arith.constant 12 : index
    %c0_189 = arith.constant 0 : index
    %270 = vector.load %arg16[%c12_188, %c0_189] : memref<34x272xf32, #tpu.memory_space<vmem>>, vector<16x128xf32>
    %c28 = arith.constant 28 : index
    %c0_190 = arith.constant 0 : index
    %271 = vector.load %arg4[%c28, %c0_190] : memref<49x128xf32, #tpu.memory_space<vmem>>, vector<1x128xf32>
    %272 = vector.broadcast %271 : vector<1x128xf32> to vector<16x128xf32>
    %273 = arith.mulf %270, %272 : vector<16x128xf32>
    %274 = arith.addf %254, %273 : vector<16x128xf32>
    %c12_191 = arith.constant 12 : index
    %c24_192 = arith.constant 24 : index
    %275 = vector.load %arg16[%c12_191, %c24_192] : memref<34x272xf32, #tpu.memory_space<vmem>>, vector<16x128xf32>
    %c29 = arith.constant 29 : index
    %c0_193 = arith.constant 0 : index
    %276 = vector.load %arg4[%c29, %c0_193] : memref<49x128xf32, #tpu.memory_space<vmem>>, vector<1x128xf32>
    %277 = vector.broadcast %276 : vector<1x128xf32> to vector<16x128xf32>
    %278 = arith.mulf %275, %277 : vector<16x128xf32>
    %279 = arith.addf %259, %278 : vector<16x128xf32>
    %c12_194 = arith.constant 12 : index
    %c48_195 = arith.constant 48 : index
    %280 = vector.load %arg16[%c12_194, %c48_195] : memref<34x272xf32, #tpu.memory_space<vmem>>, vector<16x128xf32>
    %c30 = arith.constant 30 : index
    %c0_196 = arith.constant 0 : index
    %281 = vector.load %arg4[%c30, %c0_196] : memref<49x128xf32, #tpu.memory_space<vmem>>, vector<1x128xf32>
    %282 = vector.broadcast %281 : vector<1x128xf32> to vector<16x128xf32>
    %283 = arith.mulf %280, %282 : vector<16x128xf32>
    %284 = arith.addf %264, %283 : vector<16x128xf32>
    %c12_197 = arith.constant 12 : index
    %c72_198 = arith.constant 72 : index
    %285 = vector.load %arg16[%c12_197, %c72_198] : memref<34x272xf32, #tpu.memory_space<vmem>>, vector<16x128xf32>
    %c31 = arith.constant 31 : index
    %c0_199 = arith.constant 0 : index
    %286 = vector.load %arg4[%c31, %c0_199] : memref<49x128xf32, #tpu.memory_space<vmem>>, vector<1x128xf32>
    %287 = vector.broadcast %286 : vector<1x128xf32> to vector<16x128xf32>
    %288 = arith.mulf %285, %287 : vector<16x128xf32>
    %289 = arith.addf %269, %288 : vector<16x128xf32>
    %c12_200 = arith.constant 12 : index
    %c96_201 = arith.constant 96 : index
    %290 = vector.load %arg16[%c12_200, %c96_201] : memref<34x272xf32, #tpu.memory_space<vmem>>, vector<16x128xf32>
    %c32_202 = arith.constant 32 : index
    %c0_203 = arith.constant 0 : index
    %291 = vector.load %arg4[%c32_202, %c0_203] : memref<49x128xf32, #tpu.memory_space<vmem>>, vector<1x128xf32>
    %292 = vector.broadcast %291 : vector<1x128xf32> to vector<16x128xf32>
    %293 = arith.mulf %290, %292 : vector<16x128xf32>
    %294 = arith.addf %274, %293 : vector<16x128xf32>
    %c12_204 = arith.constant 12 : index
    %c120_205 = arith.constant 120 : index
    %295 = vector.load %arg16[%c12_204, %c120_205] : memref<34x272xf32, #tpu.memory_space<vmem>>, vector<16x128xf32>
    %c33 = arith.constant 33 : index
    %c0_206 = arith.constant 0 : index
    %296 = vector.load %arg4[%c33, %c0_206] : memref<49x128xf32, #tpu.memory_space<vmem>>, vector<1x128xf32>
    %297 = vector.broadcast %296 : vector<1x128xf32> to vector<16x128xf32>
    %298 = arith.mulf %295, %297 : vector<16x128xf32>
    %299 = arith.addf %279, %298 : vector<16x128xf32>
    %c12_207 = arith.constant 12 : index
    %c144_208 = arith.constant 144 : index
    %300 = vector.load %arg16[%c12_207, %c144_208] : memref<34x272xf32, #tpu.memory_space<vmem>>, vector<16x128xf32>
    %c34 = arith.constant 34 : index
    %c0_209 = arith.constant 0 : index
    %301 = vector.load %arg4[%c34, %c0_209] : memref<49x128xf32, #tpu.memory_space<vmem>>, vector<1x128xf32>
    %302 = vector.broadcast %301 : vector<1x128xf32> to vector<16x128xf32>
    %303 = arith.mulf %300, %302 : vector<16x128xf32>
    %304 = arith.addf %284, %303 : vector<16x128xf32>
    %c15_210 = arith.constant 15 : index
    %c0_211 = arith.constant 0 : index
    %305 = vector.load %arg16[%c15_210, %c0_211] : memref<34x272xf32, #tpu.memory_space<vmem>>, vector<16x128xf32>
    %c35 = arith.constant 35 : index
    %c0_212 = arith.constant 0 : index
    %306 = vector.load %arg4[%c35, %c0_212] : memref<49x128xf32, #tpu.memory_space<vmem>>, vector<1x128xf32>
    %307 = vector.broadcast %306 : vector<1x128xf32> to vector<16x128xf32>
    %308 = arith.mulf %305, %307 : vector<16x128xf32>
    %309 = arith.addf %289, %308 : vector<16x128xf32>
    %c15_213 = arith.constant 15 : index
    %c24_214 = arith.constant 24 : index
    %310 = vector.load %arg16[%c15_213, %c24_214] : memref<34x272xf32, #tpu.memory_space<vmem>>, vector<16x128xf32>
    %c36 = arith.constant 36 : index
    %c0_215 = arith.constant 0 : index
    %311 = vector.load %arg4[%c36, %c0_215] : memref<49x128xf32, #tpu.memory_space<vmem>>, vector<1x128xf32>
    %312 = vector.broadcast %311 : vector<1x128xf32> to vector<16x128xf32>
    %313 = arith.mulf %310, %312 : vector<16x128xf32>
    %314 = arith.addf %294, %313 : vector<16x128xf32>
    %c15_216 = arith.constant 15 : index
    %c48_217 = arith.constant 48 : index
    %315 = vector.load %arg16[%c15_216, %c48_217] : memref<34x272xf32, #tpu.memory_space<vmem>>, vector<16x128xf32>
    %c37 = arith.constant 37 : index
    %c0_218 = arith.constant 0 : index
    %316 = vector.load %arg4[%c37, %c0_218] : memref<49x128xf32, #tpu.memory_space<vmem>>, vector<1x128xf32>
    %317 = vector.broadcast %316 : vector<1x128xf32> to vector<16x128xf32>
    %318 = arith.mulf %315, %317 : vector<16x128xf32>
    %319 = arith.addf %299, %318 : vector<16x128xf32>
    %c15_219 = arith.constant 15 : index
    %c72_220 = arith.constant 72 : index
    %320 = vector.load %arg16[%c15_219, %c72_220] : memref<34x272xf32, #tpu.memory_space<vmem>>, vector<16x128xf32>
    %c38 = arith.constant 38 : index
    %c0_221 = arith.constant 0 : index
    %321 = vector.load %arg4[%c38, %c0_221] : memref<49x128xf32, #tpu.memory_space<vmem>>, vector<1x128xf32>
    %322 = vector.broadcast %321 : vector<1x128xf32> to vector<16x128xf32>
    %323 = arith.mulf %320, %322 : vector<16x128xf32>
    %324 = arith.addf %304, %323 : vector<16x128xf32>
    %c15_222 = arith.constant 15 : index
    %c96_223 = arith.constant 96 : index
    %325 = vector.load %arg16[%c15_222, %c96_223] : memref<34x272xf32, #tpu.memory_space<vmem>>, vector<16x128xf32>
    %c39 = arith.constant 39 : index
    %c0_224 = arith.constant 0 : index
    %326 = vector.load %arg4[%c39, %c0_224] : memref<49x128xf32, #tpu.memory_space<vmem>>, vector<1x128xf32>
    %327 = vector.broadcast %326 : vector<1x128xf32> to vector<16x128xf32>
    %328 = arith.mulf %325, %327 : vector<16x128xf32>
    %329 = arith.addf %309, %328 : vector<16x128xf32>
    %c15_225 = arith.constant 15 : index
    %c120_226 = arith.constant 120 : index
    %330 = vector.load %arg16[%c15_225, %c120_226] : memref<34x272xf32, #tpu.memory_space<vmem>>, vector<16x128xf32>
    %c40 = arith.constant 40 : index
    %c0_227 = arith.constant 0 : index
    %331 = vector.load %arg4[%c40, %c0_227] : memref<49x128xf32, #tpu.memory_space<vmem>>, vector<1x128xf32>
    %332 = vector.broadcast %331 : vector<1x128xf32> to vector<16x128xf32>
    %333 = arith.mulf %330, %332 : vector<16x128xf32>
    %334 = arith.addf %314, %333 : vector<16x128xf32>
    %c15_228 = arith.constant 15 : index
    %c144_229 = arith.constant 144 : index
    %335 = vector.load %arg16[%c15_228, %c144_229] : memref<34x272xf32, #tpu.memory_space<vmem>>, vector<16x128xf32>
    %c41 = arith.constant 41 : index
    %c0_230 = arith.constant 0 : index
    %336 = vector.load %arg4[%c41, %c0_230] : memref<49x128xf32, #tpu.memory_space<vmem>>, vector<1x128xf32>
    %337 = vector.broadcast %336 : vector<1x128xf32> to vector<16x128xf32>
    %338 = arith.mulf %335, %337 : vector<16x128xf32>
    %339 = arith.addf %319, %338 : vector<16x128xf32>
    %c18_231 = arith.constant 18 : index
    %c0_232 = arith.constant 0 : index
    %340 = vector.load %arg16[%c18_231, %c0_232] : memref<34x272xf32, #tpu.memory_space<vmem>>, vector<16x128xf32>
    %c42 = arith.constant 42 : index
    %c0_233 = arith.constant 0 : index
    %341 = vector.load %arg4[%c42, %c0_233] : memref<49x128xf32, #tpu.memory_space<vmem>>, vector<1x128xf32>
    %342 = vector.broadcast %341 : vector<1x128xf32> to vector<16x128xf32>
    %343 = arith.mulf %340, %342 : vector<16x128xf32>
    %344 = arith.addf %324, %343 : vector<16x128xf32>
    %c18_234 = arith.constant 18 : index
    %c24_235 = arith.constant 24 : index
    %345 = vector.load %arg16[%c18_234, %c24_235] : memref<34x272xf32, #tpu.memory_space<vmem>>, vector<16x128xf32>
    %c43 = arith.constant 43 : index
    %c0_236 = arith.constant 0 : index
    %346 = vector.load %arg4[%c43, %c0_236] : memref<49x128xf32, #tpu.memory_space<vmem>>, vector<1x128xf32>
    %347 = vector.broadcast %346 : vector<1x128xf32> to vector<16x128xf32>
    %348 = arith.mulf %345, %347 : vector<16x128xf32>
    %349 = arith.addf %329, %348 : vector<16x128xf32>
    %c18_237 = arith.constant 18 : index
    %c48_238 = arith.constant 48 : index
    %350 = vector.load %arg16[%c18_237, %c48_238] : memref<34x272xf32, #tpu.memory_space<vmem>>, vector<16x128xf32>
    %c44 = arith.constant 44 : index
    %c0_239 = arith.constant 0 : index
    %351 = vector.load %arg4[%c44, %c0_239] : memref<49x128xf32, #tpu.memory_space<vmem>>, vector<1x128xf32>
    %352 = vector.broadcast %351 : vector<1x128xf32> to vector<16x128xf32>
    %353 = arith.mulf %350, %352 : vector<16x128xf32>
    %354 = arith.addf %334, %353 : vector<16x128xf32>
    %c18_240 = arith.constant 18 : index
    %c72_241 = arith.constant 72 : index
    %355 = vector.load %arg16[%c18_240, %c72_241] : memref<34x272xf32, #tpu.memory_space<vmem>>, vector<16x128xf32>
    %c45 = arith.constant 45 : index
    %c0_242 = arith.constant 0 : index
    %356 = vector.load %arg4[%c45, %c0_242] : memref<49x128xf32, #tpu.memory_space<vmem>>, vector<1x128xf32>
    %357 = vector.broadcast %356 : vector<1x128xf32> to vector<16x128xf32>
    %358 = arith.mulf %355, %357 : vector<16x128xf32>
    %359 = arith.addf %339, %358 : vector<16x128xf32>
    %c18_243 = arith.constant 18 : index
    %c96_244 = arith.constant 96 : index
    %360 = vector.load %arg16[%c18_243, %c96_244] : memref<34x272xf32, #tpu.memory_space<vmem>>, vector<16x128xf32>
    %c46 = arith.constant 46 : index
    %c0_245 = arith.constant 0 : index
    %361 = vector.load %arg4[%c46, %c0_245] : memref<49x128xf32, #tpu.memory_space<vmem>>, vector<1x128xf32>
    %362 = vector.broadcast %361 : vector<1x128xf32> to vector<16x128xf32>
    %363 = arith.mulf %360, %362 : vector<16x128xf32>
    %364 = arith.addf %344, %363 : vector<16x128xf32>
    %c18_246 = arith.constant 18 : index
    %c120_247 = arith.constant 120 : index
    %365 = vector.load %arg16[%c18_246, %c120_247] : memref<34x272xf32, #tpu.memory_space<vmem>>, vector<16x128xf32>
    %c47 = arith.constant 47 : index
    %c0_248 = arith.constant 0 : index
    %366 = vector.load %arg4[%c47, %c0_248] : memref<49x128xf32, #tpu.memory_space<vmem>>, vector<1x128xf32>
    %367 = vector.broadcast %366 : vector<1x128xf32> to vector<16x128xf32>
    %368 = arith.mulf %365, %367 : vector<16x128xf32>
    %369 = arith.addf %349, %368 : vector<16x128xf32>
    %c18_249 = arith.constant 18 : index
    %c144_250 = arith.constant 144 : index
    %370 = vector.load %arg16[%c18_249, %c144_250] : memref<34x272xf32, #tpu.memory_space<vmem>>, vector<16x128xf32>
    %c48_251 = arith.constant 48 : index
    %c0_252 = arith.constant 0 : index
    %371 = vector.load %arg4[%c48_251, %c0_252] : memref<49x128xf32, #tpu.memory_space<vmem>>, vector<1x128xf32>
    %372 = vector.broadcast %371 : vector<1x128xf32> to vector<16x128xf32>
    %373 = arith.mulf %370, %372 : vector<16x128xf32>
    %374 = arith.addf %354, %373 : vector<16x128xf32>
    %375 = arith.addf %374, %359 : vector<16x128xf32>
    %376 = arith.addf %364, %369 : vector<16x128xf32>
    %377 = arith.addf %375, %376 : vector<16x128xf32>
    %c0_253 = arith.constant 0 : index
    %c0_254 = arith.constant 0 : index
    %378 = vector.load %arg5[%c0_253, %c0_254] : memref<1x128xf32, #tpu.memory_space<vmem>>, vector<1x128xf32>
    %379 = vector.broadcast %378 : vector<1x128xf32> to vector<16x128xf32>
    %380 = arith.addf %377, %379 : vector<16x128xf32>
    %c0_255 = arith.constant 0 : index
    %c0_256 = arith.constant 0 : index
    %381 = vector.load %arg6[%c0_255, %c0_256] : memref<128x128xf32, #tpu.memory_space<vmem>>, vector<128x128xf32>
    %cst = arith.constant dense<0.000000e+00> : vector<16x128xf32>
    %382 = tpu.matmul %132, %381, %cst {dimension_numbers = #tpu.dot_dimension_numbers<[1], [0], [0], [1], [0, 0, 1, 1], [], []>} : vector<16x128xf32>, vector<128x128xf32>, vector<16x128xf32> -> vector<16x128xf32>
    %c0_257 = arith.constant 0 : index
    %c0_258 = arith.constant 0 : index
    %383 = vector.load %arg7[%c0_257, %c0_258] : memref<128x128xf32, #tpu.memory_space<vmem>>, vector<128x128xf32>
    %cst_259 = arith.constant dense<0.000000e+00> : vector<16x128xf32>
    %384 = tpu.matmul %380, %383, %cst_259 {dimension_numbers = #tpu.dot_dimension_numbers<[1], [0], [0], [1], [0, 0, 1, 1], [], []>} : vector<16x128xf32>, vector<128x128xf32>, vector<16x128xf32> -> vector<16x128xf32>
    %385 = arith.addf %382, %384 : vector<16x128xf32>
    %c0_260 = arith.constant 0 : index
    %c0_261 = arith.constant 0 : index
    %386 = vector.load %arg8[%c0_260, %c0_261] : memref<1x128xf32, #tpu.memory_space<vmem>>, vector<1x128xf32>
    %387 = vector.broadcast %386 : vector<1x128xf32> to vector<16x128xf32>
    %388 = arith.addf %385, %387 : vector<16x128xf32>
    %389 = vector.extract_strided_slice %388 {offsets = [0, 0], sizes = [16, 64], strides = [1, 1]} : vector<16x128xf32> to vector<16x64xf32>
    %390 = vector.extract_strided_slice %388 {offsets = [0, 64], sizes = [16, 64], strides = [1, 1]} : vector<16x128xf32> to vector<16x64xf32>
    %391 = arith.addf %389, %390 : vector<16x64xf32>
    %392 = arith.maximumf %389, %390 : vector<16x64xf32>
    %c0_262 = arith.constant 0 : index
    %c0_263 = arith.constant 0 : index
    %c0_264 = arith.constant 0 : index
    %393 = vector.load %arg9[%c0_262, %c0_263, %c0_264] : memref<2x64x64xf32, #tpu.memory_space<vmem>>, vector<1x64x64xf32>
    %394 = vector.shape_cast %393 : vector<1x64x64xf32> to vector<64x64xf32>
    %cst_265 = arith.constant dense<0.000000e+00> : vector<16x64xf32>
    %395 = tpu.matmul %392, %394, %cst_265 {dimension_numbers = #tpu.dot_dimension_numbers<[1], [0], [0], [1], [0, 0, 1, 1], [], []>} : vector<16x64xf32>, vector<64x64xf32>, vector<16x64xf32> -> vector<16x64xf32>
    %396 = arith.maximumf %392, %395 : vector<16x64xf32>
    %c1_266 = arith.constant 1 : index
    %c0_267 = arith.constant 0 : index
    %c0_268 = arith.constant 0 : index
    %397 = vector.load %arg9[%c1_266, %c0_267, %c0_268] : memref<2x64x64xf32, #tpu.memory_space<vmem>>, vector<1x64x64xf32>
    %398 = vector.shape_cast %397 : vector<1x64x64xf32> to vector<64x64xf32>
    %cst_269 = arith.constant dense<0.000000e+00> : vector<16x64xf32>
    %399 = tpu.matmul %396, %398, %cst_269 {dimension_numbers = #tpu.dot_dimension_numbers<[1], [0], [0], [1], [0, 0, 1, 1], [], []>} : vector<16x64xf32>, vector<64x64xf32>, vector<16x64xf32> -> vector<16x64xf32>
    %400 = arith.maximumf %396, %399 : vector<16x64xf32>
    %c3_270 = arith.constant 3 : index
    %c0_271 = arith.constant 0 : index
    %401 = vector.load %arg17[%c3_270, %c0_271] : memref<22x128xf32, #tpu.memory_space<vmem>>, vector<16x64xf32>
    tpu.vector_store %arg17[%c3_270, %c0_271], %391 {strides = array<i32>} : memref<22x128xf32, #tpu.memory_space<vmem>>, vector<16x64xf32>,
    %c3_272 = arith.constant 3 : index
    %c64 = arith.constant 64 : index
    %402 = vector.load %arg17[%c3_272, %c64] : memref<22x128xf32, #tpu.memory_space<vmem>>, vector<16x64xf32>
    tpu.vector_store %arg17[%c3_272, %c64], %400 {strides = array<i32>} : memref<22x128xf32, #tpu.memory_space<vmem>>, vector<16x64xf32>,
    %cst_273 = arith.constant 0.000000e+00 : f32
    %403 = vector.broadcast %cst_273 : f32 to vector<16x128xf32>
    %c0_274 = arith.constant 0 : index
    %c0_275 = arith.constant 0 : index
    %404 = vector.load %arg11[%c0_274, %c0_275] : memref<1x128xf32, #tpu.memory_space<vmem>>, vector<1x128xf32>
    %405 = vector.broadcast %404 : vector<1x128xf32> to vector<16x128xf32>
    %406 = arith.addf %403, %405 : vector<16x128xf32>
    %c0_276 = arith.constant 0 : index
    %c0_277 = arith.constant 0 : index
    %407 = vector.load %arg17[%c0_276, %c0_277] : memref<22x128xf32, #tpu.memory_space<vmem>>, vector<16x128xf32>
    %c0_278 = arith.constant 0 : index
    %c0_279 = arith.constant 0 : index
    %c0_280 = arith.constant 0 : index
    %408 = vector.load %arg10[%c0_278, %c0_279, %c0_280] : memref<7x128x128xf32, #tpu.memory_space<vmem>>, vector<1x128x128xf32>
    %409 = vector.shape_cast %408 : vector<1x128x128xf32> to vector<128x128xf32>
    %cst_281 = arith.constant dense<0.000000e+00> : vector<16x128xf32>
    %410 = tpu.matmul %407, %409, %cst_281 {dimension_numbers = #tpu.dot_dimension_numbers<[1], [0], [0], [1], [0, 0, 1, 1], [], []>} : vector<16x128xf32>, vector<128x128xf32>, vector<16x128xf32> -> vector<16x128xf32>
    %411 = arith.addf %406, %410 : vector<16x128xf32>
    %c1_282 = arith.constant 1 : index
    %c0_283 = arith.constant 0 : index
    %412 = vector.load %arg17[%c1_282, %c0_283] : memref<22x128xf32, #tpu.memory_space<vmem>>, vector<16x128xf32>
    %c1_284 = arith.constant 1 : index
    %c0_285 = arith.constant 0 : index
    %c0_286 = arith.constant 0 : index
    %413 = vector.load %arg10[%c1_284, %c0_285, %c0_286] : memref<7x128x128xf32, #tpu.memory_space<vmem>>, vector<1x128x128xf32>
    %414 = vector.shape_cast %413 : vector<1x128x128xf32> to vector<128x128xf32>
    %cst_287 = arith.constant dense<0.000000e+00> : vector<16x128xf32>
    %415 = tpu.matmul %412, %414, %cst_287 {dimension_numbers = #tpu.dot_dimension_numbers<[1], [0], [0], [1], [0, 0, 1, 1], [], []>} : vector<16x128xf32>, vector<128x128xf32>, vector<16x128xf32> -> vector<16x128xf32>
    %416 = arith.addf %411, %415 : vector<16x128xf32>
    %c2_288 = arith.constant 2 : index
    %c0_289 = arith.constant 0 : index
    %417 = vector.load %arg17[%c2_288, %c0_289] : memref<22x128xf32, #tpu.memory_space<vmem>>, vector<16x128xf32>
    %c2_290 = arith.constant 2 : index
    %c0_291 = arith.constant 0 : index
    %c0_292 = arith.constant 0 : index
    %418 = vector.load %arg10[%c2_290, %c0_291, %c0_292] : memref<7x128x128xf32, #tpu.memory_space<vmem>>, vector<1x128x128xf32>
    %419 = vector.shape_cast %418 : vector<1x128x128xf32> to vector<128x128xf32>
    %cst_293 = arith.constant dense<0.000000e+00> : vector<16x128xf32>
    %420 = tpu.matmul %417, %419, %cst_293 {dimension_numbers = #tpu.dot_dimension_numbers<[1], [0], [0], [1], [0, 0, 1, 1], [], []>} : vector<16x128xf32>, vector<128x128xf32>, vector<16x128xf32> -> vector<16x128xf32>
    %421 = arith.addf %416, %420 : vector<16x128xf32>
    %c3_294 = arith.constant 3 : index
    %c0_295 = arith.constant 0 : index
    %422 = vector.load %arg17[%c3_294, %c0_295] : memref<22x128xf32, #tpu.memory_space<vmem>>, vector<16x128xf32>
    %c3_296 = arith.constant 3 : index
    %c0_297 = arith.constant 0 : index
    %c0_298 = arith.constant 0 : index
    %423 = vector.load %arg10[%c3_296, %c0_297, %c0_298] : memref<7x128x128xf32, #tpu.memory_space<vmem>>, vector<1x128x128xf32>
    %424 = vector.shape_cast %423 : vector<1x128x128xf32> to vector<128x128xf32>
    %cst_299 = arith.constant dense<0.000000e+00> : vector<16x128xf32>
    %425 = tpu.matmul %422, %424, %cst_299 {dimension_numbers = #tpu.dot_dimension_numbers<[1], [0], [0], [1], [0, 0, 1, 1], [], []>} : vector<16x128xf32>, vector<128x128xf32>, vector<16x128xf32> -> vector<16x128xf32>
    %426 = arith.addf %421, %425 : vector<16x128xf32>
    %c4_300 = arith.constant 4 : index
    %c0_301 = arith.constant 0 : index
    %427 = vector.load %arg17[%c4_300, %c0_301] : memref<22x128xf32, #tpu.memory_space<vmem>>, vector<16x128xf32>
    %c4_302 = arith.constant 4 : index
    %c0_303 = arith.constant 0 : index
    %c0_304 = arith.constant 0 : index
    %428 = vector.load %arg10[%c4_302, %c0_303, %c0_304] : memref<7x128x128xf32, #tpu.memory_space<vmem>>, vector<1x128x128xf32>
    %429 = vector.shape_cast %428 : vector<1x128x128xf32> to vector<128x128xf32>
    %cst_305 = arith.constant dense<0.000000e+00> : vector<16x128xf32>
    %430 = tpu.matmul %427, %429, %cst_305 {dimension_numbers = #tpu.dot_dimension_numbers<[1], [0], [0], [1], [0, 0, 1, 1], [], []>} : vector<16x128xf32>, vector<128x128xf32>, vector<16x128xf32> -> vector<16x128xf32>
    %431 = arith.addf %426, %430 : vector<16x128xf32>
    %c5_306 = arith.constant 5 : index
    %c0_307 = arith.constant 0 : index
    %432 = vector.load %arg17[%c5_306, %c0_307] : memref<22x128xf32, #tpu.memory_space<vmem>>, vector<16x128xf32>
    %c5_308 = arith.constant 5 : index
    %c0_309 = arith.constant 0 : index
    %c0_310 = arith.constant 0 : index
    %433 = vector.load %arg10[%c5_308, %c0_309, %c0_310] : memref<7x128x128xf32, #tpu.memory_space<vmem>>, vector<1x128x128xf32>
    %434 = vector.shape_cast %433 : vector<1x128x128xf32> to vector<128x128xf32>
    %cst_311 = arith.constant dense<0.000000e+00> : vector<16x128xf32>
    %435 = tpu.matmul %432, %434, %cst_311 {dimension_numbers = #tpu.dot_dimension_numbers<[1], [0], [0], [1], [0, 0, 1, 1], [], []>} : vector<16x128xf32>, vector<128x128xf32>, vector<16x128xf32> -> vector<16x128xf32>
    %436 = arith.addf %431, %435 : vector<16x128xf32>
    %c6_312 = arith.constant 6 : index
    %c0_313 = arith.constant 0 : index
    %437 = vector.load %arg17[%c6_312, %c0_313] : memref<22x128xf32, #tpu.memory_space<vmem>>, vector<16x128xf32>
    %c6_314 = arith.constant 6 : index
    %c0_315 = arith.constant 0 : index
    %c0_316 = arith.constant 0 : index
    %438 = vector.load %arg10[%c6_314, %c0_315, %c0_316] : memref<7x128x128xf32, #tpu.memory_space<vmem>>, vector<1x128x128xf32>
    %439 = vector.shape_cast %438 : vector<1x128x128xf32> to vector<128x128xf32>
    %cst_317 = arith.constant dense<0.000000e+00> : vector<16x128xf32>
    %440 = tpu.matmul %437, %439, %cst_317 {dimension_numbers = #tpu.dot_dimension_numbers<[1], [0], [0], [1], [0, 0, 1, 1], [], []>} : vector<16x128xf32>, vector<128x128xf32>, vector<16x128xf32> -> vector<16x128xf32>
    %441 = arith.addf %436, %440 : vector<16x128xf32>
    %cst_318 = arith.constant 0.000000e+00 : f32
    %442 = vector.broadcast %cst_318 : f32 to vector<16x128xf32>
    %443 = arith.subf %442, %441 : vector<16x128xf32>
    %444 = math.exp %443 : vector<16x128xf32>
    %cst_319 = arith.constant 1.000000e+00 : f32
    %445 = vector.broadcast %cst_319 : f32 to vector<16x128xf32>
    %446 = arith.addf %445, %444 : vector<16x128xf32>
    %447 = tpu.reciprocal %446 : vector<16x128xf32> -> vector<16x128xf32>
    %448 = arith.mulf %388, %447 : vector<16x128xf32>
    %c0_320 = arith.constant 0 : index
    %c0_321 = arith.constant 0 : index
    %449 = vector.load %arg12[%c0_320, %c0_321] : memref<128x128xf32, #tpu.memory_space<vmem>>, vector<128x128xf32>
    %cst_322 = arith.constant dense<0.000000e+00> : vector<16x128xf32>
    %450 = tpu.matmul %448, %449, %cst_322 {dimension_numbers = #tpu.dot_dimension_numbers<[1], [0], [0], [1], [0, 0, 1, 1], [], []>} : vector<16x128xf32>, vector<128x128xf32>, vector<16x128xf32> -> vector<16x128xf32>
    %c0_323 = arith.constant 0 : index
    %c0_324 = arith.constant 0 : index
    %451 = vector.load %arg13[%c0_323, %c0_324] : memref<1x128xf32, #tpu.memory_space<vmem>>, vector<1x128xf32>
    %452 = vector.broadcast %451 : vector<1x128xf32> to vector<16x128xf32>
    %453 = arith.addf %450, %452 : vector<16x128xf32>
    %454 = arith.mulf %4, %453 : vector<16x128xf32>
    %c0_325 = arith.constant 0 : index
    %c0_326 = arith.constant 0 : index
    %c0_327 = arith.constant 0 : index
    %455 = vector.load %arg14[%c0_325, %c0_326, %c0_327] : memref<1x16x128xf32, #tpu.memory_space<vmem>>, vector<1x16x128xf32>
    %456 = vector.shape_cast %455 : vector<1x16x128xf32> to vector<16x128xf32>
    %457 = vector.shape_cast %454 : vector<16x128xf32> to vector<1x16x128xf32>
    tpu.vector_store %arg14[%c0_325, %c0_326, %c0_327], %457 {strides = array<i32>} : memref<1x16x128xf32, #tpu.memory_space<vmem>>, vector<1x16x128xf32>,
    return
  }
  func.func @transform_0(%arg0: i32) -> (i32, i32, i32) {
    %c0_i32 = arith.constant 0 : i32
    %c0_i32_0 = arith.constant 0 : i32
    %c0_i32_1 = arith.constant 0 : i32
    return %arg0, %c0_i32, %c0_i32_0 : i32, i32, i32
  }
  func.func @transform_1(%arg0: i32) -> (i32, i32) {
    %c0_i32 = arith.constant 0 : i32
    %c0_i32_0 = arith.constant 0 : i32
    %c0_i32_1 = arith.constant 0 : i32
    return %c0_i32, %c0_i32_0 : i32, i32
  }
  func.func @transform_2(%arg0: i32) -> (i32, i32) {
    %c0_i32 = arith.constant 0 : i32
    %c0_i32_0 = arith.constant 0 : i32
    %c0_i32_1 = arith.constant 0 : i32
    return %c0_i32, %c0_i32_0 : i32, i32
  }
  func.func @transform_3(%arg0: i32) -> (i32, i32) {
    %c0_i32 = arith.constant 0 : i32
    %c0_i32_0 = arith.constant 0 : i32
    %c0_i32_1 = arith.constant 0 : i32
    return %c0_i32, %c0_i32_0 : i32, i32
  }
  func.func @transform_4(%arg0: i32) -> (i32, i32) {
    %c0_i32 = arith.constant 0 : i32
    %c0_i32_0 = arith.constant 0 : i32
    %c0_i32_1 = arith.constant 0 : i32
    return %c0_i32, %c0_i32_0 : i32, i32
  }
  func.func @transform_5(%arg0: i32) -> (i32, i32) {
    %c0_i32 = arith.constant 0 : i32
    %c0_i32_0 = arith.constant 0 : i32
    %c0_i32_1 = arith.constant 0 : i32
    return %c0_i32, %c0_i32_0 : i32, i32
  }
  func.func @transform_6(%arg0: i32) -> (i32, i32) {
    %c0_i32 = arith.constant 0 : i32
    %c0_i32_0 = arith.constant 0 : i32
    %c0_i32_1 = arith.constant 0 : i32
    return %c0_i32, %c0_i32_0 : i32, i32
  }
  func.func @transform_7(%arg0: i32) -> (i32, i32) {
    %c0_i32 = arith.constant 0 : i32
    %c0_i32_0 = arith.constant 0 : i32
    %c0_i32_1 = arith.constant 0 : i32
    return %c0_i32, %c0_i32_0 : i32, i32
  }
  func.func @transform_8(%arg0: i32) -> (i32, i32, i32) {
    %c0_i32 = arith.constant 0 : i32
    %c0_i32_0 = arith.constant 0 : i32
    %c0_i32_1 = arith.constant 0 : i32
    %c0_i32_2 = arith.constant 0 : i32
    return %c0_i32, %c0_i32_0, %c0_i32_1 : i32, i32, i32
  }
  func.func @transform_9(%arg0: i32) -> (i32, i32, i32) {
    %c0_i32 = arith.constant 0 : i32
    %c0_i32_0 = arith.constant 0 : i32
    %c0_i32_1 = arith.constant 0 : i32
    %c0_i32_2 = arith.constant 0 : i32
    return %c0_i32, %c0_i32_0, %c0_i32_1 : i32, i32, i32
  }
  func.func @transform_10(%arg0: i32) -> (i32, i32) {
    %c0_i32 = arith.constant 0 : i32
    %c0_i32_0 = arith.constant 0 : i32
    %c0_i32_1 = arith.constant 0 : i32
    return %c0_i32, %c0_i32_0 : i32, i32
  }
  func.func @transform_11(%arg0: i32) -> (i32, i32) {
    %c0_i32 = arith.constant 0 : i32
    %c0_i32_0 = arith.constant 0 : i32
    %c0_i32_1 = arith.constant 0 : i32
    return %c0_i32, %c0_i32_0 : i32, i32
  }
  func.func @transform_12(%arg0: i32) -> (i32, i32) {
    %c0_i32 = arith.constant 0 : i32
    %c0_i32_0 = arith.constant 0 : i32
    %c0_i32_1 = arith.constant 0 : i32
    return %c0_i32, %c0_i32_0 : i32, i32
  }
  func.func @transform_13(%arg0: i32) -> (i32, i32, i32) {
    %c0_i32 = arith.constant 0 : i32
    %c0_i32_0 = arith.constant 0 : i32
    %c0_i32_1 = arith.constant 0 : i32
    return %arg0, %c0_i32, %c0_i32_0 : i32, i32, i32
  }
}

</mosaic_0001>

<bundles_post_ra>
// kernel: lsk_block.1
= control target key start
LH: loop header
LB: loop body
LE: loop exit
PB: predicated region body
PF: predicated region fallthrough
CT: control target
= control target key end

     0   :  { %s6201_s25 = smov 0   ;;  %s9421_s0 = inlined_call_operand.vmem [shape: f32[2,16,128], index: 0, kind: input, shape index: {}]   ;;  %s9422_s1 = inlined_call_operand.vmem [shape: f32[25,128], index: 1, kind: input, shape index: {}]   ;;  %s9423_s2 = inlined_call_operand.vmem [shape: f32[1,128], index: 2, kind: input, shape index: {}]   ;;  %s9424_s3 = inlined_call_operand.vmem [shape: f32[49,128], index: 3, kind: input, shape index: {}]   ;;  %s9425_s4 = inlined_call_operand.vmem [shape: f32[1,128], index: 4, kind: input, shape index: {}]   ;;  %s9426_s5 = inlined_call_operand.vmem [shape: f32[128,128], index: 5, kind: input, shape index: {}]   ;;  %s9427_s6 = inlined_call_operand.vmem [shape: f32[128,128], index: 6, kind: input, shape index: {}]   ;;  %s9428_s7 = inlined_call_operand.vmem [shape: f32[1,128], index: 7, kind: input, shape index: {}]   ;;  %s9429_s8 = inlined_call_operand.vmem [shape: f32[2,64,64], index: 8, kind: input, shape index: {}]   ;;  %s9430_s9 = inlined_call_operand.vmem [shape: f32[7,128,128], index: 9, kind: input, shape index: {}]   ;;  %s9431_s10 = inlined_call_operand.vmem [shape: f32[1,128], index: 10, kind: input, shape index: {}]   ;;  %s9432_s11 = inlined_call_operand.vmem [shape: f32[128,128], index: 11, kind: input, shape index: {}]   ;;  %s9433_s12 = inlined_call_operand.vmem [shape: f32[1,128], index: 12, kind: input, shape index: {}]   ;;  %s9434_s13 = inlined_call_operand.vmem [shape: f32[2,16,128], index: 13, kind: output, shape index: {}]  }
   0x1 LB: > { %s4897_s26 = sadd.s32 4294967295, %s6115_s25   ;;  %p4901_p0 = scmp.ge.s32.totalorder %s6115_s25, 1  ;;  %s6115_s25 = sphi %s6201_s25, %s23_s25  }
   0x2   : > { %p387_p1 = scmp.lt.s32.totalorder %s6115_s25, 3 }
   0x4   : > { %p388_p2 = pnand %p4901_p0, %p387_p1 }
   0x6   : > { %391 = sbr.rel (%p388_p2) target bundleno = 2854 (0xb26), region = 72 }
   0xd   : > { %p431_p3 = scmp.lt.s32.totalorder %s4897_s26, 1  ;;  %p4906_p4 = scmp.ne.s32.totalorder %s4897_s26, 0 }
   0xe   : > { %vm446_vm0 = vcmask (!%p4906_p4), 261120   ;;  %vm451_vm1 = vcmask (!%p4906_p4), 257024   ;;  %vm455_vm2 = vcmask (!%p4906_p4), 130048   ;;  %v6117_v0 = vmov (!%p4906_p4), 0.0  }
   0xf   : > { %s432_s27 = scalar_select %p431_p3, %s4897_s26, 1 }
  0x10   : > { %444 = sbr.rel (%p4906_p4) target bundleno = 29 (0x1d), region = 76  ;;  %445 = vst [vmem:[#allocation2] sm:$0xff] (!%p4906_p4), %v6117_v0  ;;  %448 = vst [vmem:[#allocation2 + $0x10] sm:$0xff] (!%p4906_p4), %v6117_v0  ;;  %vm468_vm3 = vcmask (!%p4906_p4), 123904  }
  0x11   : > { %s5096_s28 = sshll.u32 %s432_s27, 4  ;;  %450 = vst [vmem:[#allocation2 + $0x20] sm:$0xf] (!%p4906_p4), %v6117_v0  ;;  %453 = vst [vmem:[#allocation3] sm:$0xff] (!%p4906_p4), %v6117_v0 }
  0x12   : > { %s6212_s14 = scalar_lea.vmem %s9421_s0, %s5096_s28  ;;  %s6217_s17 = scalar_lea.vmem %s9434_s13, %s5096_s28  ;;  %454 = vst [vmem:[#allocation3 + $0x8] sm:$0xff] (!%p4906_p4), %v6117_v0  ;;  %457 = vst [vmem:[#allocation3 + $0x18] sm:$0xff] (!%p4906_p4), %v6117_v0 }
  0x13   : > { %458 = vst [vmem:[#allocation3 + $0x20] sm:$0xff] (!%p4906_p4), %v6117_v0  ;;  %460 = vst [vmem:[#allocation3 + $0x30] sm:$0xff] (!%p4906_p4), %v6117_v0 }
  0x14   : > { %461 = vst [vmem:[#allocation3 + $0x38] sm:$0xff] (!%p4906_p4), %v6117_v0  ;;  %463 = vst [vmem:[#allocation3 + $0x48] sm:$0xff] (!%p4906_p4), %v6117_v0 }
  0x15   : > { %464 = vst [vmem:[#allocation3 + $0x50] sm:$0xff] (!%p4906_p4), %v6117_v0  ;;  %466 = vst [vmem:[#allocation3 + $0x60] sm:$0x3] (!%p4906_p4), %v6117_v0 }
  0x16   : > { %467 = vst [vmem:[#allocation3 + $0x68] sm:$0x3] (!%p4906_p4), %v6117_v0  ;;  %470 = vst [vmem:[#allocation4] sm:$0xff] (!%p4906_p4), %v6117_v0 }
  0x17   : > { %471 = vst [vmem:[#allocation4 + $0x8] sm:$0xff] %v6117_v0  ;;  %472 = vst [vmem:[#allocation4 + $0x10] sm:$0x3f] %v6117_v0 }
  0x18   : > { %447 = vst.msk [vmem:[#allocation2 + $0x8] sm:$0xff] %vm446_vm0, %v6117_v0  ;;  %449 = vst.msk [vmem:[#allocation2 + $0x18] sm:$0xff] %vm446_vm0, %v6117_v0 }
  0x19   : > { %452 = vst.msk [vmem:[#allocation2 + $0x28] sm:$0xf] %vm451_vm1, %v6117_v0 }
  0x1a   : > { %456 = vst.msk [vmem:[#allocation3 + $0x10] sm:$0xff] %vm455_vm2, %v6117_v0  ;;  %459 = vst.msk [vmem:[#allocation3 + $0x28] sm:$0xff] %vm455_vm2, %v6117_v0 }
  0x1b   : > { %462 = vst.msk [vmem:[#allocation3 + $0x40] sm:$0xff] %vm455_vm2, %v6117_v0  ;;  %465 = vst.msk [vmem:[#allocation3 + $0x58] sm:$0xff] %vm455_vm2, %v6117_v0 }
  0x1c   : > { %469 = vst.msk [vmem:[#allocation3 + $0x70] sm:$0x3] %vm468_vm3, %v6117_v0 }
  0x1d PF: > { %v474_v1 = vld [vmem:[%s6212_s14 + $0x8] sm:$0xff]  ;;  %v473_v2 = vld [vmem:[%s6212_s14] sm:$0xff]  ;;  %vm477_vm4 = vcmask 1041408   ;;  %s6118_s18 = smov 16   ;;  %v4926_v7 = vld [vmem:[%s9422_s1 + $0x13] ss:$0 sm:$0xff] }
  0x1e   : > { %v479_v3 = vrot.slane %v474_v1, 6  ;;  %v478_v4 = vrot.slane %v473_v2, 6  ;;  %v4914_v5 = vld [vmem:[%s9422_s1 + $0x7] ss:$0 sm:$0xff]  ;;  %v4918_v8 = vld [vmem:[%s9422_s1 + $0xb] ss:$0 sm:$0xff] }
  0x1f   : > { %s9441_s26 = smov 32   ;;  %s9439_s27 = smov 8   ;;  %v4916_v9 = vld [vmem:[%s9422_s1 + $0x9] ss:$0 sm:$0xff]  ;;  %v4913_v10 = vld [vmem:[%s9422_s1 + $0x6] ss:$0 sm:$0xff] }
  0x20   : > { %485 = vrot.lane.b32.xlu1 %v479_v3, %s6118_s18  ;;  %481 = vrot.lane.b32.xlu0 %v478_v4, %s6118_s18  ;;  %v480_v6 = vsel %vm477_vm4, %v478_v4, %v479_v3  ;;  %v4920_v11 = vld [vmem:[%s9422_s1 + $0xd] ss:$0 sm:$0xff]  ;;  %v4910_v12 = vld [vmem:[%s9422_s1 + $0x3] ss:$0 sm:$0xff]  ;;  %s6121_s22 = smov 24   ;;  %vm498_vm5 = vcmask 1041536  }
  0x21   : > { %v4924_v13 = vld [vmem:[%s9422_s1 + $0x11] ss:$0 sm:$0xff]  ;;  %v4921_v14 = vld [vmem:[%s9422_s1 + $0xe] ss:$0 sm:$0xff]  ;;  %v4930_v15 = vld [vmem:[%s9422_s1 + $0x17] ss:$0 sm:$0xff] }
  0x22   : > { %v4925_v16 = vld [vmem:[%s9422_s1 + $0x12] ss:$0 sm:$0xff]  ;;  %v4911_v17 = vld [vmem:[%s9422_s1 + $0x4] ss:$0 sm:$0xff]  ;;  %v4915_v18 = vld [vmem:[%s9422_s1 + $0x8] ss:$0 sm:$0xff] }
  0x23   : > { %v4908_v19 = vld [vmem:[%s9422_s1 + $0x1] ss:$0 sm:$0xff]  ;;  %v4919_v20 = vld [vmem:[%s9422_s1 + $0xc] ss:$0 sm:$0xff]  ;;  %v4923_v21 = vld [vmem:[%s9422_s1 + $0x10] ss:$0 sm:$0xff] }
  0x24   : > { %671 = vrot.lane.b32.xlu1 %v4914_v5, %s6118_s18  ;;  %483 = vrot.lane.b32.xlu0 %v480_v6, %s6118_s18  ;;  %v4909_v22 = vld [vmem:[%s9422_s1 + $0x2] ss:$0 sm:$0xff]  ;;  %v4929_v23 = vld [vmem:[%s9422_s1 + $0x16] ss:$0 sm:$0xff]  ;;  %vm500_vm6 = vcmask 123904   ;;  %vm490_vm7 = vcmask 1047682  }
  0x25   : > { %v4928_v24 = vld [vmem:[%s9422_s1 + $0x15] ss:$0 sm:$0xff]  ;;  %v4931_v25 = vld [vmem:[%s9422_s1 + $0x18] ss:$0 sm:$0xff]  ;;  %vm492_vm8 = vcmask 130050   ;;  %vm494_vm9 = vcmask 1047680  }
  0x26   : > { %vm496_vm10 = vcmask 130048   ;;  %s6122_s16 = smov 96   ;;  %vm597_vm11 = vcmask 1046528   ;;  %vm822_vm12 = vcmask 1045504   ;;  %vm1046_vm13 = vcmask 1044480   ;;  %s6123_s21 = smov 120  }
  0x27   : > { %s9435_s30 = smov 104   ;;  %s9437_s15 = smov 112   ;;  %vm1270_vm14 = vcmask 1043456   ;;  %vm654_vm15 = vcmask 64512   ;;  %vm1103_vm0 = vcmask 982016   ;;  %vm753_vm1 = vcmask 850944  }
  0x28   : > { %1214 = vrot.lane.b32.xlu1 %v4926_v7, %s9441_s26  ;;  %846 = vrot.lane.b32.xlu0 %v4918_v8, %s9439_s27  ;;  %s6126_s19 = smov 48   ;;  %s9568_s24 = smov 32   ;;  %vm928_vm2 = vcmask 916480   ;;  %vm1513_vm3 = vcmask 1040384  }
  0x29   : > { %s9571_s29 = smov 8   ;;  %s9644_s23 = smov 104  }
  0x2a   : > { %s6129_s28 = smov 80   ;;  %s6130_s20 = smov 64  }
  0x2c   : > { %766 = vrot.lane.b32.xlu1 %v4916_v9, %s9441_s26  ;;  %621 = vrot.lane.b32.xlu0 %v4913_v10, %s9439_s27  ;;  %v4922_v10 = vld [vmem:[%s9422_s1 + $0xf] ss:$0 sm:$0xff] }
  0x30   : > { %941 = vrot.lane.b32.xlu1 %v4920_v11, %s6121_s22  ;;  %545 = vrot.lane.b32.xlu0 %v4910_v12, %s6121_s22 }
  0x34   : > { %1116 = vrot.lane.b32.xlu1 %v4924_v13, %s6118_s18  ;;  %990 = vrot.lane.b32.xlu0 %v4921_v14, %s9441_s26 }
  0x38   : > { %1366 = vrot.lane.b32.xlu1 %v4930_v15, %s6121_s22  ;;  %1165 = vrot.lane.b32.xlu0 %v4925_v16, %s6121_s22 }
  0x3c   : > { %558 = vrot.lane.b32.xlu1 %v4911_v17, %s9441_s26  ;;  %720 = vrot.lane.b32.xlu0 %v4915_v18, %s6121_s22 }
  0x40   : > { %519 = vrot.lane.b32.xlu1 %v4908_v19, %s9439_s27  ;;  %895 = vrot.lane.b32.xlu0 %v4919_v20, %s6118_s18 }
  0x44   : > { %1070 = vrot.lane.b32.xlu1 %v4923_v21, %s9439_s27  ;;  %532 = vrot.lane.b32.xlu0 %v4909_v22, %s6118_s18 }
  0x48   : > { %1327 = vrot.lane.b32.xlu1 %v4929_v23, %s6118_s18  ;;  %1288 = vrot.lane.b32.xlu0 %v4928_v24, %s9439_s27 }
  0x4c   : > { %1405 = vrot.lane.b32.xlu0 %v4931_v25, %s9441_s26  ;;  %s9462_s26 = smov 56  }
  0x92   : > { %v486_v26 = vpop.permute.xlu1 %485  ;;  %v482_v27 = vpop.permute.xlu0 %481 }
  0x93   : > { %499 = vst.msk [vmem:[#allocation2 + $0x20] sm:$0x3] %vm498_vm5, %v486_v26  ;;  %vm577_vm5 = vcmask 785408  }
  0x94   : > { %501 = vst.msk [vmem:[#allocation2 + $0x28] sm:$0x3] %vm500_vm6, %v486_v26  ;;  %vm1526_vm6 = vcmask 1048129  }
  0x95   : > { %491 = vst.msk [vmem:[#allocation2] sm:$0xfc] %vm490_vm7, %v482_v27  ;;  %vm1528_vm7 = vcmask 588801  }
  0x96   : > { %493 = vst.msk [vmem:[#allocation2 + $0x8] sm:$0xfc] %vm492_vm8, %v482_v27  ;;  %v672_v28 = vpop.permute.xlu1 %671  ;;  %v484_v29 = vpop.permute.xlu0 %483  ;;  %vm1534_vm8 = vcmask 1040960  }
  0x97   : > { %495 = vst.msk [vmem:[#allocation2 + $0x10] sm:$0xff] %vm494_vm9, %v484_v29  ;;  %vm1536_vm9 = vcmask 581632  }
  0x98   : > { %497 = vst.msk [vmem:[#allocation2 + $0x18] sm:$0xff] %vm496_vm10, %v484_v29 }
  0x9a   : > { %v6313_v30 = vpop.permute.xlu1 %1214  ;;  %v847_v52 = vpop.permute.xlu0 %846  ;;  %v6349_v54 = vld [vmem:[#allocation2 + $0x20] sm:$0x1] }
  0x9b   : > { %v6338_v45 = vld [vmem:[#allocation2 + $0x28] sm:$0x1]  ;;  %v678_v61 = vmul.f32 %v672_v28, %v6349_v54  ;;  %v6375_v11 = vld [vmem:[#allocation2 + $0x20] sm:$0x3] }
  0x9c   : > { %v502_v40 = vld [vmem:[#allocation2] sm:$0xff]  ;;  %v679_v50 = vmul.f32 %v672_v28, %v6338_v45  ;;  %v6359_v63 = vld [vmem:[#allocation2 + $0x28] sm:$0x3]  ;;  %v853_v19 = vmul.f32 %v847_v52, %v6375_v11 }
  0x9d   : > { %v6325_v36 = vld [vmem:[#allocation2 + $0x8] sm:$0xfe]  ;;  %v6340_v46 = vld [vmem:[#allocation2] sm:$0xfe]  ;;  %v692_v5 = vrot.slane %v678_v61, 1  ;;  %v854_v7 = vmul.f32 %v847_v52, %v6359_v63 }
  0x9e   : > { %v6315_v31 = vpop.permute.xlu1 %766  ;;  %v6328_v38 = vld [vmem:[#allocation2 + $0x10] sm:$0xff]  ;;  %v6332_v41 = vld [vmem:[#allocation2 + $0x8] sm:$0xff]  ;;  %v675_v42 = vmul.f32 %v672_v28, %v6325_v36  ;;  %v674_v51 = vmul.f32 %v672_v28, %v6340_v46  ;;  %v694_v59 = vrot.slane %v679_v50, 1  ;;  %v6361_v0 = vld [vmem:[#allocation2] sm:$0xfc]  ;;  %v867_v26 = vrot.slane %v853_v19, 2 }
  0x9f   : > { %v6321_v34 = vld [vmem:[#allocation2 + $0x18] sm:$0xff]  ;;  %v676_v48 = vmul.f32 %v672_v28, %v6328_v38  ;;  %v6351_v55 = vld [vmem:[#allocation2 + $0x8] sm:$0xfc]  ;;  %v849_v4 = vmul.f32 %v847_v52, %v6361_v0  ;;  %v851_v8 = vmul.f32 %v847_v52, %v6328_v38  ;;  %v6370_v9 = vld [vmem:[#allocation2] sm:$0xf8]  ;;  %v869_v16 = vrot.slane %v854_v7, 2 }
  0xa0   : > { %v677_v37 = vmul.f32 %v672_v28, %v6321_v34  ;;  %v689_v49 = vrot.slane %v675_v42, 1  ;;  %v850_v58 = vmul.f32 %v847_v52, %v6351_v55  ;;  %v686_v60 = vrot.slane %v674_v51, 1  ;;  %v6384_v20 = vld [vmem:[#allocation2 + $0x20] sm:$0x7]  ;;  %v6395_v29 = vld [vmem:[#allocation2 + $0x8] sm:$0xf8] }
  0xa1   : > { %v687_v57 = vrot.slane %v676_v48, 1  ;;  %v852_v62 = vmul.f32 %v847_v52, %v6321_v34  ;;  %v861_v14 = vrot.slane %v849_v4, 2  ;;  %v1040_v15 = vmul.f32 %v4922_v10, %v6370_v9  ;;  %v6407_v51 = vld [vmem:[#allocation2 + $0x28] sm:$0x7]  ;;  %v4912_v7 = vld [vmem:[%s9422_s1 + $0x5] ss:$0 sm:$0xff] }
  0xa2   : > { %v6317_v32 = vpop.permute.xlu1 %941  ;;  %v690_v47 = vrot.slane %v677_v37, 1  ;;  %v864_v3 = vrot.slane %v850_v58, 2  ;;  %v862_v17 = vrot.slane %v851_v8, 2  ;;  %v1041_v18 = vmul.f32 %v4922_v10, %v6328_v38 }
  0xa3   : > { %v688_v2 = vsel %vm597_vm11, %v686_v60, %v687_v57  ;;  %v865_v6 = vrot.slane %v852_v62, 2  ;;  %v693_v12 = vsel %vm597_vm11, %v687_v57, %v692_v5  ;;  %v1047_v23 = vrot.slane %v1040_v15, 3 }
  0xa4   : > { %v691_v56 = vsel %vm597_vm11, %v689_v49, %v690_v47  ;;  %v695_v1 = vsel %vm597_vm11, %v690_v47, %v694_v59  ;;  %v863_v22 = vsel %vm822_vm12, %v861_v14, %v862_v17  ;;  %v1219_v24 = vmul.f32 %v6313_v30, %v6328_v38 }
  0xa5   : > { %v866_v13 = vsel %vm822_vm12, %v864_v3, %v865_v6  ;;  %v870_v21 = vsel %vm822_vm12, %v865_v6, %v869_v16  ;;  %v1048_v25 = vrot.slane %v1041_v18, 3  ;;  %v1217_v27 = vmul.f32 %v6313_v30, %v6370_v9 }
  0xa6   : > { %v6319_v33 = vpop.permute.xlu1 %1116  ;;  %v1042_v28 = vmul.f32 %v4922_v10, %v6384_v20  ;;  %v1230_v42 = vrot.slane %v1219_v24, 3  ;;  %v1221_v49 = vmul.f32 %v6313_v30, %v6384_v20  ;;  %v1218_v50 = vmul.f32 %v6313_v30, %v6395_v29 }
  0xa7   : > { %v1049_v37 = vsel %vm1046_vm13, %v1047_v23, %v1048_v25  ;;  %v1229_v47 = vrot.slane %v1217_v27, 3  ;;  %v1222_v58 = vmul.f32 %v6313_v30, %v6407_v51  ;;  %v591_v10 = vmul.f32 %v4912_v7, %v6340_v46 }
  0xa8   : > { %v1050_v48 = vrot.slane %v1042_v28, 3  ;;  %v1235_v59 = vrot.slane %v1221_v49, 3  ;;  %v1232_v60 = vrot.slane %v1218_v50, 3  ;;  %v769_v18 = vmul.f32 %v6315_v31, %v6340_v46 }
  0xa9   : > { %v1237_v5 = vrot.slane %v1222_v58, 3  ;;  %v771_v19 = vmul.f32 %v6315_v31, %v6328_v38  ;;  %v598_v23 = vrot.slane %v591_v10, 1  ;;  %v774_v58 = vmul.f32 %v6315_v31, %v6338_v45 }
  0xaa   : > { %v6323_v35 = vpop.permute.xlu1 %1366  ;;  %v781_v27 = vrot.slane %v769_v18, 1 }
  0xab   : > { %v782_v28 = vrot.slane %v771_v19, 1 }
  0xad   : > { %v783_v49 = vsel %vm597_vm11, %v781_v27, %v782_v28 }
  0xae   : > { %v6330_v39 = vpop.permute.xlu1 %558 }
  0xaf   : > { %v561_v43 = vmul.f32 %v6330_v39, %v502_v40  ;;  %v562_v44 = vmul.f32 %v6330_v39, %v6332_v41  ;;  %v563_v53 = vmul.f32 %v6330_v39, %v6328_v38  ;;  %v868_v40 = vsel %vm822_vm12, %v862_v17, %v867_v26 }
  0xb0   : > { %v592_v17 = vmul.f32 %v4912_v7, %v6328_v38  ;;  %v593_v26 = vmul.f32 %v4912_v7, %v6349_v54  ;;  %v948_v7 = vmul.f32 %v6317_v32, %v6375_v11 }
  0xb1   : > { %569 = vrot.lane.b32.xlu1 %v561_v43, %s6122_s16  ;;  %571 = vrot.lane.b32.xlu0 %v562_v44, %s6122_s16  ;;  %v1220_v43 = vmul.f32 %v6313_v30, %v6321_v34  ;;  %v622_v44 = vpop.permute.xlu0 %621 }
  0xb2   : > { %v625_v52 = vmul.f32 %v622_v44, %v6325_v36  ;;  %v627_v61 = vmul.f32 %v622_v44, %v6321_v34  ;;  %v629_v3 = vmul.f32 %v622_v44, %v6338_v45  ;;  %v624_v4 = vmul.f32 %v622_v44, %v6340_v46 }
  0xb3   : > { %v1233_v57 = vrot.slane %v1220_v43, 3  ;;  %v626_v30 = vmul.f32 %v622_v44, %v6328_v38  ;;  %v628_v15 = vmul.f32 %v622_v44, %v6349_v54  ;;  %v770_v43 = vmul.f32 %v6315_v31, %v6325_v36 }
  0xb4   : > { %v639_v62 = vrot.slane %v625_v52, 1  ;;  %v640_v6 = vrot.slane %v627_v61, 1  ;;  %v636_v14 = vrot.slane %v624_v4, 1  ;;  %v772_v44 = vmul.f32 %v6315_v31, %v6321_v34 }
  0xb5   : > { %698 = vrot.lane.b32.xlu0 %v691_v56, %s9439_s27  ;;  %573 = vrot.lane.b32.xlu1 %v563_v53, %s6122_s16  ;;  %v1231_v53 = vsel %vm1046_vm13, %v1229_v47, %v1230_v42  ;;  %v1051_v56 = vsel %vm1046_vm13, %v1048_v25, %v1050_v48  ;;  %v1238_v8 = vsel %vm1046_vm13, %v1233_v57, %v1237_v5  ;;  %v637_v16 = vrot.slane %v626_v30, 1  ;;  %v4917_v48 = vld [vmem:[%s9422_s1 + $0xa] ss:$0 sm:$0xff] }
  0xb6   : > { %v642_v24 = vrot.slane %v628_v15, 1  ;;  %v599_v25 = vrot.slane %v592_v17, 1  ;;  %v601_v47 = vrot.slane %v593_v26, 1  ;;  %v816_v52 = vmul.f32 %v4917_v48, %v6361_v0 }
  0xb7   : > { %v944_v61 = vmul.f32 %v6317_v32, %v6361_v0  ;;  %v818_v5 = vmul.f32 %v4917_v48, %v6375_v11  ;;  %v949_v17 = vmul.f32 %v6317_v32, %v6359_v63 }
  0xb9   : > { %702 = vrot.lane.b32.xlu0 %v695_v1, %s9439_s27  ;;  %696 = vrot.lane.b32.xlu1 %v688_v2, %s9439_s27  ;;  %v1236_v1 = vsel %vm1046_vm13, %v1230_v42, %v1235_v59  ;;  %v1234_v2 = vsel %vm1046_vm13, %v1232_v60, %v1233_v57  ;;  %v643_v42 = vsel %vm597_vm11, %v637_v16, %v642_v24  ;;  %v785_v57 = vrot.slane %v772_v44, 1 }
  0xba   : > { %v817_v59 = vmul.f32 %v4917_v48, %v6328_v38  ;;  %v823_v60 = vrot.slane %v816_v52, 2  ;;  %v956_v30 = vrot.slane %v944_v61, 2  ;;  %v826_v15 = vrot.slane %v818_v5, 2 }
  0xbb   : > { %v964_v26 = vrot.slane %v949_v17, 2  ;;  %v1122_v52 = vmul.f32 %v6319_v33, %v6321_v34 }
  0xbc   : > { %v824_v4 = vrot.slane %v817_v59, 2  ;;  %v1121_v59 = vmul.f32 %v6319_v33, %v6328_v38 }
  0xbd   : > { %700 = vrot.lane.b32.xlu1 %v693_v12, %s9439_s27  ;;  %873 = vrot.lane.b32.xlu0 %v866_v13, %s6118_s18  ;;  %v641_v12 = vsel %vm597_vm11, %v639_v62, %v640_v6  ;;  %v644_v13 = vrot.slane %v629_v3, 1  ;;  %v6466_v62 = vpop.permute.xlu0 %545  ;;  %v789_v3 = vrot.slane %v774_v58, 1  ;;  %v1119_v58 = vmul.f32 %v6319_v33, %v6370_v9 }
  0xbe   : > { %v1132_v5 = vrot.slane %v1121_v59, 3 }
  0xc1   : > { %877 = vrot.lane.b32.xlu0 %v870_v21, %s6118_s18  ;;  %871 = vrot.lane.b32.xlu1 %v863_v22, %s6118_s18  ;;  %v645_v21 = vsel %vm597_vm11, %v640_v6, %v644_v13  ;;  %v638_v22 = vsel %vm597_vm11, %v636_v14, %v637_v16  ;;  %v825_v6 = vsel %vm822_vm12, %v823_v60, %v824_v4  ;;  %v991_v14 = vpop.permute.xlu0 %990  ;;  %v962_v16 = vrot.slane %v948_v7, 2 }
  0xc2   : > { %v947_v13 = vmul.f32 %v6317_v32, %v6321_v34  ;;  %v993_v18 = vmul.f32 %v991_v14, %v6361_v0  ;;  %v995_v24 = vmul.f32 %v991_v14, %v6328_v38  ;;  %v998_v44 = vmul.f32 %v991_v14, %v6359_v63 }
  0xc4   : > { %v1005_v27 = vrot.slane %v993_v18, 2 }
  0xc5   : > { %1052 = vrot.lane.b32.xlu0 %v1049_v37, %s6121_s22  ;;  %875 = vrot.lane.b32.xlu1 %v868_v40, %s6118_s18  ;;  %v773_v37 = vmul.f32 %v6315_v31, %v6349_v54  ;;  %v600_v40 = vsel %vm597_vm11, %v598_v23, %v599_v25  ;;  %v946_v31 = vmul.f32 %v6317_v32, %v6328_v38  ;;  %v960_v23 = vrot.slane %v947_v13, 2 }
  0xc7   : > { %v787_v50 = vrot.slane %v773_v37, 1  ;;  %v957_v10 = vrot.slane %v946_v31, 2  ;;  %v997_v37 = vmul.f32 %v991_v14, %v6375_v11 }
  0xc9   : > { %1239 = vrot.lane.b32.xlu0 %v1231_v53, %s6123_s21  ;;  %1054 = vrot.lane.b32.xlu1 %v1051_v56, %s6121_s22  ;;  %v602_v53 = vsel %vm597_vm11, %v599_v25, %v601_v47  ;;  %v784_v56 = vrot.slane %v770_v43, 1  ;;  %v958_v19 = vsel %vm822_vm12, %v956_v30, %v957_v10  ;;  %v963_v25 = vsel %vm822_vm12, %v957_v10, %v962_v16 }
  0xca   : > { %v965_v43 = vsel %vm822_vm12, %v960_v23, %v964_v26  ;;  %v1120_v47 = vmul.f32 %v6319_v33, %v6395_v29 }
  0xcd   : > { %1243 = vrot.lane.b32.xlu0 %v1236_v1, %s6123_s21  ;;  %1241 = vrot.lane.b32.xlu1 %v1234_v2, %s6123_s21  ;;  %v788_v1 = vsel %vm597_vm11, %v782_v28, %v787_v50  ;;  %v786_v2 = vsel %vm597_vm11, %v784_v56, %v785_v57  ;;  %v994_v28 = vmul.f32 %v991_v14, %v6351_v55  ;;  %v1011_v50 = vrot.slane %v997_v37, 2 }
  0xce   : > { %v1013_v56 = vrot.slane %v998_v44, 2 }
  0xd1   : > { %1245 = vrot.lane.b32.xlu1 %v1238_v8, %s6123_s21  ;;  %648 = vrot.lane.b32.xlu0 %v641_v12, %s9439_s27  ;;  %v790_v8 = vsel %vm597_vm11, %v785_v57, %v789_v3  ;;  %v945_v12 = vmul.f32 %v6317_v32, %v6351_v55  ;;  %v1134_v57 = vrot.slane %v1120_v47, 3  ;;  %v1166_v3 = vpop.permute.xlu0 %1165  ;;  %v564_v47 = vmul.f32 %v6330_v39, %v6321_v34 }
  0xd2   : > { %v1171_v10 = vmul.f32 %v1166_v3, %v6321_v34  ;;  %v1170_v18 = vmul.f32 %v1166_v3, %v6328_v38  ;;  %v1172_v26 = vmul.f32 %v1166_v3, %v6384_v20 }
  0xd4   : > { %v1184_v17 = vrot.slane %v1171_v10, 3 }
  0xd5   : > { %652 = vrot.lane.b32.xlu0 %v645_v21, %s9439_s27  ;;  %646 = vrot.lane.b32.xlu1 %v638_v22, %s9439_s27  ;;  %v827_v21 = vsel %vm822_vm12, %v824_v4, %v826_v15  ;;  %v959_v22 = vrot.slane %v945_v12, 2  ;;  %v1131_v4 = vrot.slane %v1119_v58, 3  ;;  %v1168_v15 = vmul.f32 %v1166_v3, %v6370_v9 }
  0xd7   : > { %v961_v32 = vsel %vm822_vm12, %v959_v22, %v960_v23  ;;  %v1133_v12 = vsel %vm1046_vm13, %v1131_v4, %v1132_v5  ;;  %v721_v22 = vpop.permute.xlu0 %720 }
  0xd9   : > { %603 = vrot.lane.b32.xlu0 %v600_v40, %s9439_s27  ;;  %650 = vrot.lane.b32.xlu1 %v643_v42, %s9439_s27  ;;  %v1006_v40 = vrot.slane %v995_v24, 2  ;;  %v996_v42 = vmul.f32 %v991_v14, %v6321_v34  ;;  %v1173_v14 = vmul.f32 %v1166_v3, %v6407_v51  ;;  %v1180_v24 = vrot.slane %v1168_v15, 3 }
  0xdb   : > { %v1007_v48 = vsel %vm822_vm12, %v1005_v27, %v1006_v40  ;;  %v1012_v61 = vsel %vm822_vm12, %v1006_v40, %v1011_v50  ;;  %v724_v27 = vmul.f32 %v721_v22, %v6325_v36  ;;  %v1186_v40 = vrot.slane %v1172_v26, 3  ;;  %v896_v44 = vpop.permute.xlu0 %895 }
  0xdc   : > { %v728_v36 = vmul.f32 %v721_v22, %v6338_v45  ;;  %v899_v39 = vmul.f32 %v896_v44, %v6351_v55  ;;  %v901_v59 = vmul.f32 %v896_v44, %v6321_v34  ;;  %v903_v55 = vmul.f32 %v896_v44, %v6359_v63 }
  0xdd   : > { %791 = vrot.lane.b32.xlu0 %v783_v49, %s9435_s30  ;;  %605 = vrot.lane.b32.xlu1 %v602_v53, %s9439_s27  ;;  %v1008_v49 = vrot.slane %v994_v28, 2  ;;  %v1009_v53 = vrot.slane %v996_v42, 2  ;;  %v726_v28 = vmul.f32 %v721_v22, %v6321_v34  ;;  %v723_v42 = vmul.f32 %v721_v22, %v6340_v46 }
  0xde   : > { %v727_v46 = vmul.f32 %v721_v22, %v6349_v54  ;;  %v743_v58 = vrot.slane %v728_v36, 1  ;;  %v898_v54 = vmul.f32 %v896_v44, %v6361_v0  ;;  %v918_v10 = vrot.slane %v903_v55, 2 }
  0xdf   : > { %v1010_v60 = vsel %vm822_vm12, %v1008_v49, %v1009_v53  ;;  %v1014_v31 = vsel %vm822_vm12, %v1009_v53, %v1013_v56  ;;  %v739_v49 = vrot.slane %v726_v28, 1  ;;  %v6554_v56 = vpop.permute.xlu1 %519  ;;  %v6559_v45 = vpop.permute.xlu0 %532 }
  0xe1   : > { %795 = vrot.lane.b32.xlu0 %v788_v1, %s9435_s30  ;;  %793 = vrot.lane.b32.xlu1 %v786_v2, %s9435_s30  ;;  %v1135_v1 = vrot.slane %v1122_v52, 3  ;;  %v1124_v2 = vmul.f32 %v6319_v33, %v6407_v51  ;;  %v735_v52 = vrot.slane %v723_v42, 1 }
  0xe3   : > { %v1136_v30 = vsel %vm1046_vm13, %v1134_v57, %v1135_v1  ;;  %v1139_v7 = vrot.slane %v1124_v2, 3  ;;  %v744_v2 = vsel %vm597_vm11, %v739_v49, %v743_v58  ;;  %v1071_v4 = vpop.permute.xlu1 %1070  ;;  %v6572_v0 = vpop.permute.xlu0 %1288 }
  0xe4   : > { %v1076_v63 = vmul.f32 %v1071_v4, %v6321_v34  ;;  %v1073_v15 = vmul.f32 %v1071_v4, %v6370_v9  ;;  %v6588_v9 = vld [vmem:[#allocation2 + $0x8] sm:$0xf0] }
  0xe5   : > { %828 = vrot.lane.b32.xlu0 %v825_v6, %s6118_s18  ;;  %797 = vrot.lane.b32.xlu1 %v790_v8, %s9435_s30  ;;  %v1123_v6 = vmul.f32 %v6319_v33, %v6384_v20  ;;  %v1169_v8 = vmul.f32 %v1166_v3, %v6395_v29  ;;  %v1140_v33 = vsel %vm1046_vm13, %v1135_v1, %v1139_v7  ;;  %v913_v3 = vrot.slane %v899_v39, 2 }
  0xe6   : > { %v900_v1 = vmul.f32 %v896_v44, %v6328_v38  ;;  %v902_v7 = vmul.f32 %v896_v44, %v6375_v11  ;;  %v1075_v11 = vmul.f32 %v1071_v4, %v6328_v38 }
  0xe7   : > { %v1137_v13 = vrot.slane %v1123_v6, 3  ;;  %v1183_v16 = vrot.slane %v1169_v8, 3  ;;  %v910_v6 = vrot.slane %v898_v54, 2  ;;  %v6602_v42 = vpop.permute.xlu1 %1327 }
  0xe9   : > { %966 = vrot.lane.b32.xlu0 %v958_v19, %s9437_s15  ;;  %830 = vrot.lane.b32.xlu1 %v827_v21, %s6118_s18  ;;  %v1138_v19 = vsel %vm1046_vm13, %v1132_v5, %v1137_v13  ;;  %v1188_v21 = vrot.slane %v1173_v14, 3  ;;  %v1185_v23 = vsel %vm1046_vm13, %v1183_v16, %v1184_v17  ;;  %v916_v14 = vrot.slane %v902_v7, 2  ;;  %v4960_v7 = vld [vmem:[%s9424_s3 + $0x1b] ss:$0 sm:$0xff] }
  0xed   : > { %970 = vrot.lane.b32.xlu0 %v963_v25, %s9437_s15  ;;  %968 = vrot.lane.b32.xlu1 %v961_v32, %s9437_s15  ;;  %v1181_v25 = vrot.slane %v1170_v18, 3  ;;  %v1189_v32 = vsel %vm1046_vm13, %v1184_v17, %v1188_v21  ;;  %v1089_v17 = vrot.slane %v1076_v63, 3  ;;  %v1078_v18 = vmul.f32 %v1071_v4, %v6407_v51 }
  0xee   : > { %v1085_v21 = vrot.slane %v1073_v15, 3  ;;  %v4980_v15 = vld [vmem:[%s9424_s3 + $0x2f] ss:$0 sm:$0xff] }
  0xef   : > { %v1182_v37 = vsel %vm1046_vm13, %v1180_v24, %v1181_v25  ;;  %v1187_v50 = vsel %vm1046_vm13, %v1181_v25, %v1186_v40  ;;  %v6590_v24 = vld [vmem:[#allocation2] sm:$0xf0]  ;;  %v1093_v25 = vrot.slane %v1078_v18, 3  ;;  %v6600_v40 = vld [vmem:[#allocation2 + $0x28] sm:$0xf]  ;;  %v1370_v18 = vmul.f32 %v6323_v35, %v6588_v9 }
  0xf1   : > { %972 = vrot.lane.b32.xlu1 %v965_v43, %s9437_s15  ;;  %1015 = vrot.lane.b32.xlu0 %v1007_v48, %s9437_s15  ;;  %v725_v43 = vmul.f32 %v721_v22, %v6328_v38  ;;  %v738_v48 = vrot.slane %v724_v27, 1  ;;  %v1086_v22 = vrot.slane %v1075_v11, 3 }
  0xf3   : > { %v736_v53 = vrot.slane %v725_v43, 1  ;;  %v740_v57 = vsel %vm597_vm11, %v738_v48, %v739_v49  ;;  %v1087_v28 = vsel %vm1046_vm13, %v1085_v21, %v1086_v22  ;;  %v1094_v43 = vsel %vm1046_vm13, %v1089_v17, %v1093_v25  ;;  %v6605_v49 = vld [vmem:[#allocation2 + $0x20] sm:$0xf]  ;;  %v4942_v21 = vld [vmem:[%s9424_s3 + $0x9] ss:$0 sm:$0xff] }
  0xf5   : > { %1017 = vrot.lane.b32.xlu1 %v1010_v60, %s9437_s15  ;;  %1019 = vrot.lane.b32.xlu0 %v1012_v61, %s9437_s15  ;;  %v737_v60 = vsel %vm597_vm11, %v735_v52, %v736_v53  ;;  %v741_v61 = vrot.slane %v727_v46, 1 }
  0xf7   : > { %v742_v5 = vsel %vm597_vm11, %v736_v53, %v741_v61 }
  0xf9   : > { %1021 = vrot.lane.b32.xlu1 %v1014_v31, %s9437_s15  ;;  %1143 = vrot.lane.b32.xlu0 %v1136_v30, %s6123_s21  ;;  %v914_v31 = vrot.slane %v901_v59, 2  ;;  %v911_v30 = vrot.slane %v900_v1, 2 }
  0xfb   : > { %v915_v8 = vsel %vm822_vm12, %v913_v3, %v914_v31  ;;  %v912_v13 = vsel %vm822_vm12, %v910_v6, %v911_v30  ;;  %v4948_v3 = vld [vmem:[%s9424_s3 + $0xf] ss:$0 sm:$0xff] }
  0xfd   : > { %1141 = vrot.lane.b32.xlu1 %v1133_v12, %s6123_s21  ;;  %1147 = vrot.lane.b32.xlu0 %v1140_v33, %s6123_s21  ;;  %v1074_v12 = vmul.f32 %v1071_v4, %v6395_v29  ;;  %v919_v33 = vsel %vm822_vm12, %v914_v31, %v918_v10  ;;  %v1406_v29 = vpop.permute.xlu0 %1405 }
  0xfe   : > { %v1409_v26 = vmul.f32 %v1406_v29, %v6588_v9  ;;  %v1411_v51 = vmul.f32 %v1406_v29, %v6321_v34  ;;  %v1412_v52 = vmul.f32 %v1406_v29, %v6605_v49 }
  0xff   : > { %v1088_v16 = vrot.slane %v1074_v12, 3 }
 0x100   : > { %v1423_v44 = vrot.slane %v1409_v26, 4  ;;  %v1426_v59 = vrot.slane %v1412_v52, 4  ;;  %v1384_v26 = vrot.slane %v1370_v18, 4  ;;  %v4950_v52 = vld [vmem:[%s9424_s3 + $0x11] ss:$0 sm:$0xff] }
 0x101   : > { %1145 = vrot.lane.b32.xlu1 %v1138_v19, %s6123_s21  ;;  %1192 = vrot.lane.b32.xlu0 %v1185_v23, %s6123_s21  ;;  %v917_v19 = vsel %vm822_vm12, %v911_v30, %v916_v14  ;;  %v1077_v23 = vmul.f32 %v1071_v4, %v6384_v20  ;;  %v1090_v27 = vsel %vm1046_vm13, %v1088_v16, %v1089_v17  ;;  %v4952_v4 = vld [vmem:[%s9424_s3 + $0x13] ss:$0 sm:$0xff]  ;;  %v4976_v14 = vld [vmem:[%s9424_s3 + $0x2b] ss:$0 sm:$0xff] }
 0x102   : > { %v4979_v18 = vld [vmem:[%s9424_s3 + $0x2e] ss:$0 sm:$0xff] }
 0x103   : > { %v1091_v20 = vrot.slane %v1077_v23, 3 }
 0x105   : > { %1196 = vrot.lane.b32.xlu0 %v1189_v32, %s6123_s21  ;;  %1190 = vrot.lane.b32.xlu1 %v1182_v37, %s6123_s21  ;;  %v1408_v32 = vmul.f32 %v1406_v29, %v6590_v24  ;;  %v1410_v37 = vmul.f32 %v1406_v29, %v6328_v38  ;;  %v1092_v36 = vsel %vm1046_vm13, %v1086_v22, %v1091_v20  ;;  %v4943_v22 = vld [vmem:[%s9424_s3 + $0xa] ss:$0 sm:$0xff] }
 0x106   : > { %v1413_v38 = vmul.f32 %v1406_v29, %v6600_v40  ;;  %v6682_v29 = vmul.f32 %v6323_v35, %v6321_v34 }
 0x107   : > { %v1420_v48 = vrot.slane %v1408_v32, 4 }
 0x108   : > { %v1428_v39 = vrot.slane %v1413_v38, 4 }
 0x109   : > { %575 = vrot.lane.b32.xlu0 %v564_v47, %s6122_s16  ;;  %1194 = vrot.lane.b32.xlu1 %v1187_v50, %s6123_s21  ;;  %v1424_v47 = vrot.slane %v1411_v51, 4  ;;  %v1421_v50 = vrot.slane %v1410_v37, 4  ;;  %v9443_v51 = vrot.slane %v6682_v29, 4 }
 0x10b   : > { %v1422_v58 = vsel %vm1270_vm14, %v1420_v48, %v1421_v50  ;;  %v1429_v54 = vsel %vm1270_vm14, %v1424_v47, %v1428_v39  ;;  %v1427_v1 = vsel %vm1270_vm14, %v1421_v50, %v1426_v59  ;;  %v4939_v48 = vld [vmem:[%s9424_s3 + $0x6] ss:$0 sm:$0xff]  ;;  %v4955_v59 = vld [vmem:[%s9424_s3 + $0x16] ss:$0 sm:$0xff] }
 0x10d   : > { %747 = vrot.lane.b32.xlu0 %v740_v57, %s9435_s30  ;;  %745 = vrot.lane.b32.xlu1 %v737_v60, %s9435_s30  ;;  %v1425_v57 = vsel %vm1270_vm14, %v1423_v44, %v1424_v47  ;;  %v1386_v44 = vsel %vm1270_vm14, %v1384_v26, %v9443_v51 }
 0x111   : > { %751 = vrot.lane.b32.xlu0 %v744_v2, %s9435_s30  ;;  %749 = vrot.lane.b32.xlu1 %v742_v5, %s9435_s30  ;;  %v4944_v2 = vld [vmem:[%s9424_s3 + $0xb] ss:$0 sm:$0xff]  ;;  %v4956_v5 = vld [vmem:[%s9424_s3 + $0x17] ss:$0 sm:$0xff] }
 0x115   : > { %922 = vrot.lane.b32.xlu0 %v915_v8, %s9437_s15  ;;  %920 = vrot.lane.b32.xlu1 %v912_v13, %s9437_s15  ;;  %v4972_v8 = vld [vmem:[%s9424_s3 + $0x27] ss:$0 sm:$0xff]  ;;  %v549_v13 = vmul.f32 %v6466_v62, %v6332_v41 }
 0x119   : > { %926 = vrot.lane.b32.xlu0 %v919_v33, %s9437_s15  ;;  %924 = vrot.lane.b32.xlu1 %v917_v19, %s9437_s15  ;;  %s6127_s15 = smov 72  }
 0x11d   : > { %1097 = vrot.lane.b32.xlu0 %v1090_v27, %s6123_s21  ;;  %1095 = vrot.lane.b32.xlu1 %v1087_v28, %s6123_s21  ;;  %v4936_v27 = vld [vmem:[%s9424_s3 + $0x3] ss:$0 sm:$0xff]  ;;  %v4938_v28 = vld [vmem:[%s9424_s3 + $0x5] ss:$0 sm:$0xff] }
 0x121   : > { %1101 = vrot.lane.b32.xlu0 %v1094_v43, %s6123_s21  ;;  %1099 = vrot.lane.b32.xlu1 %v1092_v36, %s6123_s21  ;;  %v4946_v36 = vld [vmem:[%s9424_s3 + $0xd] ss:$0 sm:$0xff] }
 0x123   : > { %v6612_v53 = vpop.permute.xlu1 %569  ;;  %v6614_v46 = vpop.permute.xlu0 %571 }
 0x124   : > { %9529 = vst [vmem:[#allocation5_spill] sm:$0xff] %v6612_v53  ;;  %9530 = vst [vmem:[#allocation6_spill] sm:$0xff] %v6614_v46 }
 0x125   : > { %1432 = vrot.lane.b32.xlu0 %v1425_v57, %s6122_s16  ;;  %1430 = vrot.lane.b32.xlu1 %v1422_v58, %s6122_s16  ;;  %v4951_v57 = vld [vmem:[%s9424_s3 + $0x12] ss:$0 sm:$0xff] }
 0x127   : > { %v6620_v60 = vpop.permute.xlu1 %573  ;;  %v699_v61 = vpop.permute.xlu0 %698 }
 0x128   : > { %9531 = vst [vmem:[#allocation7_spill] sm:$0xff] %v6620_v60 }
 0x129   : > { %1436 = vrot.lane.b32.xlu0 %v1429_v54, %s6122_s16  ;;  %1434 = vrot.lane.b32.xlu1 %v1427_v1, %s6122_s16 }
 0x12b   : > { %v6632_v31 = vpop.permute.xlu1 %696  ;;  %v6634_v55 = vpop.permute.xlu0 %702 }
 0x12c   : > { %v704_v63 = vsel %vm654_vm15, %v6632_v31, %v699_v61  ;;  %v4958_v61 = vld [vmem:[%s9424_s3 + $0x19] ss:$0 sm:$0xff] }
 0x12d   : > { %1871 = vrot.lane.b32.xlu0 %v4944_v2, %s6122_s16  ;;  %2046 = vrot.lane.b32.xlu1 %v4948_v3, %s6121_s22  ;;  %v711_v17 = vadd.f32 %v704_v63, %v549_v13  ;;  %v4959_v2 = vld [vmem:[%s9424_s3 + $0x1a] ss:$0 sm:$0xff]  ;;  %v4964_v3 = vld [vmem:[%s9424_s3 + $0x1f] ss:$0 sm:$0xff] }
 0x12e   : > { %v4970_v63 = vld [vmem:[%s9424_s3 + $0x25] ss:$0 sm:$0xff] }
 0x12f   : > { %v6644_v6 = vpop.permute.xlu1 %700  ;;  %v874_v30 = vpop.permute.xlu0 %873 }
 0x131   : > { %2240 = vrot.lane.b32.xlu0 %v4952_v4, %s6123_s21  ;;  %2418 = vrot.lane.b32.xlu1 %v4956_v5, %s6126_s19 }
 0x133   : > { %v6654_v10 = vpop.permute.xlu1 %871  ;;  %v6656_v12 = vpop.permute.xlu0 %877 }
 0x134   : > { %v879_v11 = vsel %vm496_vm10, %v6654_v10, %v874_v30  ;;  %v4966_v30 = vld [vmem:[%s9424_s3 + $0x21] ss:$0 sm:$0xff] }
 0x135   : > { %2614 = vrot.lane.b32.xlu0 %v4960_v7, %s6118_s18  ;;  %3122 = vrot.lane.b32.xlu1 %v4972_v8, %s6122_s16  ;;  %v886_v19 = vadd.f32 %v879_v11, %v711_v17 }
 0x137   : > { %v6672_v33 = vpop.permute.xlu1 %875  ;;  %v6674_v16 = vpop.permute.xlu0 %1052 }
 0x138   : > { %v1059_v32 = vadd.f32 %v6674_v16, %v886_v19 }
 0x139   : > { %3299 = vrot.lane.b32.xlu0 %v4976_v14, %s6121_s22  ;;  %3491 = vrot.lane.b32.xlu1 %v4980_v15, %s6123_s21  ;;  %v4974_v15 = vld [vmem:[%s9424_s3 + $0x29] ss:$0 sm:$0xff] }
 0x13b   : > { %v6690_v23 = vpop.permute.xlu1 %1054  ;;  %v6692_v25 = vpop.permute.xlu0 %1239 }
 0x13d   : > { %1773 = vrot.lane.b32.xlu0 %v4942_v21, %s6126_s19  ;;  %1822 = vrot.lane.b32.xlu1 %v4943_v22, %s6127_s15  ;;  %v4937_v22 = vld [vmem:[%s9424_s3 + $0x4] ss:$0 sm:$0xff] }
 0x13f   : > { %v6704_v20 = vpop.permute.xlu1 %1241  ;;  %v6706_v37 = vpop.permute.xlu0 %1243 }
 0x140   : > { %v1254_v43 = vadd.f32 %v6704_v20, %v1059_v32 }
 0x141   : > { %1581 = vrot.lane.b32.xlu0 %v4936_v27, %s6127_s15  ;;  %1626 = vrot.lane.b32.xlu1 %v4938_v28, %s6123_s21  ;;  %v523_v27 = vmul.f32 %v6554_v56, %v6332_v41  ;;  %v1292_v28 = vmul.f32 %v6572_v0, %v6588_v9 }
 0x142   : > { %v6714_v47 = vadd.f32 %v1386_v44, %v1254_v43  ;;  %v6807_v43 = vmul.f32 %v6572_v0, %v6321_v34 }
 0x143   : > { %v6722_v50 = vpop.permute.xlu1 %1245  ;;  %v649_v38 = vpop.permute.xlu0 %648 }
 0x145   : > { %1663 = vrot.lane.b32.xlu0 %v4939_v48, %s6118_s18  ;;  %1967 = vrot.lane.b32.xlu1 %v4946_v36, %s6118_s18  ;;  %v4934_v48 = vld [vmem:[%s9424_s3 + $0x1] ss:$0 sm:$0xff] }
 0x147   : > { %v6732_v58 = vpop.permute.xlu1 %646  ;;  %v6734_v39 = vpop.permute.xlu0 %652 }
 0x148   : > { %9532 = vst [vmem:[#allocation8_spill] sm:$0xff] %v6732_v58 }
 0x149   : > { %2142 = vrot.lane.b32.xlu0 %v4950_v52, %s6127_s15  ;;  %2191 = vrot.lane.b32.xlu1 %v4951_v57, %s6122_s16 }
 0x14b   : > { %v6744_v54 = vpop.permute.xlu1 %650  ;;  %v6746_v1 = vpop.permute.xlu0 %603 }
 0x14c   : > { %v610_v44 = vadd.f32 %v6746_v1, %v523_v27  ;;  %v1331_v27 = vmul.f32 %v6602_v42, %v6588_v9 }
 0x14d   : > { %2368 = vrot.lane.b32.xlu0 %v4955_v59, %s6121_s22  ;;  %2513 = vrot.lane.b32.xlu1 %v4958_v61, %s6122_s16  ;;  %v1306_v59 = vrot.slane %v1292_v28, 4  ;;  %v9444_v61 = vrot.slane %v6807_v43, 4  ;;  %v6838_v28 = vmul.f32 %v6602_v42, %v6321_v34 }
 0x14f   : > { %v6756_v4 = vpop.permute.xlu1 %605  ;;  %v6758_v5 = vpop.permute.xlu0 %791  ;;  %v9445_v51 = vrot.slane %v6838_v28, 4 }
 0x151   : > { %2562 = vrot.lane.b32.xlu0 %v4959_v2, %s6123_s21  ;;  %2765 = vrot.lane.b32.xlu1 %v4964_v3, %s6127_s15  ;;  %v655_v3 = vsel %vm654_vm15, %v6732_v58, %v649_v38  ;;  %v9569_v58 = vrot.slane %v6807_v43, 4 }
 0x153   : > { %v6765_v7 = vpop.permute.xlu1 %793  ;;  %v6767_v8 = vpop.permute.xlu0 %795 }
 0x154   : > { %v806_v57 = vadd.f32 %v6765_v7, %v610_v44 }
 0x155   : > { %2849 = vrot.lane.b32.xlu0 %v4966_v30, %s6123_s21 }
 0x157   : > { %v6773_v13 = vpop.permute.xlu1 %797  ;;  %v6775_v14 = vpop.permute.xlu0 %828 }
 0x158   : > { %9533 = vst [vmem:[#allocation9_spill] sm:$0xff] %v6775_v14 }
 0x159   : > { %3024 = vrot.lane.b32.xlu0 %v4970_v63, %s6126_s19 }
 0x15b   : > { %v6781_v11 = vpop.permute.xlu1 %830  ;;  %v6783_v17 = vpop.permute.xlu0 %966 }
 0x15d   : > { %3218 = vrot.lane.b32.xlu0 %v4974_v15, %s6118_s18  ;;  %v536_v15 = vmul.f32 %v6559_v45, %v6332_v41 }
 0x15f   : > { %v6789_v19 = vpop.permute.xlu1 %968  ;;  %v6791_v21 = vpop.permute.xlu0 %970  ;;  %v662_v38 = vadd.f32 %v655_v3, %v536_v15 }
 0x160   : > { %v981_v2 = vadd.f32 %v6789_v19, %v806_v57 }
 0x161   : > { %3442 = vrot.lane.b32.xlu0 %v4979_v18, %s6122_s16  ;;  %v835_v41 = vadd.f32 %v6775_v14, %v662_v38  ;;  %v880_v14 = vsel %vm496_vm10, %v6672_v33, %v6656_v12  ;;  %vm1530_vm10 = vcmask 1048128  }
 0x163   : > { %v6797_v26 = vpop.permute.xlu1 %972  ;;  %v6799_v32 = vpop.permute.xlu0 %1015 }
 0x164   : > { %9534 = vst [vmem:[#allocation10_spill] sm:$0xff] %v6799_v32 }
 0x165   : > { %1594 = vrot.lane.b32.xlu0 %v4937_v22, %s6122_s16  ;;  %v1308_v22 = vsel %vm1270_vm14, %v1306_v59, %v9444_v61 }
 0x167   : > { %v6814_v36 = vpop.permute.xlu1 %1017  ;;  %v6816_v52 = vpop.permute.xlu0 %1019 }
 0x168   : > { %9535 = vst [vmem:[#allocation11_spill] sm:$0xff] %v6814_v36  ;;  %9536 = vst [vmem:[#allocation12_spill] sm:$0xff] %v6816_v52  ;;  %v1030_v59 = vadd.f32 %v6814_v36, %v835_v41 }
 0x169   : > { %1555 = vrot.lane.b32.xlu0 %v4934_v48, %s6121_s22 }
 0x16b   : > { %v6824_v30 = vpop.permute.xlu1 %1021  ;;  %v6826_v63 = vpop.permute.xlu0 %1143 }
 0x16c   : > { %v1156_v18 = vadd.f32 %v6826_v63, %v981_v2  ;;  %v1345_v2 = vrot.slane %v1331_v27, 4 }
 0x16e   : > { %v6840_v44 = vadd.f32 %v1308_v22, %v1156_v18  ;;  %v1347_v3 = vsel %vm1270_vm14, %v1345_v2, %v9445_v51 }
 0x16f   : > { %v6842_v48 = vpop.permute.xlu1 %1141  ;;  %v6844_v57 = vpop.permute.xlu0 %1147 }
 0x173   : > { %v6849_v61 = vpop.permute.xlu1 %1145  ;;  %v6851_v9 = vpop.permute.xlu0 %1192 }
 0x174   : > { %9537 = vst [vmem:[#allocation13_spill] sm:$0xff] %v6851_v9  ;;  %v1205_v34 = vadd.f32 %v6851_v9, %v1030_v59 }
 0x176   : > { %v6857_v15 = vadd.f32 %v1347_v3, %v1205_v34 }
 0x177   : > { %v6859_v18 = vpop.permute.xlu1 %1190  ;;  %v6861_v22 = vpop.permute.xlu0 %1196 }
 0x178   : > { %9538 = vst [vmem:[#allocation14_spill] sm:$0xff] %v6859_v18 }
 0x17b   : > { %v6863_v27 = vpop.permute.xlu1 %1194  ;;  %v6865_v38 = vpop.permute.xlu0 %575 }
 0x17c   : > { %9539 = vst [vmem:[#allocation15_spill] sm:$0xff] %v6863_v27  ;;  %9540 = vst [vmem:[#allocation16_spill] sm:$0xff] %v6865_v38 }
 0x17f   : > { %v6867_v41 = vpop.permute.xlu1 %745  ;;  %v6869_v60 = vpop.permute.xlu0 %747 }
 0x180   : > { %9541 = vst [vmem:[#allocation17_spill] sm:$0xff] %v6867_v41  ;;  %9542 = vst [vmem:[#allocation18_spill] sm:$0xff] %v6869_v60 }
 0x183   : > { %v6871_v53 = vpop.permute.xlu1 %749  ;;  %v6873_v59 = vpop.permute.xlu0 %751 }
 0x184   : > { %9543 = vst [vmem:[#allocation19_spill] sm:$0xff] %v6871_v53  ;;  %9544 = vst [vmem:[#allocation20_spill] sm:$0xff] %v6873_v59 }
 0x187   : > { %v6875_v46 = vpop.permute.xlu1 %920  ;;  %v6877_v2 = vpop.permute.xlu0 %922 }
 0x188   : > { %9545 = vst [vmem:[#allocation21_spill] sm:$0xff] %v6875_v46  ;;  %9546 = vst [vmem:[#allocation22_spill] sm:$0xff] %v6877_v2 }
 0x18b   : > { %v6879_v34 = vpop.permute.xlu1 %924  ;;  %v6881_v3 = vpop.permute.xlu0 %926 }
 0x18c   : > { %9547 = vst [vmem:[#allocation23_spill] sm:$0xff] %v6879_v34  ;;  %9548 = vst [vmem:[#allocation24_spill] sm:$0xff] %v6881_v3 }
 0x18f   : > { %v6883_v51 = vpop.permute.xlu1 %1095  ;;  %v6885_v27 = vpop.permute.xlu0 %1097 }
 0x190   : > { %9549 = vst [vmem:[#allocation25_spill] sm:$0xff] %v6883_v51  ;;  %9550 = vst [vmem:[#allocation26_spill] sm:$0xff] %v6885_v27  ;;  %v2605_v27 = vld [vmem:[#allocation3 + $0x28] sm:$0xfe] }
 0x193   : > { %v6887_v38 = vpop.permute.xlu1 %1099  ;;  %v6889_v41 = vpop.permute.xlu0 %1101 }
 0x194   : > { %9551 = vst [vmem:[#allocation27_spill] sm:$0xff] %v6887_v38  ;;  %9552 = vst [vmem:[#allocation28_spill] sm:$0xff] %v6889_v41  ;;  %v6907_v38 = vld [vmem:[#allocation3 + $0x40] sm:$0xff] }
 0x197   : > { %v6891_v60 = vpop.permute.xlu1 %1430  ;;  %v6893_v53 = vpop.permute.xlu0 %1432 }
 0x198   : > { %9553 = vst [vmem:[#allocation29_spill] sm:$0xff] %v6891_v60  ;;  %9554 = vst [vmem:[#allocation30_spill] sm:$0xff] %v6893_v53 }
 0x19b   : > { %v6895_v59 = vpop.permute.xlu1 %1434  ;;  %v6897_v46 = vpop.permute.xlu0 %1436 }
 0x19c   : > { %9555 = vst [vmem:[#allocation31_spill] sm:$0xff] %v6895_v59  ;;  %9556 = vst [vmem:[#allocation32_spill] sm:$0xff] %v6897_v46  ;;  %v2607_v46 = vld [vmem:[#allocation3 + $0x58] sm:$0x1] }
 0x19f   : > { %v6899_v2 = vpop.permute.xlu1 %2046  ;;  %v6901_v34 = vpop.permute.xlu0 %1871 }
 0x1a0   : > { %9557 = vst [vmem:[#allocation33_spill] sm:$0xff] %v6899_v2  ;;  %9558 = vst [vmem:[#allocation34_spill] sm:$0xff] %v6901_v34 }
 0x1a3   : > { %v6903_v3 = vpop.permute.xlu1 %2418  ;;  %v6905_v51 = vpop.permute.xlu0 %2240 }
 0x1a4   : > { %9559 = vst [vmem:[#allocation35_spill] sm:$0xff] %v6903_v3  ;;  %9560 = vst [vmem:[#allocation36_spill] sm:$0xff] %v6905_v51 }
 0x1a7   : > { %v6909_v41 = vpop.permute.xlu1 %3122  ;;  %v6911_v60 = vpop.permute.xlu0 %2614 }
 0x1a8   : > { %9561 = vst [vmem:[#allocation37_spill] sm:$0xff] %v6909_v41  ;;  %9562 = vst [vmem:[#allocation38_spill] sm:$0xff] %v6911_v60  ;;  %v2618_v53 = vmul.f32 %v6911_v60, %v2605_v27  ;;  %v2620_v59 = vmul.f32 %v6911_v60, %v6907_v38  ;;  %v2622_v18 = vmul.f32 %v6911_v60, %v2607_v46  ;;  %v4967_v27 = vld [vmem:[%s9424_s3 + $0x22] ss:$0 sm:$0xff]  ;;  %v6937_v46 = vld [vmem:[#allocation2 + $0x18] sm:$0xff] }
 0x1aa   : > { %v2632_v2 = vrot.slane %v2618_v53, 1  ;;  %v2633_v52 = vrot.slane %v2620_v59, 1  ;;  %v2637_v53 = vrot.slane %v2622_v18, 1  ;;  %v6931_v59 = vld [vmem:[#allocation3] sm:$0xff]  ;;  %v6945_v18 = vld [vmem:[#allocation3 + $0x8] sm:$0xff] }
 0x1ab   : > { %v6916_v34 = vpop.permute.xlu1 %3491  ;;  %v6918_v3 = vpop.permute.xlu0 %3299 }
 0x1ac   : > { %9563 = vst [vmem:[#allocation39_spill] sm:$0xff] %v6916_v34  ;;  %9564 = vst [vmem:[#allocation40_spill] sm:$0xff] %v6918_v3  ;;  %v2634_v51 = vsel %vm597_vm11, %v2632_v2, %v2633_v52  ;;  %v2638_v60 = vsel %vm597_vm11, %v2633_v52, %v2637_v53  ;;  %v705_v53 = vsel %vm654_vm15, %v6644_v6, %v6634_v55 }
 0x1ad   : > { %2641 = vrot.lane.b32.xlu1 %v2634_v51, %s9462_s26  ;;  %v525_v51 = vmul.f32 %v6937_v46, %v6554_v56 }
 0x1af   : > { %v6926_v41 = vpop.permute.xlu1 %1822  ;;  %v6928_v9 = vpop.permute.xlu0 %1773 }
 0x1b0   : > { %9565 = vst [vmem:[#allocation41_spill] sm:$0xff] %v6926_v41  ;;  %9566 = vst [vmem:[#allocation42_spill] sm:$0xff] %v6928_v9  ;;  %v1296_v9 = vmul.f32 %v6572_v0, %v6600_v40 }
 0x1b1   : > { %2900 = vrot.lane.b32.xlu1 %v4967_v27, %s6118_s18  ;;  %v612_v27 = vadd.f32 %v6756_v4, %v525_v51 }
 0x1b2   : > { %v1311_v32 = vrot.slane %v1296_v9, 4 }
 0x1b3   : > { %v6933_v34 = vpop.permute.xlu1 %1626  ;;  %v6935_v2 = vpop.permute.xlu0 %1581  ;;  %v808_v52 = vadd.f32 %v6773_v13, %v612_v27  ;;  %v4978_v27 = vld [vmem:[%s9424_s3 + $0x2d] ss:$0 sm:$0xff] }
 0x1b4   : > { %9567 = vst [vmem:[#allocation43_spill] sm:$0xff] %v6935_v2  ;;  %v1629_v41 = vmul.f32 %v6933_v34, %v6931_v59  ;;  %v4971_v2 = vld [vmem:[%s9424_s3 + $0x26] ss:$0 sm:$0xff]  ;;  %v1312_v12 = vsel %vm1270_vm14, %v9569_v58, %v1311_v32  ;;  %v1369_v32 = vmul.f32 %v6323_v35, %v6590_v24 }
 0x1b5   : > { %2645 = vrot.lane.b32.xlu1 %v2638_v60, %s9462_s26  ;;  %v983_v51 = vadd.f32 %v6797_v26, %v808_v52  ;;  %v4941_v52 = vld [vmem:[%s9424_s3 + $0x8] ss:$0 sm:$0xff]  ;;  %s9685_s26 = smov 56  }
 0x1b6   : > { %1637 = vrot.lane.b32.xlu0 %v1629_v41, %s9568_s24  ;;  %v551_v41 = vmul.f32 %v6937_v46, %v6466_v62 }
 0x1b7   : > { %v6954_v3 = vpop.permute.xlu0 %1663  ;;  %v1158_v55 = vadd.f32 %v6844_v57, %v983_v51  ;;  %v6999_v51 = vld [vmem:[#allocation2 + $0x10] sm:$0xff] }
 0x1b8   : > { %v1666_v60 = vmul.f32 %v6954_v3, %v6945_v18  ;;  %v713_v36 = vadd.f32 %v705_v53, %v551_v41 }
 0x1b9   : > { %3073 = vrot.lane.b32.xlu1 %v4971_v2, %s6127_s15  ;;  %v1320_v9 = vadd.f32 %v1312_v12, %v1158_v55  ;;  %v550_v55 = vmul.f32 %v6999_v51, %v6466_v62 }
 0x1ba   : > { %1674 = vrot.lane.b32.xlu0 %v1666_v60, %s9568_s24  ;;  %v888_v2 = vadd.f32 %v880_v14, %v713_v36  ;;  %v1374_v60 = vmul.f32 %v6323_v35, %v6600_v40  ;;  %v4945_v14 = vld [vmem:[%s9424_s3 + $0xc] ss:$0 sm:$0xff]  ;;  %v6991_v36 = vld [vmem:[#allocation2] sm:$0xff] }
 0x1bc   : > { %v1061_v53 = vadd.f32 %v6690_v23, %v888_v2  ;;  %v1389_v41 = vrot.slane %v1374_v60, 4  ;;  %v9570_v60 = vrot.slane %v6682_v29, 4  ;;  %v1248_v29 = vsel %vm1103_vm0, %v6706_v37, %v6722_v50  ;;  %v1960_v37 = vld [vmem:[#allocation3 + $0x40] sm:$0x7] }
 0x1bd   : > { %3393 = vrot.lane.b32.xlu1 %v4978_v27, %s6127_s15  ;;  %v1371_v27 = vmul.f32 %v6999_v51, %v6323_v35 }
 0x1be   : > { %1450 = vrot.lane.b32.xlu0 %v6840_v44, %s6123_s21  ;;  %v548_v44 = vmul.f32 %v6991_v36, %v6466_v62  ;;  %v1256_v43 = vadd.f32 %v6722_v50, %v1061_v53  ;;  %v1390_v12 = vsel %vm1270_vm14, %v9570_v60, %v1389_v41  ;;  %v1247_v62 = vsel %vm1103_vm0, %v6692_v25, %v6704_v20  ;;  %v7035_v20 = vld [vmem:[#allocation3 + $0x28] sm:$0xff] }
 0x1bf   : > { %v522_v25 = vmul.f32 %v6991_v36, %v6554_v56  ;;  %v800_v60 = vsel %vm753_vm1, %v6767_v8, %v6773_v13 }
 0x1c0   : > { %v710_v58 = vadd.f32 %v6632_v31, %v548_v44  ;;  %v4935_v31 = vld [vmem:[%s9424_s3 + $0x2] ss:$0 sm:$0xff]  ;;  %v1382_v44 = vrot.slane %v1371_v27, 4  ;;  %v524_v27 = vmul.f32 %v6999_v51, %v6554_v56 }
 0x1c1   : > { %1728 = vrot.lane.b32.xlu1 %v4941_v52, %s6121_s22  ;;  %v1373_v52 = vmul.f32 %v6323_v35, %v6605_v49  ;;  %v1630_v35 = vmul.f32 %v6933_v34, %v6945_v18 }
 0x1c2   : > { %1454 = vrot.lane.b32.xlu0 %v1320_v9, %s6123_s21  ;;  %v885_v2 = vadd.f32 %v6654_v10, %v710_v58  ;;  %v712_v9 = vadd.f32 %v6644_v6, %v550_v55  ;;  %v7041_v58 = vpop.permute.xlu1 %1967  ;;  %v1291_v55 = vmul.f32 %v6572_v0, %v6590_v24 }
 0x1c4   : > { %v1058_v53 = vadd.f32 %v6674_v16, %v885_v2  ;;  %v887_v10 = vadd.f32 %v6672_v33, %v712_v9  ;;  %v4949_v16 = vld [vmem:[%s9424_s3 + $0x10] ss:$0 sm:$0xff]  ;;  %v1387_v33 = vrot.slane %v1373_v52, 4  ;;  %v1973_v2 = vmul.f32 %v7041_v58, %v7035_v20 }
 0x1c5   : > { %1920 = vrot.lane.b32.xlu1 %v4945_v14, %s6123_s21  ;;  %v1381_v14 = vrot.slane %v1369_v32, 4  ;;  %v609_v32 = vadd.f32 %v6746_v1, %v522_v25  ;;  %v1669_v1 = vmul.f32 %v6954_v3, %v7035_v20  ;;  %v1975_v52 = vmul.f32 %v7041_v58, %v1960_v37  ;;  %v4969_v37 = vld [vmem:[%s9424_s3 + $0x24] ss:$0 sm:$0xff] }
 0x1c6   : > { %1468 = vrot.lane.b32.xlu0 %v6714_v47, %s6123_s21  ;;  %v1398_v47 = vadd.f32 %v1390_v12, %v1256_v43  ;;  %v1253_v6 = vadd.f32 %v1247_v62, %v1058_v53  ;;  %v1060_v41 = vadd.f32 %v6690_v23, %v887_v10  ;;  %v799_v43 = vsel %vm753_vm1, %v6758_v5, %v6765_v7 }
 0x1c7   : > { %v1383_v50 = vsel %vm1270_vm14, %v1381_v14, %v1382_v44  ;;  %v974_v5 = vsel %vm928_vm2, %v6783_v17, %v6789_v19  ;;  %v1293_v7 = vmul.f32 %v6999_v51, %v6572_v0  ;;  %v805_v56 = vadd.f32 %v799_v43, %v609_v32 }
 0x1c8   : > { %v1255_v23 = vadd.f32 %v1248_v29, %v1060_v41  ;;  %v1149_v17 = vsel %vm1103_vm0, %v6842_v48, %v6826_v63  ;;  %v1388_v19 = vsel %vm1270_vm14, %v1382_v44, %v1387_v33  ;;  %v611_v12 = vadd.f32 %v6756_v4, %v524_v27  ;;  %v4957_v4 = vld [vmem:[%s9424_s3 + $0x18] ss:$0 sm:$0xff]  ;;  %v4963_v41 = vld [vmem:[%s9424_s3 + $0x1e] ss:$0 sm:$0xff]  ;;  %v4977_v27 = vld [vmem:[%s9424_s3 + $0x2c] ss:$0 sm:$0xff] }
 0x1c9   : > { %1568 = vrot.lane.b32.xlu1 %v4935_v31, %s6126_s19  ;;  %v1395_v31 = vadd.f32 %v1383_v50, %v1253_v6  ;;  %v980_v9 = vadd.f32 %v974_v5, %v805_v56  ;;  %v1295_v62 = vmul.f32 %v6572_v0, %v6605_v49  ;;  %v975_v53 = vsel %vm928_vm2, %v6791_v21, %v6797_v26  ;;  %v4953_v50 = vld [vmem:[%s9424_s3 + $0x14] ss:$0 sm:$0xff]  ;;  %v4965_v5 = vld [vmem:[%s9424_s3 + $0x20] ss:$0 sm:$0xff] }
 0x1ca   : > { %1472 = vrot.lane.b32.xlu0 %v1398_v47, %s6123_s21  ;;  %v1397_v47 = vadd.f32 %v1388_v19, %v1255_v23  ;;  %v1303_v8 = vrot.slane %v1291_v55, 4  ;;  %v1304_v13 = vrot.slane %v1293_v7, 4  ;;  %v807_v63 = vadd.f32 %v800_v60, %v611_v12  ;;  %v4962_v23 = vld [vmem:[%s9424_s3 + $0x1d] ss:$0 sm:$0xff]  ;;  %v7119_v7 = vpop.permute.xlu0 %2142  ;;  %v7133_v60 = vpop.permute.xlu1 %2191 }
 0x1cb   : > { %v1155_v48 = vadd.f32 %v1149_v17, %v980_v9  ;;  %v1986_v14 = vrot.slane %v1973_v2, 3  ;;  %v1990_v44 = vrot.slane %v1975_v52, 3  ;;  %v1150_v0 = vsel %vm1103_vm0, %v6849_v61, %v6844_v57  ;;  %v1959_v57 = vld [vmem:[#allocation3 + $0x10] sm:$0xf8] }
 0x1cc   : > { %v1305_v21 = vsel %vm1270_vm14, %v1303_v8, %v1304_v13  ;;  %v1309_v26 = vrot.slane %v1295_v62, 4  ;;  %v1971_v43 = vmul.f32 %v7041_v58, %v1959_v57  ;;  %v2893_v8 = vld [vmem:[#allocation3 + $0x58] sm:$0xf] }
 0x1cd   : > { %1639 = vrot.lane.b32.xlu1 %v1630_v35, %s9568_s24  ;;  %v982_v35 = vadd.f32 %v975_v53, %v807_v63  ;;  %v1317_v10 = vadd.f32 %v1305_v21, %v1155_v48  ;;  %v1991_v29 = vsel %vm1046_vm13, %v1986_v14, %v1990_v44  ;;  %v2892_v53 = vld [vmem:[#allocation3 + $0x28] sm:$0xf0] }
 0x1ce   : > { %2096 = vrot.lane.b32.xlu0 %v4949_v16, %s6126_s19  ;;  %v1310_v25 = vsel %vm1270_vm14, %v1304_v13, %v1309_v26  ;;  %v1655_v16 = vld [vmem:[#allocation3 + $0x10] sm:$0xff]  ;;  %v1985_v32 = vrot.slane %v1971_v43, 3  ;;  %v7137_v19 = vpop.permute.xlu1 %2513  ;;  %v3210_v63 = vld [vmem:[#allocation3 + $0x28] sm:$0x80] }
 0x1cf   : > { %v1157_v6 = vadd.f32 %v1150_v0, %v982_v35  ;;  %v1667_v33 = vmul.f32 %v6954_v3, %v1655_v16  ;;  %9577 = vst [vmem:[#allocation49_spill] sm:$0xff] %v7137_v19 }
 0x1d0   : > { %v1987_v55 = vsel %vm1046_vm13, %v1985_v32, %v1986_v14 }
 0x1d1   : > { %1466 = vrot.lane.b32.xlu1 %v1395_v31, %s6123_s21  ;;  %v1319_v61 = vadd.f32 %v1310_v25, %v1157_v6  ;;  %v7125_v31 = vpop.permute.xlu0 %2368 }
 0x1d2   : > { %1680 = vrot.lane.b32.xlu0 %v1669_v1, %s9568_s24  ;;  %v4973_v1 = vld [vmem:[%s9424_s3 + $0x28] ss:$0 sm:$0xff]  ;;  %9572 = vst [vmem:[#allocation44_spill] sm:$0xff] %v7125_v31  ;;  %v7141_v9 = vpop.permute.xlu1 %2765 }
 0x1d3   : > { %9578 = vst [vmem:[#allocation50_spill] sm:$0xff] %v7141_v9 }
 0x1d5   : > { %1470 = vrot.lane.b32.xlu1 %v1397_v47, %s6123_s21  ;;  %v7127_v56 = vpop.permute.xlu0 %2562 }
 0x1d6   : > { %2467 = vrot.lane.b32.xlu0 %v4957_v4, %s6127_s15  ;;  %9573 = vst [vmem:[#allocation45_spill] sm:$0xff] %v7127_v56 }
 0x1d9   : > { %1448 = vrot.lane.b32.xlu1 %v1317_v10, %s6123_s21  ;;  %v7129_v2 = vpop.permute.xlu0 %2849 }
 0x1da   : > { %1998 = vrot.lane.b32.xlu0 %v1991_v29, %s9571_s29  ;;  %9574 = vst [vmem:[#allocation46_spill] sm:$0xff] %v7129_v2  ;;  %v3211_v29 = vld [vmem:[#allocation3 + $0x58] sm:$0x7f] }
 0x1dd   : > { %1452 = vrot.lane.b32.xlu1 %v1319_v61, %s6123_s21  ;;  %v7131_v52 = vpop.permute.xlu0 %3024 }
 0x1de   : > { %2726 = vrot.lane.b32.xlu0 %v4963_v41, %s6126_s19  ;;  %9575 = vst [vmem:[#allocation47_spill] sm:$0xff] %v7131_v52 }
 0x1e1   : > { %1676 = vrot.lane.b32.xlu1 %v1667_v33, %s9568_s24  ;;  %v7135_v17 = vpop.permute.xlu0 %3218 }
 0x1e2   : > { %2979 = vrot.lane.b32.xlu0 %v4969_v37, %s6121_s22  ;;  %9576 = vst [vmem:[#allocation48_spill] sm:$0xff] %v7135_v17  ;;  %v3222_v0 = vmul.f32 %v7135_v17, %v3210_v63  ;;  %v3224_v10 = vmul.f32 %v7135_v17, %v6907_v38  ;;  %v3226_v43 = vmul.f32 %v7135_v17, %v3211_v29 }
 0x1e4   : > { %v3236_v41 = vrot.slane %v3222_v0, 7  ;;  %v3237_v33 = vrot.slane %v3224_v10, 7 }
 0x1e5   : > { %2291 = vrot.lane.b32.xlu1 %v4953_v50, %s6118_s18  ;;  %v7139_v12 = vpop.permute.xlu0 %3442 }
 0x1e6   : > { %3348 = vrot.lane.b32.xlu0 %v4977_v27, %s6126_s19  ;;  %v3238_v32 = vsel %vm1513_vm3, %v3236_v41, %v3237_v33  ;;  %v3241_v27 = vrot.slane %v3226_v43, 7  ;;  %v535_v43 = vmul.f32 %v6991_v36, %v6559_v45 }
 0x1e9   : > { %1994 = vrot.lane.b32.xlu1 %v1987_v55, %s9571_s29  ;;  %v7143_v62 = vpop.permute.xlu0 %1594  ;;  %v538_v55 = vmul.f32 %v6937_v46, %v6559_v45 }
 0x1ea   : > { %v1597_v57 = vmul.f32 %v7143_v62, %v6931_v59  ;;  %v656_v59 = vsel %vm654_vm15, %v6744_v54, %v6734_v39 }
 0x1ed   : > { %2687 = vrot.lane.b32.xlu1 %v4962_v23, %s6121_s22  ;;  %v7147_v13 = vpop.permute.xlu0 %1555 }
 0x1ee   : > { %9580 = vst [vmem:[#allocation52_spill] sm:$0xff] %v7147_v13  ;;  %v7551_v13 = vld [vmem:[%s9424_s3 + $0xe] ss:$0 sm:$0xff] }
 0x1f1   : > { %2804 = vrot.lane.b32.xlu1 %v4965_v5, %s6122_s16 }
 0x1f5   : > { %3171 = vrot.lane.b32.xlu1 %v4973_v1, %s6123_s21  ;;  %v664_v1 = vadd.f32 %v656_v59, %v538_v55  ;;  %v2283_v59 = vld [vmem:[#allocation3 + $0x10] sm:$0xc0] }
 0x1f7   : > { %v837_v39 = vadd.f32 %v6781_v11, %v664_v1  ;;  %v1330_v1 = vmul.f32 %v6602_v42, %v6590_v24 }
 0x1f9   : > { %v1032_v46 = vadd.f32 %v6824_v30, %v837_v39  ;;  %v9593_v39 = vld [vmem:[#allocation11_spill] sm:$0xff] }
 0x1fb   : > { %v1207_v0 = vadd.f32 %v6861_v22, %v1032_v46  ;;  %v9594_v46 = vld [vmem:[#allocation10_spill] sm:$0xff] }
 0x21f   : > { %v7145_v47 = vpop.permute.xlu1 %2641 }
 0x220   : > { %9579 = vst [vmem:[#allocation51_spill] sm:$0xff] %v7145_v47 }
 0x223   : > { %v7149_v48 = vpop.permute.xlu1 %2900 }
 0x224   : > { %9581 = vst [vmem:[#allocation53_spill] sm:$0xff] %v7149_v48  ;;  %v2904_v4 = vmul.f32 %v7149_v48, %v2892_v53  ;;  %v2906_v14 = vmul.f32 %v7149_v48, %v6907_v38  ;;  %v2908_v44 = vmul.f32 %v7149_v48, %v2893_v8  ;;  %v4981_v38 = vld [vmem:[%s9424_s3 + $0x30] ss:$0 sm:$0xff]  ;;  %v1335_v53 = vmul.f32 %v6602_v42, %v6600_v40 }
 0x225   : > { %v3242_v8 = vsel %vm1513_vm3, %v3237_v33, %v3241_v27  ;;  %v9591_v27 = vld [vmem:[#allocation8_spill] sm:$0xff] }
 0x226   : > { %v2918_v35 = vrot.slane %v2904_v4, 4  ;;  %v2919_v21 = vrot.slane %v2906_v14, 4  ;;  %v2923_v26 = vrot.slane %v2908_v44, 4  ;;  %v1598_v14 = vmul.f32 %v7143_v62, %v6945_v18 }
 0x227   : > { %v7158_v6 = vpop.permute.xlu1 %2645  ;;  %v1350_v44 = vrot.slane %v1335_v53, 4  ;;  %v661_v55 = vadd.f32 %v9591_v27, %v535_v43  ;;  %v1332_v53 = vmul.f32 %v6999_v51, %v6602_v42  ;;  %v9597_v43 = vld [vmem:[#allocation14_spill] sm:$0xff] }
 0x228   : > { %9582 = vst [vmem:[#allocation54_spill] sm:$0xff] %v7158_v6  ;;  %v7160_v25 = vpop.permute.xlu0 %1637  ;;  %v2920_v16 = vsel %vm1270_vm14, %v2918_v35, %v2919_v21  ;;  %v2924_v61 = vsel %vm1270_vm14, %v2919_v21, %v2923_v26  ;;  %v9586_v26 = vrot.slane %v6838_v28, 4 }
 0x229   : > { %9583 = vst [vmem:[#allocation55_spill] sm:$0xff] %v7160_v25  ;;  %2927 = vrot.lane.b32.xlu1 %v2920_v16, %s9568_s24  ;;  %2931 = vrot.lane.b32.xlu0 %v2924_v61, %s9568_s24 }
 0x22a   : > { %v1351_v10 = vsel %vm1270_vm14, %v9586_v26, %v1350_v44  ;;  %v537_v26 = vmul.f32 %v6999_v51, %v6559_v45  ;;  %v1343_v45 = vrot.slane %v1332_v53, 4 }
 0x22b   : > { %v7172_v37 = vpop.permute.xlu1 %3073  ;;  %v1359_v16 = vadd.f32 %v1351_v10, %v1207_v0  ;;  %v9595_v10 = vld [vmem:[#allocation9_spill] sm:$0xff] }
 0x22c   : > { %9584 = vst [vmem:[#allocation56_spill] sm:$0xff] %v7172_v37  ;;  %v7174_v50 = vpop.permute.xlu0 %1674 }
 0x22d   : > { %9585 = vst [vmem:[#allocation57_spill] sm:$0xff] %v7174_v50  ;;  %1605 = vrot.lane.b32.xlu0 %v1597_v57, %s9568_s24  ;;  %3543 = vrot.lane.b32.xlu1 %v4981_v38, %s6118_s18  ;;  %s9588_s18 = smov 112  }
 0x22f   : > { %v7184_v23 = vpop.permute.xlu1 %3393 }
 0x230   : > { %v7186_v5 = vpop.permute.xlu0 %1450 }
 0x231   : > { %3245 = vrot.lane.b32.xlu1 %v3238_v32, %s9571_s29  ;;  %v2284_v32 = vld [vmem:[#allocation3 + $0x40] sm:$0x3f] }
 0x233   : > { %v7193_v63 = vpop.permute.xlu1 %1728 }
 0x234   : > { %v7195_v4 = vpop.permute.xlu0 %1454 }
 0x235   : > { %3249 = vrot.lane.b32.xlu1 %v3242_v8, %s9571_s29 }
 0x237   : > { %v7202_v35 = vpop.permute.xlu1 %1920 }
 0x238   : > { %v1469_v40 = vpop.permute.xlu0 %1468 }
 0x239   : > { %v1481_v21 = vadd.f32 %v1469_v40, %v6857_v15  ;;  %1607 = vrot.lane.b32.xlu1 %v1598_v14, %s9568_s24  ;;  %v1023_v14 = vsel %vm928_vm2, %v9594_v46, %v9593_v39  ;;  %v663_v39 = vadd.f32 %v6744_v54, %v537_v26  ;;  %v9599_v54 = vld [vmem:[#allocation15_spill] sm:$0xff] }
 0x23b   : > { %v7209_v29 = vpop.permute.xlu1 %1568  ;;  %1490 = vrot.lane.b32.xlu0 %v1481_v21, %s9588_s18 }
 0x23c   : > { %9587 = vst [vmem:[#allocation58_spill] sm:$0xff] %v7209_v29  ;;  %v1473_v18 = vpop.permute.xlu0 %1472 }
 0x23d   : > { %v1483_v61 = vadd.f32 %v1473_v18, %v1359_v16  ;;  %v834_v16 = vadd.f32 %v9595_v10, %v661_v55 }
 0x23f   : > { %v7212_v57 = vpop.permute.xlu1 %1639  ;;  %1494 = vrot.lane.b32.xlu0 %v1483_v61, %s9588_s18  ;;  %v9596_v61 = vld [vmem:[#allocation13_spill] sm:$0xff]  ;;  %v1029_v46 = vadd.f32 %v1023_v14, %v834_v16 }
 0x240   : > { %9589 = vst [vmem:[#allocation59_spill] sm:$0xff] %v7212_v57  ;;  %v1198_v27 = vsel %vm1103_vm0, %v9597_v43, %v9596_v61 }
 0x241   : > { %v1204_v61 = vadd.f32 %v1198_v27, %v1029_v46 }
 0x243   : > { %v1467_v38 = vpop.permute.xlu1 %1466 }
 0x247   : > { %v1471_v41 = vpop.permute.xlu1 %1470 }
 0x248   : > { %v1475_v26 = vsel %vm1103_vm0, %v1471_v41, %v1473_v18 }
 0x24b   : > { %v7215_v15 = vpop.permute.xlu1 %1448 }
 0x24f   : > { %v7217_v33 = vpop.permute.xlu1 %1452 }
 0x253   : > { %v7219_v28 = vpop.permute.xlu1 %1676 }
 0x254   : > { %9590 = vst [vmem:[#allocation60_spill] sm:$0xff] %v7219_v28  ;;  %v836_v28 = vadd.f32 %v6781_v11, %v663_v39 }
 0x257   : > { %v7228_v8 = vpop.permute.xlu1 %2291 }
 0x258   : > { %9592 = vst [vmem:[#allocation8_spill] sm:$0xff] %v7228_v8  ;;  %v2295_v44 = vmul.f32 %v7228_v8, %v2283_v59  ;;  %v2297_v0 = vmul.f32 %v7228_v8, %v7035_v20  ;;  %v2299_v21 = vmul.f32 %v7228_v8, %v2284_v32  ;;  %v1342_v59 = vrot.slane %v1330_v1, 4  ;;  %v9598_v32 = vld [vmem:[#allocation12_spill] sm:$0xff] }
 0x259   : > { %v1334_v20 = vmul.f32 %v6602_v42, %v6605_v49  ;;  %v1024_v50 = vsel %vm928_vm2, %v9598_v32, %v6824_v30  ;;  %v1199_v1 = vsel %vm1103_vm0, %v9599_v54, %v6861_v22  ;;  %v4907_v32 = vld [vmem:[%s9422_s1] ss:$0 sm:$0xff] }
 0x25a   : > { %v2309_v25 = vrot.slane %v2295_v44, 6  ;;  %v2310_v57 = vrot.slane %v2297_v0, 6  ;;  %v2314_v10 = vrot.slane %v2299_v21, 6  ;;  %v1031_v14 = vadd.f32 %v1024_v50, %v836_v28 }
 0x25b   : > { %v1344_v42 = vsel %vm1270_vm14, %v1342_v59, %v1343_v45  ;;  %v1474_v44 = vsel %vm1103_vm0, %v1467_v38, %v1469_v40  ;;  %v1348_v0 = vrot.slane %v1334_v20, 4  ;;  %v7263_v50 = vpop.permute.xlu1 %1994 }
 0x25c   : > { %v2311_v55 = vsel %vm477_vm4, %v2309_v25, %v2310_v57  ;;  %v2315_v30 = vsel %vm477_vm4, %v2310_v57, %v2314_v10  ;;  %v1206_v53 = vadd.f32 %v1199_v1, %v1031_v14  ;;  %v1356_v25 = vadd.f32 %v1344_v42, %v1204_v61  ;;  %9600 = vst [vmem:[#allocation11_spill] sm:$0xff] %v7263_v50  ;;  %v7267_v57 = vpop.permute.xlu0 %2096  ;;  %v9614_v10 = vld [vmem:[#allocation6_spill] sm:$0xff]  ;;  %v9615_v61 = vld [vmem:[#allocation5_spill] sm:$0xff] }
 0x25d   : > { %2318 = vrot.lane.b32.xlu1 %v2311_v55, %s9588_s18  ;;  %v1349_v21 = vsel %vm1270_vm14, %v1343_v45, %v1348_v0  ;;  %v578_v54 = vsel %vm577_vm5, %v9615_v61, %v9614_v10  ;;  %v509_v1 = vmul.f32 %v6991_v36, %v4907_v32  ;;  %v9616_v14 = vld [vmem:[#allocation18_spill] sm:$0xff]  ;;  %v9617_v42 = vld [vmem:[#allocation17_spill] sm:$0xff]  ;;  %v510_v36 = vmul.f32 %v6999_v51, %v4907_v32 }
 0x25e   : > { %v1480_v11 = vadd.f32 %v1474_v44, %v1356_v25  ;;  %v1358_v16 = vadd.f32 %v1349_v21, %v1206_v53  ;;  %v754_v44 = vsel %vm753_vm1, %v9617_v42, %v9616_v14  ;;  %v9618_v53 = vld [vmem:[#allocation16_spill] sm:$0xff]  ;;  %v9619_v25 = vld [vmem:[#allocation7_spill] sm:$0xff]  ;;  %v9620_v21 = vld [vmem:[#allocation22_spill] sm:$0xff] }
 0x25f   : > { %v7265_v40 = vpop.permute.xlu1 %2687  ;;  %v582_v0 = vadd.f32 %v578_v54, %v509_v1  ;;  %v9624_v1 = vld [vmem:[#allocation20_spill] sm:$0xff]  ;;  %v9625_v14 = vld [vmem:[#allocation19_spill] sm:$0xff] }
 0x260   : > { %v1482_v22 = vadd.f32 %v1475_v26, %v1358_v16  ;;  %9601 = vst [vmem:[#allocation10_spill] sm:$0xff] %v7265_v40  ;;  %v7271_v28 = vpop.permute.xlu0 %1680  ;;  %v9621_v26 = vld [vmem:[#allocation21_spill] sm:$0xff]  ;;  %v755_v42 = vsel %vm753_vm1, %v9625_v14, %v9624_v1  ;;  %v9632_v1 = vld [vmem:[#allocation28_spill] sm:$0xff]  ;;  %v9633_v14 = vld [vmem:[#allocation27_spill] sm:$0xff] }
 0x261   : > { %2322 = vrot.lane.b32.xlu1 %v2315_v30, %s9588_s18  ;;  %9603 = vst [vmem:[#allocation13_spill] sm:$0xff] %v7271_v28  ;;  %v4927_v30 = vld [vmem:[%s9422_s1 + $0x14] ss:$0 sm:$0xff]  ;;  %v929_v16 = vsel %vm928_vm2, %v9621_v26, %v9620_v21  ;;  %v758_v10 = vadd.f32 %v754_v44, %v582_v0  ;;  %v1105_v50 = vsel %vm1103_vm0, %v9633_v14, %v9632_v1 }
 0x263   : > { %v7269_v38 = vpop.permute.xlu1 %2804  ;;  %v933_v26 = vadd.f32 %v929_v16, %v758_v10  ;;  %v9634_v16 = vld [vmem:[#allocation30_spill] sm:$0xff] }
 0x264   : > { %9602 = vst [vmem:[#allocation9_spill] sm:$0xff] %v7269_v38  ;;  %v7273_v43 = vpop.permute.xlu0 %2467 }
 0x265   : > { %1488 = vrot.lane.b32.xlu1 %v1480_v11, %s9588_s18  ;;  %9604 = vst [vmem:[#allocation14_spill] sm:$0xff] %v7273_v43  ;;  %v579_v11 = vsel %vm577_vm5, %v9619_v25, %v9618_v53  ;;  %v1265_v25 = vmul.f32 %v6999_v51, %v4927_v30  ;;  %v1266_v51 = vmul.f32 %v4927_v30, %v6605_v49 }
 0x266   : > { %v583_v21 = vadd.f32 %v579_v11, %v510_v36  ;;  %v9635_v36 = vld [vmem:[#allocation29_spill] sm:$0xff] }
 0x267   : > { %v7275_v27 = vpop.permute.xlu1 %3171 }
 0x268   : > { %9605 = vst [vmem:[#allocation12_spill] sm:$0xff] %v7275_v27  ;;  %v7277_v18 = vpop.permute.xlu0 %1998  ;;  %v759_v0 = vadd.f32 %v755_v42, %v583_v21  ;;  %v1456_v21 = vsel %vm1103_vm0, %v7215_v15, %v7186_v5  ;;  %v9651_v27 = vld [vmem:[#allocation42_spill] sm:$0xff] }
 0x269   : > { %1492 = vrot.lane.b32.xlu1 %v1482_v22, %s9588_s18  ;;  %9606 = vst [vmem:[#allocation15_spill] sm:$0xff] %v7277_v18  ;;  %v1264_v22 = vmul.f32 %v4927_v30, %v6590_v24  ;;  %v9628_v24 = vld [vmem:[#allocation24_spill] sm:$0xff] }
 0x26a   : > { %v9637_v30 = vld [vmem:[#allocation32_spill] sm:$0xff] }
 0x26b   : > { %v1271_v44 = vrot.slane %v1264_v22, 4 }
 0x26c   : > { %v7281_v39 = vpop.permute.xlu0 %2726 }
 0x26d   : > { %9608 = vst [vmem:[#allocation62_spill] sm:$0xff] %v7281_v39 }
 0x270   : > { %v7285_v59 = vpop.permute.xlu0 %2979 }
 0x271   : > { %9610 = vst [vmem:[#allocation64_spill] sm:$0xff] %v7285_v59 }
 0x274   : > { %v7292_v45 = vpop.permute.xlu0 %3348 }
 0x275   : > { %9612 = vst [vmem:[#allocation66_spill] sm:$0xff] %v7292_v45  ;;  %v9650_v45 = vld [vmem:[#allocation39_spill] sm:$0xff] }
 0x29b   : > { %v7279_v41 = vpop.permute.xlu1 %2927  ;;  %v7314_v61 = vpop.permute.xlu0 %2931 }
 0x29c   : > { %9607 = vst [vmem:[#allocation61_spill] sm:$0xff] %v7279_v41  ;;  %9622 = vst [vmem:[#allocation6_spill] sm:$0xff] %v7314_v61  ;;  %v9626_v41 = vld [vmem:[#allocation26_spill] sm:$0xff] }
 0x29f   : > { %v7283_v46 = vpop.permute.xlu1 %3543 }
 0x2a0   : > { %9609 = vst [vmem:[#allocation63_spill] sm:$0xff] %v7283_v46 }
 0x2a3   : > { %v7287_v20 = vpop.permute.xlu1 %3245 }
 0x2a4   : > { %9611 = vst [vmem:[#allocation65_spill] sm:$0xff] %v7287_v20  ;;  %v9629_v20 = vld [vmem:[#allocation23_spill] sm:$0xff] }
 0x2a5   : > { %v930_v32 = vsel %vm928_vm2, %v9629_v20, %v9628_v24  ;;  %v1438_v20 = vsel %vm577_vm5, %v9635_v36, %v9634_v16  ;;  %v9638_v24 = vld [vmem:[#allocation31_spill] sm:$0xff] }
 0x2a7   : > { %v7294_v55 = vpop.permute.xlu1 %3249 }
 0x2a8   : > { %9613 = vst [vmem:[#allocation67_spill] sm:$0xff] %v7294_v55  ;;  %v9627_v55 = vld [vmem:[#allocation25_spill] sm:$0xff] }
 0x2a9   : > { %v1104_v53 = vsel %vm1103_vm0, %v9627_v55, %v9626_v41  ;;  %v1272_v41 = vrot.slane %v1265_v25, 4  ;;  %v934_v55 = vadd.f32 %v930_v32, %v759_v0  ;;  %v1439_v32 = vsel %vm577_vm5, %v9638_v24, %v9637_v30 }
 0x2aa   : > { %v1108_v61 = vadd.f32 %v1104_v53, %v933_v26  ;;  %v1274_v53 = vrot.slane %v1266_v51, 4  ;;  %vm2079_vm5 = vcmask 392192  }
 0x2ab   : > { %v7316_v54 = vpop.permute.xlu1 %1607  ;;  %v1273_v11 = vsel %vm1270_vm14, %v1271_v44, %v1272_v41  ;;  %v1109_v22 = vadd.f32 %v1105_v50, %v934_v55  ;;  %v1457_v50 = vsel %vm1103_vm0, %v7217_v33, %v7195_v4  ;;  %vm1532_vm0 = vcmask 588800  }
 0x2ac   : > { %9623 = vst [vmem:[#allocation5_spill] sm:$0xff] %v7316_v54  ;;  %v7328_v54 = vpop.permute.xlu0 %1605  ;;  %v1278_v10 = vadd.f32 %v1273_v11, %v1108_v61  ;;  %v1275_v49 = vsel %vm1270_vm14, %v1272_v41, %v1274_v53  ;;  %v4932_v61 = vld [vmem:[%s9423_s2] ss:$0 sm:$0xff] }
 0x2ad   : > { %9630 = vst [vmem:[#allocation18_spill] sm:$0xff] %v7328_v54  ;;  %v1279_v44 = vadd.f32 %v1275_v49, %v1109_v22 }
 0x2ae   : > { %v1442_v26 = vadd.f32 %v1438_v20, %v1278_v10 }
 0x2af   : > { %v1443_v15 = vadd.f32 %v1439_v32, %v1279_v44  ;;  %v7380_v32 = vld [vmem:[#allocation3] sm:$0xf8] }
 0x2b0   : > { %v1491_v25 = vpop.permute.xlu0 %1490  ;;  %v1460_v0 = vadd.f32 %v1456_v21, %v1442_v26  ;;  %v7370_v26 = vld [vmem:[%s9424_s3 + $0x7] ss:$0 sm:$0xff]  ;;  %v1776_v28 = vmul.f32 %v9651_v27, %v7380_v32 }
 0x2b1   : > { %v1461_v41 = vadd.f32 %v1457_v50, %v1443_v15  ;;  %v1699_v44 = vmul.f32 %v7370_v26, %v7380_v32  ;;  %v9641_v15 = vld [vmem:[#allocation34_spill] sm:$0xff] }
 0x2b4   : > { %v1495_v51 = vpop.permute.xlu0 %1494 }
 0x2cf   : > { %v7330_v18 = vpop.permute.xlu1 %2318 }
 0x2d0   : > { %9631 = vst [vmem:[#allocation17_spill] sm:$0xff] %v7330_v18 }
 0x2d3   : > { %v7340_v42 = vpop.permute.xlu1 %2322 }
 0x2d4   : > { %9636 = vst [vmem:[#allocation16_spill] sm:$0xff] %v7340_v42 }
 0x2d7   : > { %v1489_v1 = vpop.permute.xlu1 %1488 }
 0x2d8   : > { %v1496_v5 = vsel %vm928_vm2, %v1489_v1, %v1491_v25 }
 0x2d9   : > { %v1500_v14 = vadd.f32 %v1496_v5, %v1460_v0 }
 0x2db   : > { %v7356_v55 = vadd.f32 %v4932_v61, %v1500_v14  ;;  %v1493_v11 = vpop.permute.xlu1 %1492 }
 0x2dc   : > { %v1497_v16 = vsel %vm928_vm2, %v1493_v11, %v1495_v51  ;;  %v1874_v51 = vmul.f32 %v9641_v15, %v7380_v32 }
 0x2dd   : > { %9639 = vst [vmem:[#allocation7_spill] sm:$0xff] %v7356_v55  ;;  %v1514_v36 = vrot.slane %v7356_v55, 7  ;;  %v1501_v20 = vadd.f32 %v1497_v16, %v1461_v41  ;;  %v9642_v16 = vld [vmem:[#allocation33_spill] sm:$0xff] }
 0x2df   : > { %v7360_v22 = vadd.f32 %v4932_v61, %v1501_v20  ;;  %1517 = vrot.lane.b32.xlu1 %v1514_v36, %s6127_s15  ;;  %v1705_v61 = vrot.slane %v1699_v44, 3 }
 0x2e1   : > { %9640 = vst [vmem:[#allocation22_spill] sm:$0xff] %v7360_v22  ;;  %v1515_v4 = vrot.slane %v7360_v22, 7 }
 0x2e3   : > { %1521 = vrot.lane.b32.xlu1 %v1515_v4, %s6127_s15  ;;  %v1516_v33 = vsel %vm1513_vm3, %v1514_v36, %v1515_v4 }
 0x2e4   : > { %1519 = vrot.lane.b32.xlu0 %v1516_v33, %s6127_s15 }
 0x351   : > { %v1518_v10 = vpop.permute.xlu1 %1517 }
 0x352   : > { %1527 = vst.msk [vmem:[#allocation3 + $0x18] sm:$0xfe] %vm1526_vm6, %v1518_v10  ;;  %vm2129_vm6 = vcmask 654336  }
 0x353   : > { %1529 = vst.msk [vmem:[#allocation3 + $0x20] sm:$0xfe] %vm1528_vm7, %v1518_v10  ;;  %vm2401_vm7 = vcmask 195584  }
 0x355   : > { %v1522_v53 = vpop.permute.xlu1 %1521 }
 0x356   : > { %1535 = vst.msk [vmem:[#allocation3 + $0x48] sm:$0x1] %vm1534_vm8, %v1522_v53  ;;  %v1520_v21 = vpop.permute.xlu0 %1519  ;;  %vm2500_vm8 = vcmask 457728  }
 0x357   : > { %1537 = vst.msk [vmem:[#allocation3 + $0x50] sm:$0x1] %vm1536_vm9, %v1522_v53  ;;  %v7430_v53 = vld [vmem:[#allocation3] sm:$0xc0] }
 0x358   : > { %1531 = vst.msk [vmem:[#allocation3 + $0x30] sm:$0xff] %vm1530_vm10, %v1520_v21  ;;  %v2049_v44 = vmul.f32 %v9642_v16, %v7430_v53  ;;  %v2017_v43 = vmul.f32 %v7551_v13, %v7430_v53 }
 0x359   : > { %1533 = vst.msk [vmem:[#allocation3 + $0x38] sm:$0xff] %vm1532_vm0, %v1520_v21  ;;  %v7372_v25 = vld [vmem:[#allocation3 + $0x18] sm:$0xff] }
 0x35a   : > { %v7374_v49 = vld [vmem:[#allocation3 + $0x20] sm:$0xff]  ;;  %v1631_v30 = vmul.f32 %v6933_v34, %v7372_v25  ;;  %v7386_v0 = vmul.f32 %v7370_v26, %v7372_v25  ;;  %v1599_v50 = vmul.f32 %v7143_v62, %v7372_v25  ;;  %v7403_v41 = vmul.f32 %v9641_v15, %v7372_v25 }
 0x35b   : > { %v1632_v24 = vmul.f32 %v6933_v34, %v7374_v49  ;;  %v1668_v1 = vmul.f32 %v6954_v3, %v7374_v49  ;;  %v7394_v34 = vld [vmem:[#allocation3 + $0x8] sm:$0xf8]  ;;  %v7399_v14 = vmul.f32 %v9641_v15, %v7374_v49  ;;  %v1600_v11 = vmul.f32 %v7143_v62, %v7374_v49 }
 0x35c   : > { %1641 = vrot.lane.b32.xlu1 %v1631_v30, %s9568_s24  ;;  %v9466_v5 = vrot.slane %v7386_v0, 3  ;;  %v1875_v3 = vmul.f32 %v9641_v15, %v7394_v34  ;;  %v7415_v36 = vmul.f32 %v9642_v16, %v7374_v49  ;;  %v9470_v33 = vrot.slane %v7403_v41, 3  ;;  %v7428_v62 = vld [vmem:[#allocation3 + $0x8] sm:$0xc0] }
 0x35d   : > { %1643 = vrot.lane.b32.xlu0 %v1632_v24, %s9568_s24  ;;  %v9469_v4 = vrot.slane %v7399_v14, 3  ;;  %v7424_v10 = vmul.f32 %v9642_v16, %v7372_v25  ;;  %v1886_v30 = vrot.slane %v1874_v51, 3  ;;  %v2050_v24 = vmul.f32 %v9642_v16, %v7428_v62 }
 0x35e   : > { %v1707_v20 = vsel %vm1046_vm13, %v1705_v61, %v9466_v5  ;;  %v1889_v21 = vrot.slane %v1875_v3, 3  ;;  %v7452_v5 = vld [vmem:[#allocation3 + $0x48] sm:$0xff]  ;;  %v7458_v55 = vld [vmem:[#allocation3 + $0x50] sm:$0xff]  ;;  %v7515_v59 = vmul.f32 %v9651_v27, %v7372_v25  ;;  %v7524_v38 = vmul.f32 %v9651_v27, %v7374_v49 }
 0x35f   : > { %v1888_v3 = vsel %vm1046_vm13, %v1886_v30, %v9470_v33  ;;  %v9647_v18 = vrot.slane %v7424_v10, 6  ;;  %v7498_v39 = vmul.f32 %v9650_v45, %v7452_v5  ;;  %v7564_v29 = vmul.f32 %v7551_v13, %v7372_v25 }
 0x360   : > { %1678 = vrot.lane.b32.xlu1 %v1668_v1, %s9568_s24  ;;  %v9643_v1 = vld [vmem:[#allocation36_spill] sm:$0xff]  ;;  %v9657_v47 = vrot.slane %v7524_v38, 3  ;;  %v1970_v37 = vmul.f32 %v7041_v58, %v7394_v34 }
 0x361   : > { %1609 = vrot.lane.b32.xlu0 %v1599_v50, %s9568_s24  ;;  %v7438_v50 = vmul.f32 %v9643_v1, %v7372_v25  ;;  %v7442_v61 = vmul.f32 %v9643_v1, %v7374_v49  ;;  %v2243_v22 = vmul.f32 %v9643_v1, %v7430_v53  ;;  %v2244_v30 = vmul.f32 %v9643_v1, %v7428_v62 }
 0x363   : > { %v2255_v33 = vrot.slane %v2243_v22, 6  ;;  %v2258_v40 = vrot.slane %v2244_v30, 6  ;;  %v7502_v30 = vmul.f32 %v9650_v45, %v7458_v55 }
 0x364   : > { %1611 = vrot.lane.b32.xlu1 %v1600_v11, %s9568_s24  ;;  %v1891_v11 = vsel %vm1046_vm13, %v1889_v21, %v9469_v4  ;;  %v2064_v21 = vrot.slane %v2050_v24, 6  ;;  %v2061_v4 = vrot.slane %v2049_v44, 6  ;;  %v7474_v44 = vld [vmem:[#allocation3 + $0x60] sm:$0x3] }
 0x365   : > { %1710 = vrot.lane.b32.xlu0 %v1707_v20, %s6127_s15  ;;  %v9645_v20 = vld [vmem:[#allocation40_spill] sm:$0xff]  ;;  %v3400_v31 = vmul.f32 %v7184_v23, %v7474_v44 }
 0x366   : > { %v7465_v51 = vmul.f32 %v9645_v20, %v7452_v5  ;;  %v2063_v54 = vsel %vm477_vm4, %v2061_v4, %v9647_v18  ;;  %v7478_v42 = vmul.f32 %v9645_v20, %v7458_v55  ;;  %v9648_v4 = vrot.slane %v7438_v50, 6 }
 0x368   : > { %1898 = vrot.lane.b32.xlu1 %v1891_v11, %s9644_s23  ;;  %v9646_v11 = vrot.slane %v7415_v36, 6  ;;  %v2257_v24 = vsel %vm477_vm4, %v2255_v33, %v9648_v4  ;;  %v9478_v46 = vrot.slane %v7465_v51, 2 }
 0x369   : > { %1896 = vrot.lane.b32.xlu0 %v1888_v3, %s9644_s23 }
 0x36a   : > { %v2066_v3 = vsel %vm477_vm4, %v2064_v21, %v9646_v11  ;;  %v3306_v21 = vmul.f32 %v9645_v20, %v7474_v44  ;;  %v7484_v11 = vld [vmem:[#allocation3 + $0x68] sm:$0x3] }
 0x36b   : > { %v3307_v18 = vmul.f32 %v9645_v20, %v7484_v11 }
 0x36c   : > { %2073 = vrot.lane.b32.xlu1 %v2066_v3, %s6126_s19  ;;  %v9649_v3 = vrot.slane %v7442_v61, 6  ;;  %v3320_v33 = vrot.slane %v3306_v21, 2 }
 0x36d   : > { %2071 = vrot.lane.b32.xlu0 %v2063_v54, %s6126_s19  ;;  %v3322_v4 = vrot.slane %v3307_v18, 2 }
 0x36e   : > { %v2260_v54 = vsel %vm477_vm4, %v2258_v40, %v9649_v3  ;;  %v3498_v40 = vmul.f32 %v9650_v45, %v7474_v44  ;;  %v3499_v3 = vmul.f32 %v9650_v45, %v7484_v11  ;;  %v3321_v22 = vsel %vm822_vm12, %v9478_v46, %v3320_v33 }
 0x370   : > { %2265 = vrot.lane.b32.xlu1 %v2257_v24, %s6129_s28  ;;  %v9652_v24 = vrot.slane %v7478_v42, 2  ;;  %v3512_v33 = vrot.slane %v3498_v40, 2  ;;  %v3514_v46 = vrot.slane %v3499_v3, 2  ;;  %v9655_v40 = vrot.slane %v7502_v30, 2 }
 0x371   : > { %2267 = vrot.lane.b32.xlu0 %v2260_v54, %s6129_s28 }
 0x372   : > { %v3323_v54 = vsel %vm822_vm12, %v9652_v24, %v3322_v4  ;;  %v1777_v4 = vmul.f32 %v9651_v27, %v7394_v34  ;;  %v9653_v24 = vld [vmem:[#allocation41_spill] sm:$0xff]  ;;  %v3515_v3 = vsel %vm822_vm12, %v9655_v40, %v3514_v46  ;;  %v7575_v40 = vmul.f32 %v7041_v58, %v7374_v49 }
 0x373   : > { %v7534_v21 = vmul.f32 %v9653_v24, %v7372_v25  ;;  %v7538_v18 = vmul.f32 %v9653_v24, %v7374_v49  ;;  %v1826_v46 = vmul.f32 %v9653_v24, %v7394_v34 }
 0x374   : > { %3328 = vrot.lane.b32.xlu1 %v3321_v22, %s6126_s19  ;;  %v9654_v22 = vrot.slane %v7498_v39, 2  ;;  %v1791_v6 = vrot.slane %v1777_v4, 3 }
 0x375   : > { %3330 = vrot.lane.b32.xlu0 %v3323_v54, %s6126_s19  ;;  %v9487_v4 = vrot.slane %v7538_v18, 3  ;;  %v1840_v17 = vrot.slane %v1826_v46, 3  ;;  %v7595_v46 = vmul.f32 %v7119_v7, %v7374_v49 }
 0x376   : > { %v3513_v54 = vsel %vm822_vm12, %v9654_v22, %v3512_v33  ;;  %v1825_v33 = vmul.f32 %v9653_v24, %v7380_v32  ;;  %v1788_v22 = vrot.slane %v1776_v28, 3  ;;  %v1793_v28 = vsel %vm1046_vm13, %v1791_v6, %v9657_v47 }
 0x377   : > { %v2023_v47 = vrot.slane %v2017_v43, 6  ;;  %v9488_v6 = vrot.slane %v7564_v29, 6  ;;  %v1842_v52 = vsel %vm1046_vm13, %v1840_v17, %v9487_v4  ;;  %v2145_v43 = vmul.f32 %v7119_v7, %v7430_v53 }
 0x378   : > { %3520 = vrot.lane.b32.xlu1 %v3513_v54, %s6129_s28  ;;  %v9656_v54 = vrot.slane %v7515_v59, 3  ;;  %v1837_v9 = vrot.slane %v1825_v33, 3  ;;  %v7591_v33 = vmul.f32 %v7119_v7, %v7372_v25  ;;  %v2146_v17 = vmul.f32 %v7119_v7, %v7428_v62 }
 0x379   : > { %3522 = vrot.lane.b32.xlu0 %v3515_v3, %s6129_s28  ;;  %v7617_v4 = vmul.f32 %v7133_v60, %v7374_v49 }
 0x37a   : > { %v1790_v3 = vsel %vm1046_vm13, %v1788_v22, %v9656_v54  ;;  %v9658_v22 = vrot.slane %v7534_v21, 3  ;;  %v2160_v48 = vrot.slane %v2146_v17, 6  ;;  %v9662_v17 = vrot.slane %v7595_v46, 6 }
 0x37c   : > { %1798 = vrot.lane.b32.xlu1 %v1790_v3, %s9644_s23  ;;  %v1839_v54 = vsel %vm1046_vm13, %v1837_v9, %v9658_v22  ;;  %v9491_v3 = vrot.slane %v7575_v40, 3  ;;  %v1982_v9 = vrot.slane %v1970_v37, 3  ;;  %v7608_v22 = vmul.f32 %v7133_v60, %v7372_v25 }
 0x37d   : > { %1800 = vrot.lane.b32.xlu0 %v1793_v28, %s9644_s23  ;;  %v2025_v28 = vsel %vm477_vm4, %v2023_v47, %v9488_v6  ;;  %v7622_v47 = vld [vmem:[%s9424_s3 + $0x2a] ss:$0 sm:$0xff]  ;;  %v2157_v6 = vrot.slane %v2145_v43, 6  ;;  %v7646_v37 = vmul.f32 %v7184_v23, %v7452_v5 }
 0x37e   : > { %9659 = vst [vmem:[#allocation21_spill] sm:$0xff] %v7622_v47  ;;  %v3271_v2 = vmul.f32 %v7622_v47, %v7474_v44 }
 0x37f   : > { %9663 = vst [vmem:[#allocation19_spill] sm:$0xff] %v7646_v37 }
 0x380   : > { %1847 = vrot.lane.b32.xlu1 %v1839_v54, %s9644_s23  ;;  %v1984_v54 = vsel %vm1046_vm13, %v1982_v9, %v9491_v3  ;;  %v2194_v9 = vmul.f32 %v7133_v60, %v7430_v53  ;;  %v2195_v3 = vmul.f32 %v7133_v60, %v7428_v62 }
 0x381   : > { %1849 = vrot.lane.b32.xlu0 %v1842_v52, %s9644_s23  ;;  %v7633_v52 = vmul.f32 %v7622_v47, %v7452_v5 }
 0x382   : > { %v2206_v19 = vrot.slane %v2194_v9, 6  ;;  %v2209_v47 = vrot.slane %v2195_v3, 6  ;;  %v9497_v3 = vrot.slane %v7646_v37, 2  ;;  %v7666_v9 = vmul.f32 %v7139_v12, %v7452_v5 }
 0x383   : > { %9660 = vst [vmem:[#allocation20_spill] sm:$0xff] %v7633_v52 }
 0x384   : > { %2028 = vrot.lane.b32.xlu1 %v2025_v28, %s6126_s19  ;;  %v9661_v28 = vrot.slane %v7591_v33, 6  ;;  %9666 = vst [vmem:[#allocation26_spill] sm:$0xff] %v7666_v9 }
 0x385   : > { %1992 = vrot.lane.b32.xlu0 %v1984_v54, %s9571_s29  ;;  %v2162_v54 = vsel %vm477_vm4, %v2160_v48, %v9662_v17  ;;  %v7655_v48 = vmul.f32 %v7184_v23, %v7458_v55  ;;  %v9664_v17 = vrot.slane %v7608_v22, 6 }
 0x386   : > { %v2159_v43 = vsel %vm477_vm4, %v2157_v6, %v9661_v28  ;;  %v3278_v28 = vrot.slane %v3271_v2, 2  ;;  %v3401_v2 = vmul.f32 %v7184_v23, %v7484_v11  ;;  %v3414_v6 = vrot.slane %v3400_v31, 2 }
 0x387   : > { %v2208_v56 = vsel %vm477_vm4, %v2206_v19, %v9664_v17  ;;  %v3449_v19 = vmul.f32 %v7139_v12, %v7474_v44  ;;  %v9667_v17 = vrot.slane %v7633_v52, 2  ;;  %v7688_v31 = vmul.f32 %v7193_v63, %v7372_v25 }
 0x388   : > { %2167 = vrot.lane.b32.xlu1 %v2159_v43, %s6129_s28  ;;  %v9665_v43 = vrot.slane %v7617_v4, 6  ;;  %v3415_v5 = vsel %vm822_vm12, %v9497_v3, %v3414_v6  ;;  %v3416_v44 = vrot.slane %v3401_v2, 2  ;;  %v1731_v6 = vmul.f32 %v7193_v63, %v7380_v32 }
 0x389   : > { %2169 = vrot.lane.b32.xlu0 %v2162_v54, %s6129_s28  ;;  %9668 = vst [vmem:[#allocation25_spill] sm:$0xff] %v7688_v31  ;;  %v7701_v3 = vmul.f32 %v7193_v63, %v7374_v49 }
 0x38a   : > { %v2211_v54 = vsel %vm477_vm4, %v2209_v47, %v9665_v43  ;;  %v3279_v47 = vsel %vm822_vm12, %v9667_v17, %v3278_v28  ;;  %v9498_v43 = vrot.slane %v7655_v48, 2  ;;  %v3463_v28 = vrot.slane %v3449_v19, 2 }
 0x38b   : > { %v3450_v17 = vmul.f32 %v7139_v12, %v7484_v11  ;;  %v7710_v11 = vmul.f32 %v7202_v35, %v7372_v25  ;;  %v7721_v19 = vmul.f32 %v7202_v35, %v7374_v49 }
 0x38c   : > { %2216 = vrot.lane.b32.xlu1 %v2208_v56, %s6129_s28  ;;  %v9499_v56 = vrot.slane %v7666_v9, 2  ;;  %v7732_v9 = vmul.f32 %v7267_v57, %v7372_v25  ;;  %v9673_v25 = vrot.slane %v7701_v3, 3 }
 0x38d   : > { %2218 = vrot.lane.b32.xlu0 %v2211_v54, %s6129_s28  ;;  %v7684_v54 = vmul.f32 %v7139_v12, %v7458_v55  ;;  %v3417_v55 = vsel %vm822_vm12, %v9498_v43, %v3416_v44  ;;  %9669 = vst [vmem:[#allocation24_spill] sm:$0xff] %v7710_v11  ;;  %v1743_v44 = vrot.slane %v1731_v6, 3  ;;  %v1732_v43 = vmul.f32 %v7193_v63, %v7394_v34 }
 0x38e   : > { %v9503_v6 = vrot.slane %v7710_v11, 3  ;;  %9671 = vst [vmem:[#allocation23_spill] sm:$0xff] %v7732_v9 }
 0x38f   : > { %v9502_v2 = vrot.slane %v7684_v54, 2 }
 0x390   : > { %3282 = vrot.lane.b32.xlu1 %v3279_v47, %s6126_s19  ;;  %v3464_v47 = vsel %vm822_vm12, %v9499_v56, %v3463_v28  ;;  %v1923_v28 = vmul.f32 %v7202_v35, %v7380_v32  ;;  %v1924_v32 = vmul.f32 %v7202_v35, %v7394_v34  ;;  %v1746_v56 = vrot.slane %v1732_v43, 3 }
 0x391   : > { %3422 = vrot.lane.b32.xlu0 %v3415_v5, %s6129_s28  ;;  %v3465_v5 = vrot.slane %v3450_v17, 2  ;;  %v9505_v34 = vrot.slane %v7732_v9, 6  ;;  %v7754_v43 = vmul.f32 %v7228_v8, %v7374_v49 }
 0x392   : > { %v1935_v37 = vrot.slane %v1923_v28, 3  ;;  %v2100_v28 = vmul.f32 %v7267_v57, %v7428_v62 }
 0x393   : > { %9674 = vst [vmem:[#allocation27_spill] sm:$0xff] %v7754_v43 }
 0x394   : > { %3424 = vrot.lane.b32.xlu1 %v3417_v55, %s6129_s28  ;;  %v3466_v55 = vsel %vm822_vm12, %v9502_v2, %v3465_v5  ;;  %v2099_v5 = vmul.f32 %v7267_v57, %v7430_v53  ;;  %v1938_v53 = vrot.slane %v1924_v32, 3  ;;  %v7760_v2 = vld [vmem:[#allocation3 + $0x30] sm:$0x7]  ;;  %v9509_v32 = vrot.slane %v7754_v43, 6 }
 0x395   : > { %3471 = vrot.lane.b32.xlu0 %v3464_v47, %s6129_s28  ;;  %v9670_v47 = vrot.slane %v7688_v31, 3 }
 0x397   : > { %v1745_v17 = vsel %vm1046_vm13, %v1743_v44, %v9670_v47  ;;  %v9504_v44 = vrot.slane %v7721_v19, 3  ;;  %v7743_v47 = vmul.f32 %v7267_v57, %v7374_v49 }
 0x398   : > { %3473 = vrot.lane.b32.xlu1 %v3466_v55, %s6129_s28  ;;  %v1748_v55 = vsel %vm1046_vm13, %v1746_v56, %v9673_v25  ;;  %v2111_v56 = vrot.slane %v2099_v5, 6  ;;  %v1701_v5 = vmul.f32 %v7370_v26, %v7760_v2 }
 0x399   : > { %1753 = vrot.lane.b32.xlu0 %v1745_v17, %s9644_s23  ;;  %9672 = vst [vmem:[#allocation28_spill] sm:$0xff] %v7743_v47  ;;  %v1937_v17 = vsel %vm1046_vm13, %v1935_v37, %v9503_v6  ;;  %v2294_v37 = vmul.f32 %v7228_v8, %v7428_v62  ;;  %v1940_v25 = vsel %vm1046_vm13, %v1938_v53, %v9504_v44  ;;  %v9508_v49 = vrot.slane %v7743_v47, 6  ;;  %v7776_v6 = vld [vmem:[#allocation3 + $0x38] sm:$0x3f] }
 0x39a   : > { %v2114_v62 = vrot.slane %v2100_v28, 6  ;;  %v7780_v53 = vld [vmem:[#allocation3 + $0x38] sm:$0x7]  ;;  %v1708_v8 = vrot.slane %v1701_v5, 3  ;;  %v7794_v28 = vld [vmem:[#allocation3 + $0x30] sm:$0x3f] }
 0x39b   : > { %v2306_v44 = vrot.slane %v2294_v37, 6  ;;  %v7908_v47 = vld [vmem:[#allocation3 + $0x38] sm:$0xfc] }
 0x39c   : > { %1755 = vrot.lane.b32.xlu1 %v1748_v55, %s9644_s23  ;;  %v2113_v55 = vsel %vm477_vm4, %v2111_v56, %v9505_v34  ;;  %v2116_v56 = vsel %vm477_vm4, %v2114_v62, %v9508_v49  ;;  %v2054_v34 = vmul.f32 %v9642_v16, %v7776_v6  ;;  %v9675_v62 = vrot.slane %v7403_v41, 3 }
 0x39d   : > { %1945 = vrot.lane.b32.xlu0 %v1937_v17, %s9571_s29  ;;  %v1878_v17 = vmul.f32 %v9641_v15, %v7760_v2  ;;  %v2308_v26 = vsel %vm477_vm4, %v2306_v44, %v9509_v32  ;;  %v9676_v44 = vrot.slane %v7386_v0, 3  ;;  %v7815_v0 = vld [vmem:[#allocation3 + $0x30] sm:$0xff] }
 0x39e   : > { %v2069_v37 = vrot.slane %v2054_v34, 6  ;;  %v9677_v34 = vrot.slane %v7415_v36, 6 }
 0x39f   : > { %v1892_v9 = vrot.slane %v1878_v17, 3  ;;  %v1709_v17 = vsel %vm1046_vm13, %v9676_v44, %v1708_v8  ;;  %v9678_v8 = vrot.slane %v7399_v14, 3 }
 0x3a0   : > { %1947 = vrot.lane.b32.xlu1 %v1940_v25, %s9571_s29  ;;  %v1879_v25 = vmul.f32 %v9641_v15, %v7780_v53  ;;  %v2053_v15 = vmul.f32 %v9642_v16, %v7794_v28  ;;  %v2070_v41 = vsel %vm477_vm4, %v9677_v34, %v2069_v37 }
 0x3a1   : > { %2121 = vrot.lane.b32.xlu0 %v2113_v55, %s6129_s28  ;;  %v2248_v55 = vmul.f32 %v9643_v1, %v7776_v6  ;;  %v1893_v49 = vsel %vm1046_vm13, %v9675_v62, %v1892_v9  ;;  %v7813_v9 = vld [vmem:[#allocation3 + $0x20] sm:$0xfe] }
 0x3a2   : > { %v1894_v5 = vrot.slane %v1879_v25, 3  ;;  %v2067_v16 = vrot.slane %v2053_v15, 6  ;;  %v9679_v62 = vld [vmem:[#allocation35_spill] sm:$0xff]  ;;  %v9681_v15 = vrot.slane %v7424_v10, 6  ;;  %v9682_v10 = vrot.slane %v7438_v50, 6 }
 0x3a3   : > { %v2422_v36 = vmul.f32 %v9679_v62, %v7813_v9  ;;  %v2423_v14 = vmul.f32 %v9679_v62, %v7815_v0 }
 0x3a4   : > { %2123 = vrot.lane.b32.xlu1 %v2116_v56, %s6129_s28  ;;  %v7806_v56 = vld [vmem:[#allocation3 + $0x38] sm:$0xff]  ;;  %v1895_v25 = vsel %vm1046_vm13, %v9678_v8, %v1894_v5  ;;  %v9680_v5 = vrot.slane %v7442_v61, 6  ;;  %v2068_v34 = vsel %vm477_vm4, %v9681_v15, %v2067_v16 }
 0x3a5   : > { %2316 = vrot.lane.b32.xlu0 %v2308_v26, %s9588_s18  ;;  %v2263_v26 = vrot.slane %v2248_v55, 6  ;;  %v2424_v44 = vmul.f32 %v9679_v62, %v7806_v56  ;;  %v7834_v55 = vld [vmem:[#allocation3 + $0x18] sm:$0xfe]  ;;  %v2436_v32 = vrot.slane %v2422_v36, 1  ;;  %v2434_v11 = vrot.slane %v2423_v14, 1 }
 0x3a6   : > { %v2421_v43 = vmul.f32 %v9679_v62, %v7834_v55 }
 0x3a8   : > { %1712 = vrot.lane.b32.xlu1 %v1709_v17, %s6127_s15  ;;  %v7824_v17 = vld [vmem:[#allocation3 + $0x48] sm:$0x1]  ;;  %v2433_v36 = vrot.slane %v2421_v43, 1 }
 0x3a9   : > { %1900 = vrot.lane.b32.xlu0 %v1893_v49, %s9644_s23  ;;  %v2247_v49 = vmul.f32 %v9643_v1, %v7794_v28  ;;  %v2425_v37 = vmul.f32 %v9679_v62, %v7824_v17  ;;  %v2264_v1 = vsel %vm477_vm4, %v9680_v5, %v2263_v26 }
 0x3ab   : > { %v2261_v8 = vrot.slane %v2247_v49, 6  ;;  %v2439_v61 = vrot.slane %v2425_v37, 1  ;;  %v7863_v37 = vld [vmem:[#allocation3 + $0x18] sm:$0x80] }
 0x3ac   : > { %1902 = vrot.lane.b32.xlu1 %v1895_v25, %s9644_s23  ;;  %v7844_v25 = vld [vmem:[#allocation3 + $0x50] sm:$0x1] }
 0x3ad   : > { %2077 = vrot.lane.b32.xlu0 %v2070_v41, %s6126_s19  ;;  %v2437_v41 = vrot.slane %v2424_v44, 1  ;;  %v2262_v16 = vsel %vm477_vm4, %v9682_v10, %v2261_v8  ;;  %v9683_v44 = vld [vmem:[#allocation38_spill] sm:$0xff]  ;;  %v2426_v5 = vmul.f32 %v9679_v62, %v7844_v25  ;;  %v2435_v62 = vsel %vm597_vm11, %v2433_v36, %v2434_v11  ;;  %v7870_v8 = vld [vmem:[#allocation3 + $0x48] sm:$0x7f] }
 0x3ae   : > { %v2619_v49 = vmul.f32 %v9683_v44, %v7806_v56  ;;  %v2617_v14 = vmul.f32 %v9683_v44, %v7813_v9  ;;  %v2621_v50 = vmul.f32 %v9683_v44, %v7844_v25 }
 0x3af   : > { %v2438_v26 = vsel %vm597_vm11, %v2436_v32, %v2437_v41  ;;  %v2440_v32 = vsel %vm597_vm11, %v2434_v11, %v2439_v61 }
 0x3b0   : > { %2075 = vrot.lane.b32.xlu1 %v2068_v34, %s6126_s19  ;;  %v2630_v15 = vrot.slane %v2619_v49, 1  ;;  %v2441_v34 = vrot.slane %v2426_v5, 1  ;;  %v2629_v61 = vrot.slane %v2617_v14, 1  ;;  %v2635_v10 = vrot.slane %v2621_v50, 1  ;;  %v9684_v5 = vld [vmem:[#allocation37_spill] sm:$0xff] }
 0x3b1   : > { %2271 = vrot.lane.b32.xlu0 %v2264_v1, %s6129_s28  ;;  %v4968_v1 = vld [vmem:[%s9424_s3 + $0x23] ss:$0 sm:$0xff]  ;;  %v3127_v36 = vmul.f32 %v9684_v5, %v7815_v0  ;;  %v3125_v14 = vmul.f32 %v9684_v5, %v7863_v37 }
 0x3b2   : > { %v2951_v43 = vmul.f32 %v4968_v1, %v7815_v0  ;;  %v2631_v44 = vsel %vm597_vm11, %v2629_v61, %v2630_v15  ;;  %v2442_v11 = vsel %vm597_vm11, %v2437_v41, %v2441_v34  ;;  %v2636_v50 = vsel %vm597_vm11, %v2630_v15, %v2635_v10  ;;  %v7898_v15 = vld [vmem:[#allocation3 + $0x30] sm:$0xfc] }
 0x3b3   : > { %v3129_v61 = vmul.f32 %v9684_v5, %v7870_v8  ;;  %v3137_v10 = vrot.slane %v3125_v14, 7 }
 0x3b4   : > { %2269 = vrot.lane.b32.xlu1 %v2262_v16, %s6129_s28  ;;  %v2952_v16 = vmul.f32 %v4968_v1, %v7870_v8  ;;  %v2957_v49 = vrot.slane %v2951_v43, 7  ;;  %v3138_v43 = vrot.slane %v3127_v36, 7 }
 0x3b5   : > { %2445 = vrot.lane.b32.xlu0 %v2438_v26, %s6121_s22  ;;  %v2950_v26 = vmul.f32 %v4968_v1, %v7863_v37  ;;  %v3128_v1 = vmul.f32 %v9684_v5, %v7806_v56  ;;  %v3143_v31 = vrot.slane %v3129_v61, 7 }
 0x3b6   : > { %v2959_v34 = vrot.slane %v2952_v16, 7 }
 0x3b8   : > { %2443 = vrot.lane.b32.xlu1 %v2435_v62, %s6121_s22  ;;  %v7884_v62 = vld [vmem:[#allocation3 + $0x20] sm:$0x80]  ;;  %v2960_v36 = vsel %vm1513_vm3, %v2957_v49, %v2959_v34  ;;  %v3494_v34 = vmul.f32 %v9650_v45, %v7898_v15 }
 0x3b9   : > { %2447 = vrot.lane.b32.xlu0 %v2440_v32, %s6121_s22  ;;  %v2956_v32 = vrot.slane %v2950_v26, 7  ;;  %v3126_v26 = vmul.f32 %v9684_v5, %v7884_v62 }
 0x3bb   : > { %v2958_v41 = vsel %vm1513_vm3, %v2956_v32, %v2957_v49  ;;  %v3139_v32 = vsel %vm1513_vm3, %v3137_v10, %v3138_v43  ;;  %v3303_v49 = vmul.f32 %v9645_v20, %v7908_v47  ;;  %v9687_v10 = vrot.slane %v7465_v51, 2 }
 0x3bc   : > { %2449 = vrot.lane.b32.xlu1 %v2442_v11, %s6121_s22  ;;  %v3141_v11 = vrot.slane %v3128_v1, 7  ;;  %v9688_v51 = vrot.slane %v7478_v42, 2  ;;  %v9691_v42 = vrot.slane %v7502_v30, 2  ;;  %v9694_v30 = vrot.slane %v7515_v59, 3 }
 0x3bd   : > { %2639 = vrot.lane.b32.xlu0 %v2631_v44, %s9685_s26  ;;  %v7892_v44 = vld [vmem:[#allocation3 + $0x50] sm:$0x7f]  ;;  %v9696_v59 = vrot.slane %v7534_v21, 3 }
 0x3be   : > { %9686 = vst [vmem:[#allocation30_spill] sm:$0xff] %v7892_v44  ;;  %v3130_v16 = vmul.f32 %v9684_v5, %v7892_v44  ;;  %v3144_v5 = vsel %vm1513_vm3, %v3138_v43, %v3143_v31  ;;  %v3317_v43 = vrot.slane %v3303_v49, 2 }
 0x3c0   : > { %2961 = vrot.lane.b32.xlu1 %v2958_v41, %s6127_s15  ;;  %v3140_v41 = vrot.slane %v3126_v26, 7  ;;  %v3145_v1 = vrot.slane %v3130_v16, 7  ;;  %v3495_v26 = vmul.f32 %v9650_v45, %v7908_v47  ;;  %v3506_v16 = vrot.slane %v3494_v34, 2 }
 0x3c1   : > { %2643 = vrot.lane.b32.xlu0 %v2636_v50, %s9685_s26  ;;  %v3302_v50 = vmul.f32 %v9645_v20, %v7898_v15  ;;  %v1781_v20 = vmul.f32 %v9651_v27, %v7780_v53  ;;  %v1780_v45 = vmul.f32 %v9651_v27, %v7760_v2  ;;  %v1829_v27 = vmul.f32 %v9653_v24, %v7760_v2 }
 0x3c2   : > { %v3142_v14 = vsel %vm1513_vm3, %v3140_v41, %v3141_v11  ;;  %v3146_v61 = vsel %vm1513_vm3, %v3141_v11, %v3145_v1  ;;  %v3509_v11 = vrot.slane %v3495_v26, 2  ;;  %v1830_v1 = vmul.f32 %v9653_v24, %v7780_v53 }
 0x3c3   : > { %v3314_v52 = vrot.slane %v3302_v50, 2  ;;  %v9689_v50 = vrot.slane %v7498_v39, 2  ;;  %v1974_v39 = vmul.f32 %v7041_v58, %v7780_v53 }
 0x3c4   : > { %3147 = vrot.lane.b32.xlu1 %v3139_v32, %s9644_s23  ;;  %v3511_v34 = vsel %vm822_vm12, %v3509_v11, %v9691_v42 }
 0x3c5   : > { %2963 = vrot.lane.b32.xlu0 %v2960_v36, %s6127_s15  ;;  %v3316_v31 = vsel %vm822_vm12, %v3314_v52, %v9687_v10  ;;  %v3319_v52 = vsel %vm822_vm12, %v3317_v43, %v9688_v51  ;;  %v3508_v41 = vsel %vm822_vm12, %v3506_v16, %v9689_v50  ;;  %v1794_v10 = vrot.slane %v1780_v45, 3 }
 0x3c6   : > { %v1843_v16 = vrot.slane %v1829_v27, 3  ;;  %v1988_v58 = vrot.slane %v1974_v39, 3  ;;  %v2019_v45 = vmul.f32 %v7551_v13, %v7794_v28  ;;  %v2149_v51 = vmul.f32 %v7119_v7, %v7794_v28 }
 0x3c7   : > { %v9697_v13 = vrot.slane %v7575_v40, 3  ;;  %v2198_v39 = vmul.f32 %v7133_v60, %v7794_v28  ;;  %v9698_v40 = vrot.slane %v7564_v29, 6 }
 0x3c8   : > { %3151 = vrot.lane.b32.xlu1 %v3144_v5, %s9644_s23  ;;  %v2163_v27 = vrot.slane %v2149_v51, 6 }
 0x3c9   : > { %3149 = vrot.lane.b32.xlu0 %v3142_v14, %s9644_s23  ;;  %v1796_v14 = vrot.slane %v1781_v20, 3  ;;  %v1795_v20 = vsel %vm1046_vm13, %v9694_v30, %v1794_v10 }
 0x3cc   : > { %3324 = vrot.lane.b32.xlu1 %v3316_v31, %s6126_s19  ;;  %v1845_v31 = vrot.slane %v1830_v1, 3  ;;  %v2026_v1 = vrot.slane %v2019_v45, 6 }
 0x3cd   : > { %3153 = vrot.lane.b32.xlu0 %v3146_v61, %s9644_s23  ;;  %v9692_v61 = vrot.slane %v7524_v38, 3  ;;  %v9695_v38 = vrot.slane %v7538_v18, 3  ;;  %v1844_v18 = vsel %vm1046_vm13, %v9696_v59, %v1843_v16  ;;  %v9700_v16 = vld [vmem:[#allocation44_spill] sm:$0xff] }
 0x3ce   : > { %v7928_v36 = vpop.permute.xlu1 %1641  ;;  %v2371_v30 = vmul.f32 %v9700_v16, %v7834_v55  ;;  %v2374_v59 = vmul.f32 %v9700_v16, %v7806_v56 }
 0x3cf   : > { %v7930_v32 = vpop.permute.xlu0 %1643  ;;  %v1797_v26 = vsel %vm1046_vm13, %v9692_v61, %v1796_v14  ;;  %v1846_v11 = vsel %vm1046_vm13, %v9695_v38, %v1845_v31  ;;  %v1989_v14 = vsel %vm1046_vm13, %v9697_v13, %v1988_v58  ;;  %v2027_v61 = vsel %vm477_vm4, %v9698_v40, %v2026_v1 }
 0x3d0   : > { %3516 = vrot.lane.b32.xlu1 %v3508_v41, %s6129_s28  ;;  %v2150_v41 = vmul.f32 %v7119_v7, %v7776_v6  ;;  %v2199_v7 = vmul.f32 %v7133_v60, %v7776_v6  ;;  %v2212_v31 = vrot.slane %v2198_v39, 6  ;;  %v2373_v58 = vmul.f32 %v9700_v16, %v7815_v0 }
 0x3d1   : > { %3326 = vrot.lane.b32.xlu0 %v3319_v52, %s6126_s19  ;;  %v9703_v1 = vrot.slane %v7617_v4, 6 }
 0x3d2   : > { %v7944_v5 = vpop.permute.xlu1 %1678  ;;  %v2214_v38 = vrot.slane %v2199_v7, 6  ;;  %v2384_v51 = vrot.slane %v2373_v58, 1  ;;  %v2387_v7 = vrot.slane %v2374_v59, 1 }
 0x3d3   : > { %v7946_v49 = vpop.permute.xlu0 %1609 }
 0x3d4   : > { %9690 = vst [vmem:[#allocation29_spill] sm:$0xff] %v7946_v49  ;;  %1804 = vrot.lane.b32.xlu1 %v1797_v26, %s9644_s23  ;;  %v9699_v26 = vrot.slane %v7591_v33, 6 }
 0x3d5   : > { %3518 = vrot.lane.b32.xlu0 %v3511_v34, %s6129_s28  ;;  %v2165_v34 = vrot.slane %v2150_v41, 6  ;;  %v2383_v41 = vrot.slane %v2371_v30, 1  ;;  %v2376_v30 = vmul.f32 %v9700_v16, %v7844_v25 }
 0x3d6   : > { %v7960_v43 = vpop.permute.xlu1 %1611  ;;  %v2164_v10 = vsel %vm477_vm4, %v9699_v26, %v2163_v27  ;;  %v2215_v27 = vsel %vm477_vm4, %v9703_v1, %v2214_v38 }
 0x3d7   : > { %9693 = vst [vmem:[#allocation32_spill] sm:$0xff] %v7960_v43  ;;  %v7962_v24 = vpop.permute.xlu0 %1710 }
 0x3d8   : > { %1853 = vrot.lane.b32.xlu1 %v1846_v11, %s9644_s23  ;;  %v9702_v11 = vrot.slane %v7608_v22, 6  ;;  %v4954_v22 = vld [vmem:[%s9424_s3 + $0x15] ss:$0 sm:$0xff] }
 0x3d9   : > { %1802 = vrot.lane.b32.xlu0 %v1795_v20, %s9644_s23  ;;  %v9701_v20 = vrot.slane %v7595_v46, 6  ;;  %v2372_v46 = vmul.f32 %v9700_v16, %v7813_v9  ;;  %v2339_v39 = vmul.f32 %v4954_v22, %v7815_v0 }
 0x3da   : > { %v7976_v52 = vpop.permute.xlu1 %1898  ;;  %v2213_v45 = vsel %vm477_vm4, %v9702_v11, %v2212_v31  ;;  %v9704_v11 = vld [vmem:[#allocation49_spill] sm:$0xff] }
 0x3db   : > { %v7978_v50 = vpop.permute.xlu0 %1896  ;;  %v2166_v33 = vsel %vm477_vm4, %v9701_v20, %v2165_v34  ;;  %v2385_v34 = vsel %vm597_vm11, %v2383_v41, %v2384_v51  ;;  %v2386_v26 = vrot.slane %v2372_v46, 1  ;;  %v2345_v58 = vrot.slane %v2339_v39, 1  ;;  %v9707_v39 = vld [vmem:[#allocation45_spill] sm:$0xff] }
 0x3dc   : > { %1996 = vrot.lane.b32.xlu1 %v1989_v14, %s9571_s29 }
 0x3dd   : > { %1851 = vrot.lane.b32.xlu0 %v1844_v18, %s9644_s23  ;;  %v2375_v18 = vmul.f32 %v9700_v16, %v7824_v17  ;;  %v2388_v20 = vsel %vm597_vm11, %v2386_v26, %v2387_v7  ;;  %v2391_v16 = vrot.slane %v2376_v30, 1  ;;  %v2566_v26 = vmul.f32 %v9707_v39, %v7813_v9 }
 0x3de   : > { %v7992_v42 = vpop.permute.xlu1 %2073 }
 0x3df   : > { %v7994_v21 = vpop.permute.xlu0 %2071  ;;  %v2389_v40 = vrot.slane %v2375_v18, 1  ;;  %v2517_v18 = vmul.f32 %v9704_v11, %v7813_v9 }
 0x3e0   : > { %2171 = vrot.lane.b32.xlu1 %v2164_v10, %s6129_s28  ;;  %v2338_v10 = vmul.f32 %v4954_v22, %v7834_v55 }
 0x3e1   : > { %2030 = vrot.lane.b32.xlu0 %v2027_v61, %s6126_s19  ;;  %v2340_v61 = vmul.f32 %v4954_v22, %v7824_v17 }
 0x3e2   : > { %v8010_v60 = vpop.permute.xlu1 %2265  ;;  %v2344_v59 = vrot.slane %v2338_v10, 1 }
 0x3e3   : > { %v8012_v29 = vpop.permute.xlu0 %2267  ;;  %v2347_v38 = vrot.slane %v2340_v61, 1  ;;  %v2531_v61 = vrot.slane %v2517_v18, 1 }
 0x3e4   : > { %2220 = vrot.lane.b32.xlu1 %v2213_v45, %s6129_s28  ;;  %v2519_v45 = vmul.f32 %v9704_v11, %v7806_v56  ;;  %v2346_v22 = vsel %vm597_vm11, %v2344_v59, %v2345_v58  ;;  %v2520_v59 = vmul.f32 %v9704_v11, %v7824_v17 }
 0x3e5   : > { %2173 = vrot.lane.b32.xlu0 %v2166_v33, %s6129_s28  ;;  %v2390_v33 = vsel %vm597_vm11, %v2384_v51, %v2389_v40  ;;  %v2518_v51 = vmul.f32 %v9704_v11, %v7815_v0  ;;  %v2348_v1 = vsel %vm597_vm11, %v2345_v58, %v2347_v38  ;;  %v2516_v40 = vmul.f32 %v9704_v11, %v7834_v55 }
 0x3e6   : > { %v8031_v13 = vpop.permute.xlu1 %3328  ;;  %v2392_v58 = vsel %vm597_vm11, %v2387_v7, %v2391_v16 }
 0x3e7   : > { %v8033_v14 = vpop.permute.xlu0 %3330  ;;  %v2528_v18 = vrot.slane %v2516_v40, 1  ;;  %v2569_v40 = vmul.f32 %v9707_v39, %v7824_v17 }
 0x3e8   : > { %2393 = vrot.lane.b32.xlu1 %v2385_v34, %s6121_s22  ;;  %v2568_v34 = vmul.f32 %v9707_v39, %v7806_v56 }
 0x3e9   : > { %2222 = vrot.lane.b32.xlu0 %v2215_v27, %s6129_s28  ;;  %v2532_v27 = vrot.slane %v2519_v45, 1  ;;  %v2567_v45 = vmul.f32 %v9707_v39, %v7815_v0 }
 0x3ea   : > { %v8044_v31 = vpop.permute.xlu1 %3520  ;;  %v2581_v38 = vrot.slane %v2568_v34, 1  ;;  %v2521_v34 = vmul.f32 %v9704_v11, %v7844_v25  ;;  %v2570_v11 = vmul.f32 %v9707_v39, %v7844_v25 }
 0x3eb   : > { %v8046_v4 = vpop.permute.xlu0 %3522  ;;  %v2578_v49 = vrot.slane %v2567_v45, 1 }
 0x3ec   : > { %2397 = vrot.lane.b32.xlu1 %v2390_v33, %s6121_s22  ;;  %v2533_v33 = vsel %vm597_vm11, %v2531_v61, %v2532_v27 }
 0x3ed   : > { %2395 = vrot.lane.b32.xlu0 %v2388_v20, %s6121_s22  ;;  %v2529_v20 = vrot.slane %v2518_v51, 1 }
 0x3ee   : > { %v8058_v41 = vpop.permute.xlu1 %1798 }
 0x3ef   : > { %9705 = vst [vmem:[#allocation31_spill] sm:$0xff] %v8058_v41  ;;  %v8060_v46 = vpop.permute.xlu0 %1800  ;;  %v2530_v51 = vsel %vm597_vm11, %v2528_v18, %v2529_v20  ;;  %v2536_v18 = vrot.slane %v2521_v34, 1  ;;  %v8106_v41 = vld [vmem:[#allocation3 + $0x20] sm:$0xf0] }
 0x3f0   : > { %9706 = vst [vmem:[#allocation34_spill] sm:$0xff] %v8060_v46  ;;  %2351 = vrot.lane.b32.xlu1 %v2348_v1, %s6121_s22  ;;  %v2565_v1 = vmul.f32 %v9707_v39, %v7834_v55 }
 0x3f1   : > { %2349 = vrot.lane.b32.xlu0 %v2346_v22, %s6121_s22  ;;  %v2580_v22 = vrot.slane %v2566_v26, 1 }
 0x3f2   : > { %v8074_v10 = vpop.permute.xlu1 %1847  ;;  %v2577_v26 = vrot.slane %v2565_v1, 1  ;;  %v8114_v1 = vld [vmem:[#allocation3 + $0x48] sm:$0xf] }
 0x3f3   : > { %9708 = vst [vmem:[#allocation33_spill] sm:$0xff] %v8074_v10  ;;  %v8076_v30 = vpop.permute.xlu0 %1849  ;;  %v2582_v61 = vsel %vm597_vm11, %v2580_v22, %v2581_v38  ;;  %v2583_v22 = vrot.slane %v2569_v40, 1 }
 0x3f4   : > { %9709 = vst [vmem:[#allocation36_spill] sm:$0xff] %v8076_v30  ;;  %2540 = vrot.lane.b32.xlu1 %v2533_v33, %s9685_s26  ;;  %v2579_v45 = vsel %vm597_vm11, %v2577_v26, %v2578_v49  ;;  %v2537_v26 = vsel %vm597_vm11, %v2532_v27, %v2536_v18  ;;  %v1904_v30 = vsel %vm753_vm1, %v7978_v50, %v7976_v52 }
 0x3f5   : > { %2399 = vrot.lane.b32.xlu0 %v2392_v58, %s6121_s22  ;;  %v2534_v58 = vrot.slane %v2520_v59, 1  ;;  %v2584_v40 = vsel %vm597_vm11, %v2578_v49, %v2583_v22  ;;  %v2080_v50 = vsel %vm2079_vm5, %v7994_v21, %v7992_v42 }
 0x3f6   : > { %v8088_v7 = vpop.permute.xlu1 %2028 }
 0x3f7   : > { %9710 = vst [vmem:[#allocation40_spill] sm:$0xff] %v8088_v7  ;;  %v8090_v16 = vpop.permute.xlu0 %1992  ;;  %v2535_v59 = vsel %vm597_vm11, %v2529_v20, %v2534_v58  ;;  %v2585_v20 = vrot.slane %v2570_v11, 1  ;;  %v8123_v58 = vld [vmem:[#allocation3 + $0x18] sm:$0xf0]  ;;  %v9719_v11 = vld [vmem:[#allocation53_spill] sm:$0xff] }
 0x3f8   : > { %9711 = vst [vmem:[#allocation39_spill] sm:$0xff] %v8090_v16  ;;  %2589 = vrot.lane.b32.xlu1 %v2582_v61, %s9685_s26  ;;  %v2905_v22 = vmul.f32 %v9719_v11, %v7806_v56 }
 0x3f9   : > { %2538 = vrot.lane.b32.xlu0 %v2530_v51, %s9685_s26  ;;  %v9714_v51 = vld [vmem:[#allocation46_spill] sm:$0xff] }
 0x3fa   : > { %v8100_v33 = vpop.permute.xlu1 %2167  ;;  %v2855_v46 = vmul.f32 %v9714_v51, %v7806_v56  ;;  %v2853_v34 = vmul.f32 %v9714_v51, %v8106_v41  ;;  %v2852_v27 = vmul.f32 %v9714_v51, %v8123_v58 }
 0x3fb   : > { %9712 = vst [vmem:[#allocation42_spill] sm:$0xff] %v8100_v33  ;;  %v8102_v43 = vpop.permute.xlu0 %2169 }
 0x3fc   : > { %9713 = vst [vmem:[#allocation41_spill] sm:$0xff] %v8102_v43  ;;  %2542 = vrot.lane.b32.xlu1 %v2535_v59, %s9685_s26  ;;  %v2868_v33 = vrot.slane %v2855_v46, 4  ;;  %v2856_v59 = vmul.f32 %v9714_v51, %v8114_v1  ;;  %v8132_v43 = vld [vmem:[#allocation3 + $0x50] sm:$0xf]  ;;  %v2867_v16 = vrot.slane %v2853_v34, 4  ;;  %v2586_v46 = vsel %vm597_vm11, %v2581_v38, %v2585_v20 }
 0x3fd   : > { %2587 = vrot.lane.b32.xlu0 %v2579_v45, %s9685_s26  ;;  %v2854_v45 = vmul.f32 %v9714_v51, %v7815_v0  ;;  %v2903_v34 = vmul.f32 %v9719_v11, %v8106_v41  ;;  %v2916_v20 = vrot.slane %v2905_v22, 4 }
 0x3fe   : > { %v8118_v39 = vpop.permute.xlu1 %2216 }
 0x3ff   : > { %9715 = vst [vmem:[#allocation35_spill] sm:$0xff] %v8118_v39  ;;  %v8120_v61 = vpop.permute.xlu0 %2218  ;;  %v2869_v39 = vsel %vm1270_vm14, %v2867_v16, %v2868_v33  ;;  %v2857_v16 = vmul.f32 %v9714_v51, %v8132_v43 }
 0x400   : > { %9716 = vst [vmem:[#allocation38_spill] sm:$0xff] %v8120_v61  ;;  %2591 = vrot.lane.b32.xlu1 %v2584_v40, %s9685_s26  ;;  %v2870_v61 = vrot.slane %v2856_v59, 4  ;;  %v2907_v40 = vmul.f32 %v9719_v11, %v8132_v43 }
 0x401   : > { %2544 = vrot.lane.b32.xlu0 %v2537_v26, %s9685_s26  ;;  %v2865_v26 = vrot.slane %v2854_v45, 4 }
 0x402   : > { %v8136_v18 = vpop.permute.xlu1 %3282  ;;  %v2921_v7 = vrot.slane %v2907_v40, 4 }
 0x403   : > { %9717 = vst [vmem:[#allocation37_spill] sm:$0xff] %v8136_v18  ;;  %v8138_v49 = vpop.permute.xlu0 %3422  ;;  %v2864_v18 = vrot.slane %v2852_v27, 4  ;;  %v2871_v59 = vsel %vm1270_vm14, %v2865_v26, %v2870_v61  ;;  %v2915_v27 = vrot.slane %v2903_v34, 4 }
 0x404   : > { %9718 = vst [vmem:[#allocation44_spill] sm:$0xff] %v8138_v49  ;;  %2876 = vrot.lane.b32.xlu1 %v2869_v39, %s9568_s24 }
 0x405   : > { %2593 = vrot.lane.b32.xlu0 %v2586_v46, %s9685_s26  ;;  %v2866_v45 = vsel %vm1270_vm14, %v2864_v18, %v2865_v26  ;;  %v9722_v46 = vld [vmem:[#allocation47_spill] sm:$0xff]  ;;  %v2917_v51 = vsel %vm1270_vm14, %v2915_v27, %v2916_v20  ;;  %v2922_v18 = vsel %vm1270_vm14, %v2916_v20, %v2921_v7  ;;  %v2872_v26 = vrot.slane %v2857_v16, 4 }
 0x406   : > { %v8150_v49 = vpop.permute.xlu1 %3424  ;;  %v3029_v39 = vmul.f32 %v9722_v46, %v7815_v0  ;;  %v3027_v11 = vmul.f32 %v9722_v46, %v7863_v37  ;;  %v3030_v61 = vmul.f32 %v9722_v46, %v7806_v56  ;;  %v3028_v34 = vmul.f32 %v9722_v46, %v7884_v62 }
 0x407   : > { %9720 = vst [vmem:[#allocation49_spill] sm:$0xff] %v8150_v49  ;;  %v8152_v38 = vpop.permute.xlu0 %3471  ;;  %v2873_v16 = vsel %vm1270_vm14, %v2868_v33, %v2872_v26 }
 0x408   : > { %9721 = vst [vmem:[#allocation45_spill] sm:$0xff] %v8152_v38  ;;  %2878 = vrot.lane.b32.xlu1 %v2871_v59, %s9568_s24  ;;  %v3040_v40 = vrot.slane %v3029_v39, 7  ;;  %v3043_v7 = vrot.slane %v3030_v61, 7 }
 0x409   : > { %2874 = vrot.lane.b32.xlu0 %v2866_v45, %s9568_s24  ;;  %v9725_v45 = vld [vmem:[#allocation56_spill] sm:$0xff] }
 0x40a   : > { %v8164_v22 = vpop.permute.xlu1 %3473  ;;  %v3078_v59 = vmul.f32 %v9725_v45, %v7815_v0  ;;  %v3076_v27 = vmul.f32 %v9725_v45, %v7863_v37  ;;  %v3079_v20 = vmul.f32 %v9725_v45, %v7806_v56  ;;  %v3042_v37 = vrot.slane %v3028_v34, 7 }
 0x40b   : > { %9723 = vst [vmem:[#allocation46_spill] sm:$0xff] %v8164_v22  ;;  %v8166_v38 = vpop.permute.xlu0 %1753  ;;  %v3081_v34 = vmul.f32 %v9725_v45, %v7892_v44 }
 0x40c   : > { %9724 = vst [vmem:[#allocation53_spill] sm:$0xff] %v8166_v38  ;;  %2929 = vrot.lane.b32.xlu1 %v2922_v18, %s9568_s24  ;;  %v3039_v38 = vrot.slane %v3027_v11, 7  ;;  %v3032_v18 = vmul.f32 %v9722_v46, %v7892_v44  ;;  %v3077_v11 = vmul.f32 %v9725_v45, %v7884_v62  ;;  %v3088_v61 = vrot.slane %v3076_v27, 7 }
 0x40d   : > { %2925 = vrot.lane.b32.xlu0 %v2917_v51, %s9568_s24  ;;  %v3089_v51 = vrot.slane %v3078_v59, 7  ;;  %v3044_v33 = vsel %vm1513_vm3, %v3042_v37, %v3043_v7 }
 0x40e   : > { %v8180_v22 = vpop.permute.xlu1 %1755  ;;  %v3041_v39 = vsel %vm1513_vm3, %v3039_v38, %v3040_v40  ;;  %v3092_v38 = vrot.slane %v3079_v20, 7  ;;  %v3047_v59 = vrot.slane %v3032_v18, 7  ;;  %v3091_v27 = vrot.slane %v3077_v11, 7 }
 0x40f   : > { %9726 = vst [vmem:[#allocation47_spill] sm:$0xff] %v8180_v22  ;;  %v8182_v49 = vpop.permute.xlu0 %1945  ;;  %v3090_v26 = vsel %vm1513_vm3, %v3088_v61, %v3089_v51  ;;  %v3397_v18 = vmul.f32 %v7184_v23, %v7908_v47  ;;  %v3096_v61 = vrot.slane %v3081_v34, 7 }
 0x410   : > { %9727 = vst [vmem:[#allocation56_spill] sm:$0xff] %v8182_v49  ;;  %3049 = vrot.lane.b32.xlu1 %v3041_v39, %s9644_s23  ;;  %v3093_v20 = vsel %vm1513_vm3, %v3091_v27, %v3092_v38  ;;  %v3048_v37 = vsel %vm1513_vm3, %v3043_v7, %v3047_v59  ;;  %v3446_v27 = vmul.f32 %v7139_v12, %v7908_v47  ;;  %v9733_v47 = vrot.slane %v7655_v48, 2 }
 0x411   : > { %2880 = vrot.lane.b32.xlu0 %v2873_v16, %s9568_s24  ;;  %v3031_v16 = vmul.f32 %v9722_v46, %v7870_v8  ;;  %v3097_v7 = vsel %vm1513_vm3, %v3092_v38, %v3096_v61 }
 0x412   : > { %v8194_v49 = vpop.permute.xlu1 %1947  ;;  %v3460_v38 = vrot.slane %v3446_v27, 2 }
 0x413   : > { %9728 = vst [vmem:[#allocation68_spill] sm:$0xff] %v8194_v49  ;;  %v8196_v22 = vpop.permute.xlu0 %2121  ;;  %v3045_v46 = vrot.slane %v3031_v16, 7  ;;  %v3080_v49 = vmul.f32 %v9725_v45, %v7870_v8  ;;  %v9732_v16 = vld [vmem:[#allocation48_spill] sm:$0xff] }
 0x414   : > { %9729 = vst [vmem:[#allocation69_spill] sm:$0xff] %v8196_v22  ;;  %3098 = vrot.lane.b32.xlu1 %v3090_v26, %s9644_s23  ;;  %v3411_v26 = vrot.slane %v3397_v18, 2  ;;  %v3223_v34 = vmul.f32 %v9732_v16, %v7806_v56  ;;  %v3221_v8 = vmul.f32 %v9732_v16, %v7884_v62 }
 0x415   : > { %3051 = vrot.lane.b32.xlu0 %v3044_v33, %s9644_s23  ;;  %v3094_v59 = vrot.slane %v3080_v49, 7 }
 0x416   : > { %v8206_v39 = vpop.permute.xlu1 %2123  ;;  %v3234_v18 = vrot.slane %v3223_v34, 7 }
 0x417   : > { %9730 = vst [vmem:[#allocation70_spill] sm:$0xff] %v8206_v39  ;;  %v8208_v22 = vpop.permute.xlu0 %2316  ;;  %v3095_v49 = vsel %vm1513_vm3, %v3089_v51, %v3094_v59  ;;  %v9734_v51 = vld [vmem:[#allocation21_spill] sm:$0xff]  ;;  %v9741_v39 = vld [vmem:[#allocation20_spill] sm:$0xff] }
 0x418   : > { %9731 = vst [vmem:[#allocation71_spill] sm:$0xff] %v8208_v22  ;;  %3055 = vrot.lane.b32.xlu1 %v3048_v37, %s9644_s23  ;;  %v3046_v22 = vsel %vm1513_vm3, %v3040_v40, %v3045_v46  ;;  %v3413_v40 = vsel %vm822_vm12, %v3411_v26, %v9733_v47  ;;  %v3225_v37 = vmul.f32 %v9732_v16, %v7892_v44  ;;  %v3233_v46 = vrot.slane %v3221_v8, 7 }
 0x419   : > { %3100 = vrot.lane.b32.xlu0 %v3093_v20, %s9644_s23  ;;  %v1928_v26 = vmul.f32 %v7202_v35, %v7780_v53  ;;  %v3269_v27 = vmul.f32 %v9734_v51, %v7898_v15  ;;  %v2104_v8 = vmul.f32 %v7267_v57, %v7776_v6  ;;  %v9742_v10 = vrot.slane %v9741_v39, 2  ;;  %v9743_v39 = vld [vmem:[#allocation28_spill] sm:$0xff] }
 0x41a   : > { %v8218_v11 = vpop.permute.xlu1 %1712  ;;  %v3235_v16 = vsel %vm1513_vm3, %v3233_v46, %v3234_v18  ;;  %v3239_v47 = vrot.slane %v3225_v37, 7  ;;  %v8268_v37 = vld [vmem:[#allocation3] sm:$0xff] }
 0x41b   : > { %v1901_v33 = vpop.permute.xlu0 %1900  ;;  %v3275_v51 = vrot.slane %v3269_v27, 2  ;;  %9737 = vst [vmem:[#allocation48_spill] sm:$0xff] %v8268_v37  ;;  %v8278_v27 = vld [vmem:[#allocation3 + $0x18] sm:$0xff] }
 0x41c   : > { %3104 = vrot.lane.b32.xlu1 %v3097_v7, %s9644_s23  ;;  %v9735_v7 = vrot.slane %v7684_v54, 2  ;;  %v9736_v54 = vrot.slane %v7701_v3, 3  ;;  %v3240_v46 = vsel %vm1513_vm3, %v3234_v18, %v3239_v47  ;;  %v2119_v18 = vrot.slane %v2104_v8, 6 }
 0x41d   : > { %3053 = vrot.lane.b32.xlu0 %v3046_v22, %s9644_s23  ;;  %v1736_v22 = vmul.f32 %v7193_v63, %v7780_v53  ;;  %v3277_v8 = vsel %vm822_vm12, %v3275_v51, %v9742_v10 }
 0x41e   : > { %v8230_v45 = vpop.permute.xlu1 %1902  ;;  %v3462_v59 = vsel %vm822_vm12, %v3460_v38, %v9735_v7  ;;  %v9738_v7 = vld [vmem:[#allocation43_spill] sm:$0xff] }
 0x41f   : > { %v8232_v20 = vpop.permute.xlu0 %2077  ;;  %v1751_v34 = vrot.slane %v1736_v22, 3  ;;  %v3396_v22 = vmul.f32 %v7184_v23, %v7898_v15  ;;  %v1586_v23 = vmul.f32 %v8278_v27, %v9738_v7 }
 0x420   : > { %3420 = vrot.lane.b32.xlu1 %v3413_v40, %s6129_s28 }
 0x421   : > { %3102 = vrot.lane.b32.xlu0 %v3095_v49, %s9644_s23  ;;  %v1943_v49 = vrot.slane %v1928_v26, 3  ;;  %v1752_v38 = vsel %vm1046_vm13, %v9736_v54, %v1751_v34  ;;  %v8274_v26 = vld [vmem:[#allocation3 + $0x8] sm:$0xff] }
 0x422   : > { %v8244_v61 = vpop.permute.xlu1 %2075  ;;  %9739 = vst [vmem:[#allocation21_spill] sm:$0xff] %v8274_v26  ;;  %v1585_v3 = vmul.f32 %v8274_v26, %v9738_v7  ;;  %v3408_v26 = vrot.slane %v3396_v22, 2 }
 0x423   : > { %v8246_v48 = vpop.permute.xlu0 %2271 }
 0x424   : > { %3469 = vrot.lane.b32.xlu1 %v3462_v59, %s6129_s28  ;;  %v1584_v59 = vmul.f32 %v8268_v37, %v9738_v7  ;;  %v1905_v37 = vsel %vm753_vm1, %v1901_v33, %v8230_v45  ;;  %v9744_v33 = vrot.slane %v9743_v39, 6 }
 0x425   : > { %3243 = vrot.lane.b32.xlu0 %v3235_v16, %s9571_s29  ;;  %v8282_v16 = vld [vmem:[#allocation3 + $0x20] sm:$0xff] }
 0x426   : > { %v2270_v40 = vpop.permute.xlu1 %2269  ;;  %v1587_v34 = vmul.f32 %v8282_v16, %v9738_v7  ;;  %v3445_v7 = vmul.f32 %v7139_v12, %v7898_v15  ;;  %v1716_v44 = vadd.f32 %v7962_v24, %v1584_v59  ;;  %v2120_v12 = vsel %vm477_vm4, %v9744_v33, %v2119_v18  ;;  %v9745_v15 = vld [vmem:[#allocation50_spill] sm:$0xff] }
 0x427   : > { %v8260_v53 = vpop.permute.xlu0 %2445 }
 0x428   : > { %1759 = vrot.lane.b32.xlu1 %v1752_v38, %s9644_s23  ;;  %v9740_v38 = vrot.slane %v7721_v19, 3  ;;  %v1717_v19 = vadd.f32 %v7962_v24, %v1585_v3  ;;  %v1719_v10 = vadd.f32 %v8218_v11, %v1587_v34  ;;  %v2768_v24 = vmul.f32 %v9745_v15, %v8123_v58 }
 0x429   : > { %3247 = vrot.lane.b32.xlu0 %v3240_v46, %s9571_s29  ;;  %v1910_v22 = vadd.f32 %v1904_v30, %v1716_v44  ;;  %v2081_v3 = vsel %vm2079_vm5, %v8244_v61, %v8232_v20  ;;  %v3457_v18 = vrot.slane %v3445_v7, 2  ;;  %v2769_v44 = vmul.f32 %v9745_v15, %v8106_v41 }
 0x42a   : > { %v2444_v47 = vpop.permute.xlu1 %2443  ;;  %v1944_v46 = vsel %vm1046_vm13, %v9740_v38, %v1943_v49  ;;  %v1718_v49 = vadd.f32 %v8218_v11, %v1586_v23  ;;  %v1911_v51 = vadd.f32 %v7976_v52, %v1717_v19  ;;  %v1913_v42 = vadd.f32 %v8230_v45, %v1719_v10  ;;  %v9746_v11 = vld [vmem:[#allocation19_spill] sm:$0xff]  ;;  %v9748_v10 = vld [vmem:[#allocation26_spill] sm:$0xff] }
 0x42b   : > { %v8286_v54 = vpop.permute.xlu0 %2447  ;;  %v9747_v34 = vrot.slane %v9746_v11, 2  ;;  %v2770_v52 = vmul.f32 %v9745_v15, %v7815_v0  ;;  %v2273_v30 = vsel %vm2129_vm6, %v8010_v60, %v8012_v29  ;;  %v2771_v20 = vmul.f32 %v9745_v15, %v7806_v56 }
 0x42c   : > { %1951 = vrot.lane.b32.xlu1 %v1944_v46, %s9571_s29  ;;  %v1912_v59 = vadd.f32 %v1905_v37, %v1718_v49  ;;  %v2087_v39 = vadd.f32 %v2080_v50, %v1911_v51  ;;  %v2089_v45 = vadd.f32 %v2081_v3, %v1913_v42  ;;  %v2086_v37 = vadd.f32 %v7994_v21, %v1910_v22 }
 0x42d   : > { %3280 = vrot.lane.b32.xlu0 %v3277_v8, %s6126_s19  ;;  %v3410_v46 = vsel %vm822_vm12, %v3408_v26, %v9747_v34  ;;  %v1735_v8 = vmul.f32 %v7193_v63, %v7760_v2  ;;  %v2274_v63 = vsel %vm2129_vm6, %v2270_v40, %v8246_v48  ;;  %v2780_v7 = vrot.slane %v2768_v24, 4 }
 0x42e   : > { %v2450_v23 = vpop.permute.xlu1 %2449  ;;  %v2088_v26 = vadd.f32 %v8244_v61, %v1912_v59  ;;  %v2773_v50 = vmul.f32 %v9745_v15, %v8132_v43  ;;  %v2451_v60 = vsel %vm2401_vm7, %v2444_v47, %v8260_v53  ;;  %v9749_v33 = vrot.slane %v9748_v10, 2  ;;  %v9750_v53 = vld [vmem:[#allocation51_spill] sm:$0xff] }
 0x42f   : > { %v2640_v38 = vpop.permute.xlu0 %2639  ;;  %v1927_v51 = vmul.f32 %v7202_v35, %v7760_v2  ;;  %v2279_v21 = vadd.f32 %v2273_v30, %v2086_v37  ;;  %v2280_v61 = vadd.f32 %v8012_v29, %v2087_v39  ;;  %v2452_v22 = vsel %vm2401_vm7, %v8286_v54, %v2450_v23  ;;  %v9752_v39 = vld [vmem:[#allocation25_spill] sm:$0xff] }
 0x430   : > { %2127 = vrot.lane.b32.xlu1 %v2120_v12, %s6129_s28  ;;  %v3459_v40 = vsel %vm822_vm12, %v3457_v18, %v9749_v33  ;;  %v1749_v12 = vrot.slane %v1735_v8, 3  ;;  %v2281_v24 = vadd.f32 %v2274_v63, %v2088_v26  ;;  %v2282_v59 = vadd.f32 %v8246_v48, %v2089_v45 }
 0x431   : > { %3418 = vrot.lane.b32.xlu0 %v3410_v46, %s6129_s28  ;;  %v2647_v3 = vsel %vm2500_vm8, %v2640_v38, %v9750_v53  ;;  %v2781_v42 = vrot.slane %v2770_v52, 4  ;;  %v2772_v11 = vmul.f32 %v9745_v15, %v8114_v1  ;;  %v2457_v34 = vadd.f32 %v2444_v47, %v2279_v21  ;;  %v9751_v46 = vld [vmem:[#allocation54_spill] sm:$0xff] }
 0x432   : > { %v2962_v19 = vpop.permute.xlu1 %2961  ;;  %v2458_v35 = vadd.f32 %v2451_v60, %v2280_v61  ;;  %v2784_v2 = vrot.slane %v2771_v20, 4  ;;  %v2460_v23 = vadd.f32 %v2452_v22, %v2282_v59  ;;  %v9753_v30 = vrot.slane %v9752_v39, 3 }
 0x433   : > { %v2644_v49 = vpop.permute.xlu0 %2643  ;;  %v1941_v45 = vrot.slane %v1927_v51, 3  ;;  %v2103_v52 = vmul.f32 %v7267_v57, %v7794_v28  ;;  %v2459_v63 = vadd.f32 %v8286_v54, %v2281_v24  ;;  %v2653_v15 = vadd.f32 %v2640_v38, %v2457_v34  ;;  %v9754_v51 = vld [vmem:[#allocation24_spill] sm:$0xff] }
 0x434   : > { %v2648_v29 = vsel %vm2500_vm8, %v2644_v49, %v9751_v46  ;;  %v1750_v48 = vsel %vm1046_vm13, %v9753_v30, %v1749_v12  ;;  %v2654_v47 = vadd.f32 %v2647_v3, %v2458_v35  ;;  %v2788_v37 = vrot.slane %v2773_v50, 4  ;;  %v9756_v54 = vld [vmem:[#allocation8_spill] sm:$0xff] }
 0x435   : > { %3467 = vrot.lane.b32.xlu0 %v3459_v40, %s6129_s28  ;;  %v2783_v20 = vrot.slane %v2769_v44, 4  ;;  %v2656_v26 = vadd.f32 %v2648_v29, %v2460_v23  ;;  %v2786_v60 = vrot.slane %v2772_v11, 4  ;;  %v2782_v10 = vsel %vm1270_vm14, %v2780_v7, %v2781_v42  ;;  %v9757_v11 = vld [vmem:[#allocation23_spill] sm:$0xff] }
 0x436   : > { %v3148_v18 = vpop.permute.xlu1 %3147  ;;  %v2655_v33 = vadd.f32 %v2644_v49, %v2459_v63  ;;  %v9755_v61 = vrot.slane %v9754_v51, 3  ;;  %v2117_v28 = vrot.slane %v2103_v52, 6  ;;  %v2298_v38 = vmul.f32 %v9756_v54, %v7776_v6  ;;  %v9759_v63 = vld [vmem:[#allocation27_spill] sm:$0xff] }
 0x437   : > { %v2964_v8 = vpop.permute.xlu0 %2963  ;;  %v2785_v12 = vsel %vm1270_vm14, %v2783_v20, %v2784_v2  ;;  %v2794_v50 = vadd.f32 %v2782_v10, %v2653_v15  ;;  %v2789_v44 = vsel %vm1270_vm14, %v2784_v2, %v2788_v37  ;;  %v2787_v7 = vsel %vm1270_vm14, %v2781_v42, %v2786_v60 }
 0x438   : > { %v1942_v57 = vsel %vm1046_vm13, %v9755_v61, %v1941_v45  ;;  %v2795_v24 = vadd.f32 %v2785_v12, %v2654_v47  ;;  %v2797_v49 = vadd.f32 %v2789_v44, %v2656_v26  ;;  %v2796_v22 = vadd.f32 %v2787_v7, %v2655_v33  ;;  %v9761_v12 = vld [vmem:[#allocation52_spill] sm:$0xff] }
 0x439   : > { %1757 = vrot.lane.b32.xlu0 %v1750_v48, %s9644_s23  ;;  %v9758_v34 = vrot.slane %v9757_v11, 6  ;;  %v2312_v46 = vrot.slane %v2298_v38, 6  ;;  %v2967_v6 = vadd.f32 %v2962_v19, %v2794_v50  ;;  %v9760_v15 = vrot.slane %v9759_v63, 6  ;;  %v8441_v63 = vld [vmem:[#allocation3 + $0x30] sm:$0xff] }
 0x43a   : > { %v3152_v40 = vpop.permute.xlu1 %3151  ;;  %v2968_v29 = vadd.f32 %v2962_v19, %v2795_v24  ;;  %v2970_v2 = vadd.f32 %v2964_v8, %v2797_v49  ;;  %v2969_v39 = vadd.f32 %v2964_v8, %v2796_v22  ;;  %vm1613_vm13 = vcmask 261120  }
 0x43b   : > { %v3150_v21 = vpop.permute.xlu0 %3149  ;;  %v2118_v35 = vsel %vm477_vm4, %v9758_v34, %v2117_v28  ;;  %v2313_v47 = vsel %vm477_vm4, %v9760_v15, %v2312_v46  ;;  %v3333_v19 = vsel %vm2079_vm5, %v8031_v13, %v8033_v14  ;;  %v1646_v10 = vsel %vm1613_vm13, %v7928_v36, %v7930_v32  ;;  %v9762_v14 = vld [vmem:[#allocation14_spill] sm:$0xff] }
 0x43c   : > { %v3155_v3 = vsel %vm753_vm1, %v3148_v18, %v3150_v21  ;;  %v3162_v42 = vadd.f32 %v3150_v21, %v2968_v29  ;;  %v1560_v51 = vmul.f32 %v8278_v27, %v9761_v12  ;;  %v2473_v28 = vmul.f32 %v9762_v14, %v7806_v56  ;;  %v9763_v36 = vld [vmem:[#allocation58_spill] sm:$0xff] }
 0x43d   : > { %1949 = vrot.lane.b32.xlu0 %v1942_v57, %s9571_s29  ;;  %v3161_v30 = vadd.f32 %v3155_v3, %v2967_v6  ;;  %v2472_v54 = vmul.f32 %v9762_v14, %v7815_v0  ;;  %v1573_v50 = vmul.f32 %v8278_v27, %v9763_v36  ;;  %v2470_v7 = vmul.f32 %v9762_v14, %v7834_v55 }
 0x43e   : > { %v3325_v59 = vpop.permute.xlu1 %3324  ;;  %v1653_v38 = vadd.f32 %v1646_v10, %v1560_v51  ;;  %v3525_v56 = vsel %vm2129_vm6, %v8044_v31, %v8046_v4  ;;  %v2475_v22 = vmul.f32 %v9762_v14, %v7844_v25  ;;  %v2486_v11 = vrot.slane %v2473_v28, 1 }
 0x43f   : > { %v3154_v53 = vpop.permute.xlu0 %3153  ;;  %v3338_v8 = vadd.f32 %v3325_v59, %v3161_v30  ;;  %v1574_v55 = vmul.f32 %v8282_v16, %v9763_v36  ;;  %v2483_v31 = vrot.slane %v2472_v54, 1  ;;  %v2474_v34 = vmul.f32 %v9762_v14, %v7824_v17  ;;  %v9765_v17 = vld [vmem:[#allocation9_spill] sm:$0xff] }
 0x440   : > { %v3156_v23 = vsel %vm753_vm1, %v3152_v40, %v3154_v53  ;;  %v3164_v52 = vadd.f32 %v3154_v53, %v2970_v2  ;;  %v2490_v30 = vrot.slane %v2475_v22, 1  ;;  %v2809_v15 = vmul.f32 %v8441_v63, %v9765_v17  ;;  %v9767_v22 = vld [vmem:[#allocation60_spill] sm:$0xff] }
 0x441   : > { %2125 = vrot.lane.b32.xlu0 %v2118_v35, %s6129_s28  ;;  %v3163_v37 = vadd.f32 %v3156_v23, %v2969_v39  ;;  %v2482_v23 = vrot.slane %v2470_v7, 1  ;;  %vm3860_vm4 = vcmask 523264  }
 0x442   : > { %v3517_v48 = vpop.permute.xlu1 %3516  ;;  %v3341_v33 = vadd.f32 %v3333_v19, %v3164_v52  ;;  %v2491_v10 = vsel %vm597_vm11, %v2486_v11, %v2490_v30  ;;  %v2820_v51 = vrot.slane %v2809_v15, 4 }
 0x443   : > { %v3327_v45 = vpop.permute.xlu0 %3326  ;;  %v3340_v61 = vadd.f32 %v8031_v13, %v3163_v37  ;;  %v2471_v13 = vmul.f32 %v9762_v14, %v7813_v9  ;;  %v2484_v52 = vsel %vm597_vm11, %v2482_v23, %v2483_v31  ;;  %v6094_v23 = vld [vmem:[#allocation3 + $0x48] sm:$0x7f] }
 0x444   : > { %v3332_v18 = vsel %vm2079_vm5, %v3325_v59, %v3327_v45  ;;  %v3533_v49 = vadd.f32 %v8046_v4, %v3341_v33  ;;  %v9764_v59 = vld [vmem:[#allocation13_spill] sm:$0xff]  ;;  %v1690_v4 = vadd.f32 %v7944_v5, %v1573_v50  ;;  %v9766_v50 = vld [vmem:[#allocation64_spill] sm:$0xff] }
 0x445   : > { %v3339_v20 = vadd.f32 %v3332_v18, %v3162_v42  ;;  %2320 = vrot.lane.b32.xlu0 %v2313_v47, %s9588_s18  ;;  %v1683_v53 = vsel %vm1613_vm13, %v7944_v5, %v9764_v59  ;;  %v3532_v3 = vadd.f32 %v3525_v56, %v3340_v61  ;;  %v2485_v46 = vrot.slane %v2471_v13, 1  ;;  %v9768_v59 = vld [vmem:[#allocation57_spill] sm:$0xff] }
 0x446   : > { %v8391_v26 = vpop.permute.xlu1 %1804  ;;  %v1691_v6 = vadd.f32 %v1683_v53, %v1574_v55  ;;  %v2488_v18 = vrot.slane %v2474_v34, 1  ;;  %v2811_v61 = vmul.f32 %v9765_v17, %v8114_v1  ;;  %v1682_v53 = vsel %vm1613_vm13, %v9768_v59, %v9767_v22  ;;  %v6096_v22 = vld [vmem:[#allocation3 + $0x50] sm:$0x7f] }
 0x447   : > { %v3519_v60 = vpop.permute.xlu0 %3518  ;;  %v2487_v42 = vsel %vm597_vm11, %v2485_v46, %v2486_v11  ;;  %v2983_v11 = vmul.f32 %v9766_v50, %v7884_v62 }
 0x448   : > { %v3524_v40 = vsel %vm2129_vm6, %v3517_v48, %v3519_v60  ;;  %v3531_v21 = vadd.f32 %v3519_v60, %v3339_v20  ;;  %v8435_v48 = vld [vmem:[#allocation3 + $0x38] sm:$0xff]  ;;  %v2808_v20 = vmul.f32 %v9765_v17, %v8106_v41  ;;  %v2807_v60 = vmul.f32 %v9765_v17, %v8123_v58 }
 0x449   : > { %v3530_v57 = vadd.f32 %v3524_v40, %v3338_v8  ;;  %v2810_v5 = vmul.f32 %v8435_v48, %v9765_v17  ;;  %v2812_v40 = vmul.f32 %v9765_v17, %v8132_v43  ;;  %v2997_v15 = vrot.slane %v2983_v11, 7 }
 0x44a   : > { %3606 = vrot.lane.b32.xlu1 %v3531_v21, %s9644_s23  ;;  %v1854_v24 = vpop.permute.xlu1 %1853  ;;  %v2489_v21 = vsel %vm597_vm11, %v2483_v31, %v2488_v18  ;;  %v2822_v28 = vrot.slane %v2808_v20, 4  ;;  %vm4046_vm11 = vcmask 1048064  }
 0x44b   : > { %3604 = vrot.lane.b32.xlu0 %v3530_v57, %s9644_s23  ;;  %v1803_v44 = vpop.permute.xlu0 %1802  ;;  %v1864_v45 = vadd.f32 %v1854_v24, %v1691_v6  ;;  %v2823_v33 = vrot.slane %v2810_v5, 4  ;;  %v2827_v7 = vrot.slane %v2812_v40, 4  ;;  %v9771_v5 = vld [vmem:[#allocation48_spill] sm:$0xff]  ;;  %v6095_v40 = vld [vmem:[#allocation3 + $0x20] sm:$0x80] }
 0x44c   : > { %v1807_v0 = vsel %vm753_vm1, %v1803_v44, %v8391_v26 }
 0x44d   : > { %v1814_v9 = vadd.f32 %v1807_v0, %v1653_v38  ;;  %v2819_v38 = vrot.slane %v2807_v60, 4  ;;  %v2824_v13 = vsel %vm1270_vm14, %v2822_v28, %v2823_v33  ;;  %v2825_v0 = vrot.slane %v2811_v61, 4  ;;  %v9773_v61 = vld [vmem:[#allocation62_spill] sm:$0xff] }
 0x44e   : > { %3610 = vrot.lane.b32.xlu1 %v3533_v49, %s9644_s23  ;;  %v8429_v35 = vpop.permute.xlu1 %1996  ;;  %v2984_v49 = vmul.f32 %v8441_v63, %v9766_v50  ;;  %v2828_v6 = vsel %vm1270_vm14, %v2823_v33, %v2827_v7  ;;  %v8510_v28 = vmul.f32 %v8435_v48, %v9773_v61 }
 0x44f   : > { %3608 = vrot.lane.b32.xlu0 %v3532_v3, %s9644_s23  ;;  %v1852_v25 = vpop.permute.xlu0 %1851  ;;  %v2008_v29 = vadd.f32 %v8429_v35, %v1814_v9  ;;  %v2821_v56 = vsel %vm1270_vm14, %v2819_v38, %v2820_v51  ;;  %v2826_v30 = vsel %vm1270_vm14, %v2820_v51, %v2825_v0 }
 0x450   : > { %v1856_v2 = vsel %vm753_vm1, %v1852_v25, %v1854_v24  ;;  %v2985_v24 = vmul.f32 %v8435_v48, %v9766_v50  ;;  %v2995_v17 = vrot.slane %v2984_v49, 7 }
 0x451   : > { %v1863_v39 = vadd.f32 %v1856_v2, %v1690_v4  ;;  %v6093_v4 = vld [vmem:[#allocation3 + $0x18] sm:$0x80] }
 0x452   : > { %2494 = vrot.lane.b32.xlu1 %v2487_v42, %s9685_s26  ;;  %v2172_v47 = vpop.permute.xlu1 %2171  ;;  %v2998_v34 = vrot.slane %v2985_v24, 7  ;;  %v2982_v25 = vmul.f32 %v6093_v4, %v9766_v50  ;;  %v9770_v42 = vld [vmem:[#allocation21_spill] sm:$0xff] }
 0x453   : > { %2492 = vrot.lane.b32.xlu0 %v2484_v52, %s9685_s26  ;;  %v2031_v37 = vpop.permute.xlu0 %2030  ;;  %v1572_v62 = vmul.f32 %v9770_v42, %v9763_v36 }
 0x454   : > { %v2036_v19 = vadd.f32 %v2031_v37, %v1863_v39  ;;  %v2037_v8 = vadd.f32 %v2031_v37, %v1864_v45  ;;  %v2986_v39 = vmul.f32 %v6094_v23, %v9766_v50  ;;  %v1571_v45 = vmul.f32 %v9771_v5, %v9763_v36 }
 0x455   : > { %v1689_v20 = vadd.f32 %v1682_v53, %v1572_v62  ;;  %v2994_v60 = vrot.slane %v2982_v25, 7 }
 0x456   : > { %2498 = vrot.lane.b32.xlu1 %v2491_v10, %s9685_s26  ;;  %v2221_v57 = vpop.permute.xlu1 %2220  ;;  %v2999_v10 = vsel %vm1513_vm3, %v2997_v15, %v2998_v34  ;;  %v3000_v36 = vrot.slane %v2986_v39, 7  ;;  %v1688_v7 = vadd.f32 %v9768_v59, %v1571_v45  ;;  %v9777_v45 = vld [vmem:[#allocation66_spill] sm:$0xff] }
 0x457   : > { %2496 = vrot.lane.b32.xlu0 %v2489_v21, %s9685_s26  ;;  %v8458_v14 = vpop.permute.xlu0 %2173  ;;  %v2996_v51 = vsel %vm1513_vm3, %v2994_v60, %v2995_v17 }
 0x458   : > { %v2176_v54 = vsel %vm2129_vm6, %v2172_v47, %v8458_v14  ;;  %v9772_v47 = vld [vmem:[#allocation12_spill] sm:$0xff]  ;;  %v3001_v11 = vsel %vm1513_vm3, %v2995_v17, %v3000_v36  ;;  %v6097_v17 = vld [vmem:[#allocation3 + $0x38] sm:$0xfc] }
 0x459   : > { %v8464_v44 = vadd.f32 %v2176_v54, %v2008_v29  ;;  %v9769_v29 = vld [vmem:[#allocation30_spill] sm:$0xff]  ;;  %v8496_v37 = vmul.f32 %v8435_v48, %v9772_v47  ;;  %v3175_v21 = vmul.f32 %v6095_v40, %v9772_v47  ;;  %v3176_v54 = vmul.f32 %v8441_v63, %v9772_v47  ;;  %v6099_v40 = vld [vmem:[#allocation3 + $0x30] sm:$0xfc] }
 0x45a   : > { %2831 = vrot.lane.b32.xlu1 %v2824_v13, %s9568_s24  ;;  %v8474_v9 = vpop.permute.xlu1 %2393  ;;  %v2987_v2 = vmul.f32 %v9766_v50, %v9769_v29  ;;  %v3174_v13 = vmul.f32 %v6093_v4, %v9772_v47  ;;  %v3179_v53 = vmul.f32 %v6096_v22, %v9772_v47  ;;  %v3178_v25 = vmul.f32 %v6094_v23, %v9772_v47  ;;  %v9780_v22 = vld [vmem:[#allocation63_spill] sm:$0xff] }
 0x45b   : > { %2829 = vrot.lane.b32.xlu0 %v2821_v56, %s9568_s24  ;;  %v2223_v3 = vpop.permute.xlu0 %2222  ;;  %v3190_v24 = vrot.slane %v8496_v37, 7  ;;  %v9775_v56 = vld [vmem:[#allocation33_spill] sm:$0xff]  ;;  %v3187_v29 = vrot.slane %v3176_v54, 7  ;;  %v3352_v23 = vmul.f32 %v6097_v17, %v9777_v45  ;;  %v9779_v54 = vld [vmem:[#allocation35_spill] sm:$0xff] }
 0x45c   : > { %v2225_v55 = vsel %vm2129_vm6, %v2221_v57, %v2223_v3  ;;  %v8480_v31 = vadd.f32 %v2223_v3, %v2037_v8  ;;  %v3002_v33 = vrot.slane %v2987_v2, 7  ;;  %v2730_v57 = vmul.f32 %v9773_v61, %v8106_v41  ;;  %v9774_v41 = vld [vmem:[#allocation36_spill] sm:$0xff] }
 0x45d   : > { %v2232_v46 = vadd.f32 %v2225_v55, %v2036_v19  ;;  %v1855_v0 = vsel %vm753_vm1, %v9775_v56, %v9774_v41  ;;  %v1862_v49 = vadd.f32 %v9774_v41, %v1689_v20  ;;  %v3189_v55 = vrot.slane %v3175_v21, 7  ;;  %v6098_v20 = vld [vmem:[#allocation3 + $0x50] sm:$0xff] }
 0x45e   : > { %2835 = vrot.lane.b32.xlu1 %v2828_v6, %s9568_s24  ;;  %v2398_v52 = vpop.permute.xlu1 %2397  ;;  %v3003_v3 = vsel %vm1513_vm3, %v2998_v34, %v3002_v33  ;;  %v2744_v59 = vrot.slane %v2730_v57, 4  ;;  %v2745_v6 = vrot.slane %v8510_v28, 4  ;;  %v1861_v2 = vadd.f32 %v1855_v0, %v1688_v7 }
 0x45f   : > { %2833 = vrot.lane.b32.xlu0 %v2826_v30, %s9568_s24  ;;  %v2396_v18 = vpop.permute.xlu0 %2395  ;;  %v8498_v19 = vadd.f32 %v2398_v52, %v2232_v46  ;;  %v9776_v46 = vld [vmem:[#allocation40_spill] sm:$0xff]  ;;  %v3191_v34 = vsel %vm1513_vm3, %v3189_v55, %v3190_v24  ;;  %v3186_v30 = vrot.slane %v3174_v13, 7  ;;  %v3194_v37 = vrot.slane %v3179_v53, 7 }
 0x460   : > { %v2402_v8 = vsel %vm2401_vm7, %v8474_v9, %v2396_v18  ;;  %v2035_v4 = vadd.f32 %v9776_v46, %v1862_v49  ;;  %v9778_v18 = vld [vmem:[#allocation38_spill] sm:$0xff]  ;;  %v8541_v60 = vmul.f32 %v6098_v20, %v9777_v45  ;;  %v3192_v36 = vrot.slane %v3178_v25, 7 }
 0x461   : > { %v3351_v21 = vmul.f32 %v6099_v40, %v9777_v45  ;;  %v3188_v7 = vsel %vm1513_vm3, %v3186_v30, %v3187_v29  ;;  %v2034_v41 = vadd.f32 %v9776_v46, %v1861_v2  ;;  %v2746_v56 = vsel %vm1270_vm14, %v2744_v59, %v2745_v6  ;;  %v3535_v25 = vld [vmem:[#allocation3 + $0x58] sm:$0xff] }
 0x462   : > { %3006 = vrot.lane.b32.xlu1 %v2999_v10, %s9644_s23  ;;  %v8514_v38 = vpop.permute.xlu1 %2351  ;;  %v2231_v15 = vadd.f32 %v9778_v18, %v2035_v4  ;;  %v3534_v10 = vld [vmem:[#allocation3 + $0x40] sm:$0xfc]  ;;  %v3367_v55 = vrot.slane %v8541_v60, 2  ;;  %v2729_v46 = vmul.f32 %v9773_v61, %v8123_v58  ;;  %v3193_v59 = vsel %vm1513_vm3, %v3187_v29, %v3192_v36  ;;  %v9781_v30 = vld [vmem:[#allocation10_spill] sm:$0xff]  ;;  %v6102_v60 = vld [vmem:[#allocation3 + $0x60] sm:$0x3] }
 0x463   : > { %3004 = vrot.lane.b32.xlu0 %v2996_v51, %s9644_s23  ;;  %v8517_v50 = vpop.permute.xlu0 %2349  ;;  %v6100_v51 = vld [vmem:[#allocation3 + $0x48] sm:$0xff]  ;;  %v8567_v53 = vmul.f32 %v9780_v22, %v3534_v10  ;;  %v3363_v2 = vrot.slane %v3351_v21, 2  ;;  %v3355_v10 = vmul.f32 %v6102_v60, %v9777_v45  ;;  %v3549_v36 = vmul.f32 %v9780_v22, %v3535_v25 }
 0x464   : > { %v8548_v57 = vmul.f32 %v6100_v51, %v9777_v45  ;;  %v2409_v13 = vadd.f32 %v2402_v8, %v2231_v15  ;;  %v3366_v8 = vrot.slane %v3352_v23, 2  ;;  %v8580_v23 = vmul.f32 %v8441_v63, %v9781_v30 }
 0x465   : > { %v2734_v51 = vmul.f32 %v9773_v61, %v8132_v43 }
 0x466   : > { %3010 = vrot.lane.b32.xlu1 %v3003_v3, %s9644_s23  ;;  %v8533_v39 = vpop.permute.xlu1 %2540  ;;  %v3368_v21 = vsel %vm822_vm12, %v3366_v8, %v3367_v55 }
 0x467   : > { %3008 = vrot.lane.b32.xlu0 %v3001_v11, %s9644_s23  ;;  %v2400_v62 = vpop.permute.xlu0 %2399  ;;  %v3195_v11 = vsel %vm1513_vm3, %v3190_v24, %v3194_v37 }
 0x468   : > { %v2403_v47 = vsel %vm2401_vm7, %v2398_v52, %v2400_v62  ;;  %v2224_v52 = vsel %vm2129_vm6, %v9779_v54, %v9778_v18  ;;  %v3364_v62 = vrot.slane %v8548_v57, 2  ;;  %v2694_v18 = vmul.f32 %v9781_v30, %v8114_v1 }
 0x469   : > { %v8544_v33 = vadd.f32 %v2403_v47, %v8480_v31  ;;  %v8557_v31 = vmul.f32 %v8441_v63, %v9773_v61  ;;  %v2230_v4 = vadd.f32 %v2224_v52, %v2034_v41  ;;  %v6101_v47 = vld [vmem:[#allocation3 + $0x68] sm:$0x3]  ;;  %v3546_v52 = vmul.f32 %v6097_v17, %v9780_v22 }
 0x46a   : > { %3198 = vrot.lane.b32.xlu1 %v3191_v34, %s9571_s29  ;;  %v2590_v0 = vpop.permute.xlu1 %2589  ;;  %v3356_v37 = vmul.f32 %v6101_v47, %v9777_v45  ;;  %v3365_v54 = vsel %vm822_vm12, %v3363_v2, %v3364_v62  ;;  %v2703_v45 = vrot.slane %v8580_v23, 4  ;;  %v2749_v2 = vrot.slane %v2734_v51, 4 }
 0x46b   : > { %3196 = vrot.lane.b32.xlu0 %v3188_v7, %s9571_s29  ;;  %v8564_v49 = vpop.permute.xlu0 %2538  ;;  %v2602_v3 = vadd.f32 %v2590_v0, %v2409_v13  ;;  %v2742_v24 = vrot.slane %v8557_v31, 4  ;;  %v2408_v58 = vadd.f32 %v8474_v9, %v2230_v4  ;;  %v2741_v9 = vrot.slane %v2729_v46, 4  ;;  %v3536_v7 = vld [vmem:[#allocation3 + $0x70] sm:$0x3] }
 0x46c   : > { %v3548_v13 = vmul.f32 %v6098_v20, %v9780_v22  ;;  %v2733_v31 = vmul.f32 %v9773_v61, %v8114_v1  ;;  %v3371_v20 = vrot.slane %v3356_v37, 2  ;;  %v3561_v1 = vrot.slane %v8567_v53, 2 }
 0x46d   : > { %v8575_v34 = vadd.f32 %v2746_v56, %v2602_v3  ;;  %v2743_v41 = vsel %vm1270_vm14, %v2741_v9, %v2742_v24  ;;  %v2708_v56 = vrot.slane %v2694_v18, 4  ;;  %v3369_v3 = vrot.slane %v3355_v10, 2 }
 0x46e   : > { %3202 = vrot.lane.b32.xlu1 %v3195_v11, %s9571_s29  ;;  %v2543_v15 = vpop.permute.xlu1 %2542  ;;  %v3562_v61 = vrot.slane %v3549_v36, 2  ;;  %v3551_v46 = vmul.f32 %v9780_v22, %v3536_v7  ;;  %v3558_v18 = vrot.slane %v3546_v52, 2  ;;  %v3550_v10 = vmul.f32 %v6101_v47, %v9780_v22  ;;  %v9782_v7 = vld [vmem:[#allocation59_spill] sm:$0xff] }
 0x46f   : > { %3200 = vrot.lane.b32.xlu0 %v3193_v59, %s9571_s29  ;;  %v2588_v29 = vpop.permute.xlu0 %2587  ;;  %v3370_v59 = vsel %vm822_vm12, %v3364_v62, %v3369_v3  ;;  %v2750_v36 = vsel %vm1270_vm14, %v2745_v6, %v2749_v2  ;;  %v1559_v52 = vmul.f32 %v9770_v42, %v9761_v12  ;;  %v9785_v3 = vld [vmem:[#allocation34_spill] sm:$0xff]  ;;  %v1561_v42 = vmul.f32 %v8282_v16, %v9761_v12 }
 0x470   : > { %v2595_v40 = vsel %vm2500_vm8, %v2588_v29, %v2590_v0  ;;  %v2357_v0 = vadd.f32 %v8514_v38, %v8464_v44  ;;  %v3372_v44 = vsel %vm822_vm12, %v3367_v55, %v3371_v20  ;;  %v2747_v29 = vrot.slane %v2733_v31, 4 }
 0x471   : > { %v2601_v57 = vadd.f32 %v2595_v40, %v2408_v58  ;;  %v3559_v58 = vrot.slane %v3548_v13, 2  ;;  %v3566_v51 = vrot.slane %v3551_v46, 2  ;;  %v1652_v31 = vadd.f32 %v9782_v7, %v1559_v52 }
 0x472   : > { %3375 = vrot.lane.b32.xlu1 %v3368_v21, %s6129_s28  ;;  %v2592_v8 = vpop.permute.xlu1 %2591  ;;  %v3563_v21 = vsel %vm822_vm12, %v3561_v1, %v3562_v61  ;;  %v2693_v2 = vmul.f32 %v8435_v48, %v9781_v30  ;;  %v9789_v48 = vld [vmem:[#allocation31_spill] sm:$0xff] }
 0x473   : > { %3373 = vrot.lane.b32.xlu0 %v3365_v54, %s6129_s28  ;;  %v8605_v17 = vpop.permute.xlu0 %2544  ;;  %v8607_v11 = vadd.f32 %v2743_v41, %v2601_v57  ;;  %v3560_v57 = vsel %vm822_vm12, %v3558_v18, %v3559_v58  ;;  %v2748_v54 = vsel %vm1270_vm14, %v2742_v24, %v2747_v29  ;;  %v3567_v22 = vsel %vm822_vm12, %v3562_v61, %v3566_v51 }
 0x474   : > { %v2547_v25 = vsel %vm2500_vm8, %v2543_v15, %v8605_v17  ;;  %v2709_v15 = vsel %vm1270_vm14, %v2703_v45, %v2708_v56  ;;  %v1558_v18 = vmul.f32 %v9771_v5, %v9761_v12  ;;  %v1806_v12 = vsel %vm753_vm1, %v9789_v48, %v9785_v3  ;;  %v9792_v48 = vld [vmem:[#allocation67_spill] sm:$0xff] }
 0x475   : > { %v2554_v4 = vadd.f32 %v2547_v25, %v2357_v0  ;;  %v9783_v0 = vld [vmem:[#allocation11_spill] sm:$0xff]  ;;  %v1813_v25 = vadd.f32 %v9785_v3, %v1652_v31  ;;  %v2706_v5 = vrot.slane %v2693_v2, 4 }
 0x476   : > { %3379 = vrot.lane.b32.xlu1 %v3372_v44, %s6129_s28  ;;  %v8619_v37 = vpop.permute.xlu1 %2876  ;;  %v9786_v44 = vld [vmem:[#allocation15_spill] sm:$0xff] }
 0x477   : > { %3377 = vrot.lane.b32.xlu0 %v3370_v59, %s6129_s28  ;;  %v2594_v53 = vpop.permute.xlu0 %2593  ;;  %v8622_v60 = vadd.f32 %v2709_v15, %v2554_v4  ;;  %v1654_v4 = vadd.f32 %v7930_v32, %v1561_v42  ;;  %v2001_v59 = vsel %vm654_vm15, %v8429_v35, %v9786_v44 }
 0x478   : > { %v2596_v55 = vsel %vm2500_vm8, %v2592_v8, %v2594_v53  ;;  %v2604_v62 = vadd.f32 %v2594_v53, %v8544_v33  ;;  %v9784_v8 = vld [vmem:[#allocation39_spill] sm:$0xff] }
 0x479   : > { %v2603_v40 = vadd.f32 %v2596_v55, %v8498_v19  ;;  %v3564_v19 = vrot.slane %v3550_v10, 2  ;;  %v2000_v20 = vsel %vm654_vm15, %v9784_v8, %v9783_v0  ;;  %v1815_v16 = vadd.f32 %v8391_v26, %v1654_v4  ;;  %v9788_v53 = vld [vmem:[#allocation55_spill] sm:$0xff] }
 0x47a   : > { %v8632_v9 = vadd.f32 %v2750_v36, %v2604_v62  ;;  %3570 = vrot.lane.b32.xlu1 %v3563_v21, %s9588_s18  ;;  %v8637_v33 = vpop.permute.xlu1 %2878  ;;  %v2007_v1 = vadd.f32 %v2000_v20, %v1813_v25  ;;  %v1645_v32 = vsel %vm1613_vm13, %v9788_v53, %v9782_v7  ;;  %v6103_v55 = vld [vmem:[#allocation3 + $0x20] sm:$0xf0]  ;;  %v2695_v26 = vmul.f32 %v9781_v30, %v8132_v43 }
 0x47b   : > { %3568 = vrot.lane.b32.xlu0 %v3560_v57, %s9588_s18  ;;  %v8640_v28 = vpop.permute.xlu0 %2874  ;;  %v8642_v6 = vadd.f32 %v2748_v54, %v2603_v40  ;;  %v3565_v47 = vsel %vm822_vm12, %v3559_v58, %v3564_v19  ;;  %v9787_v58 = vld [vmem:[#allocation41_spill] sm:$0xff]  ;;  %v2691_v62 = vmul.f32 %v6103_v55, %v9781_v30  ;;  %v2009_v35 = vadd.f32 %v2001_v59, %v1815_v16 }
 0x47c   : > { %v2182_v29 = vadd.f32 %v9787_v58, %v2007_v1  ;;  %v1651_v40 = vadd.f32 %v1645_v32, %v1558_v18  ;;  %v2710_v31 = vrot.slane %v2695_v26, 4  ;;  %v8708_v1 = vld [vmem:[#allocation3 + $0x18] sm:$0xf0]  ;;  %v9791_v18 = vld [vmem:[#allocation65_spill] sm:$0xff] }
 0x47d   : > { %v2184_v21 = vadd.f32 %v8458_v14, %v2009_v35  ;;  %v2705_v54 = vrot.slane %v2691_v62, 4  ;;  %v2690_v4 = vmul.f32 %v8708_v1, %v9781_v30  ;;  %v3666_v62 = vld [vmem:[%s9427_s6 + $0x8] sm:$0xff] }
 0x47e   : > { %3574 = vrot.lane.b32.xlu1 %v3567_v22, %s9588_s18  ;;  %v8649_v13 = vpop.permute.xlu1 %2929  ;;  %v2356_v10 = vadd.f32 %v8517_v50, %v2182_v29  ;;  %v1812_v19 = vadd.f32 %v1806_v12, %v1651_v40 }
 0x47f   : > { %3572 = vrot.lane.b32.xlu0 %v3565_v47, %s9588_s18  ;;  %v8652_v24 = vpop.permute.xlu0 %2925  ;;  %v2358_v22 = vadd.f32 %v8514_v38, %v2184_v21  ;;  %v9790_v47 = vld [vmem:[#allocation42_spill] sm:$0xff]  ;;  %v2707_v7 = vsel %vm1270_vm14, %v2705_v54, %v2706_v5  ;;  %v2546_v38 = vsel %vm2500_vm8, %v8564_v49, %v8533_v39  ;;  %v2702_v49 = vrot.slane %v2690_v4, 4  ;;  %v3667_v54 = vld [vmem:[%s9427_s6 + $0x10] sm:$0xff] }
 0x480   : > { %v2553_v51 = vadd.f32 %v8533_v39, %v2356_v10  ;;  %v2175_v52 = vsel %vm2129_vm6, %v9790_v47, %v9787_v58  ;;  %v2006_v43 = vadd.f32 %v9784_v8, %v1812_v19  ;;  %v2711_v8 = vsel %vm1270_vm14, %v2706_v5, %v2710_v31  ;;  %v3668_v19 = vld [vmem:[%s9427_s6 + $0x18] sm:$0xff]  ;;  %v3671_v31 = vld [vmem:[%s9427_s6 + $0x30] sm:$0xff]  ;;  %v3674_v4 = vld [vmem:[%s9427_s6 + $0x48] sm:$0xff] }
 0x481   : > { %v2555_v0 = vadd.f32 %v8605_v17, %v2358_v22  ;;  %v2704_v35 = vsel %vm1270_vm14, %v2702_v49, %v2703_v45  ;;  %v2882_v10 = vsel %vm1613_vm13, %v8640_v28, %v8619_v37  ;;  %v9796_v49 = vld [vmem:[#allocation29_spill] sm:$0xff] }
 0x482   : > { %v8655_v41 = vpop.permute.xlu1 %3049  ;;  %v2717_v20 = vadd.f32 %v2707_v7, %v2553_v51  ;;  %v2181_v25 = vadd.f32 %v2175_v52, %v2006_v43  ;;  %v9793_v51 = vld [vmem:[#allocation49_spill] sm:$0xff] }
 0x483   : > { %v8657_v56 = vpop.permute.xlu0 %2880  ;;  %v2719_v44 = vadd.f32 %v2711_v8, %v2555_v0 }
 0x484   : > { %v2889_v42 = vadd.f32 %v8619_v37, %v2717_v20  ;;  %v2355_v17 = vadd.f32 %v8517_v50, %v2181_v25  ;;  %v3665_v50 = vld [vmem:[%s9427_s6] sm:$0xff]  ;;  %v2883_v21 = vsel %vm1613_vm13, %v8637_v33, %v8657_v56 }
 0x485   : > { %v2891_v16 = vadd.f32 %v8657_v56, %v2719_v44  ;;  %v5686_v5 = vpack.c.bf16 %v3666_v62, %v3665_v50  ;;  %v3669_v33 = vld [vmem:[%s9427_s6 + $0x20] sm:$0xff]  ;;  %v5690_v56 = vpack.c.bf16 %v3668_v19, %v3667_v54  ;;  %v2890_v22 = vadd.f32 %v2883_v21, %v8622_v60  ;;  %v9794_v44 = vld [vmem:[#allocation44_spill] sm:$0xff]  ;;  %v3678_v19 = vld [vmem:[%s9427_s6 + $0x68] sm:$0xff] }
 0x486   : > { %v8667_v46 = vpop.permute.xlu1 %3098  ;;  %v2552_v29 = vadd.f32 %v2546_v38, %v2355_v17  ;;  %v3673_v38 = vld [vmem:[%s9427_s6 + $0x40] sm:$0xff] }
 0x487   : > { %v8665_v61 = vpop.permute.xlu0 %3051  ;;  %5687 = vmatprep.subr.bf16.mxu0 %v5686_v5  ;;  %v3677_v54 = vld [vmem:[%s9427_s6 + $0x60] sm:$0xff] }
 0x488   : > { %v3064_v59 = vadd.f32 %v8665_v61, %v2889_v42  ;;  %v2716_v26 = vadd.f32 %v2704_v35, %v2552_v29  ;;  %v3057_v23 = vsel %vm753_vm1, %v8655_v41, %v8665_v61  ;;  %5689 = vmatpush3.bf16.msra.mxu0 %v5686_v5  ;;  %v3670_v61 = vld [vmem:[%s9427_s6 + $0x28] sm:$0xff]  ;;  %v3676_v29 = vld [vmem:[%s9427_s6 + $0x58] sm:$0xff] }
 0x489   : > { %v5694_v7 = vpack.c.bf16 %v3670_v61, %v3669_v33  ;;  %5691 = vmatprep.subr.bf16.mxu0 %v5690_v56  ;;  %v5710_v61 = vpack.c.bf16 %v3678_v19, %v3677_v54 }
 0x48a   : > { %v3056_v36 = vpop.permute.xlu1 %3055  ;;  %v2888_v45 = vadd.f32 %v2882_v10, %v2716_v26 }
 0x48b   : > { %v8679_v15 = vpop.permute.xlu0 %3100  ;;  %v3066_v32 = vadd.f32 %v3056_v36, %v2891_v16  ;;  %v8785_v16 = vld [vmem:[%s9424_s3] ss:$0 sm:$0xff] }
 0x48c   : > { %v3063_v47 = vadd.f32 %v3057_v23, %v2888_v45  ;;  %5693 = vmatpush3.bf16.msra.mxu0 %v5690_v56 }
 0x48d   : > { %5695 = vmatprep.subr.bf16.mxu0 %v5694_v7 }
 0x48e   : > { %v8702_v3 = vpop.permute.xlu1 %3104 }
 0x48f   : > { %v3054_v57 = vpop.permute.xlu0 %3053 }
 0x490   : > { %v3058_v41 = vsel %vm753_vm1, %v3054_v57, %v3056_v36  ;;  %v3672_v36 = vld [vmem:[%s9427_s6 + $0x38] sm:$0xff]  ;;  %5697 = vmatpush3.bf16.msra.mxu0 %v5694_v7  ;;  %v2939_v7 = vadd.f32 %v8652_v24, %v8607_v11 }
 0x491   : > { %v3065_v57 = vadd.f32 %v3058_v41, %v2890_v22  ;;  %v5698_v20 = vpack.c.bf16 %v3672_v36, %v3671_v31  ;;  %v3680_v11 = vld [vmem:[%s9427_s6 + $0x78] sm:$0xff] }
 0x492   : > { %v3421_v53 = vpop.permute.xlu1 %3420 }
 0x493   : > { %v8700_v14 = vpop.permute.xlu0 %3102  ;;  %5699 = vmatprep.subr.bf16.mxu0 %v5698_v20 }
 0x494   : > { %5701 = vmatpush3.bf16.msra.mxu0 %v5698_v20  ;;  %v3107_v22 = vsel %vm753_vm1, %v8700_v14, %v8702_v3  ;;  %v9800_v14 = vld [vmem:[#allocation37_spill] sm:$0xff] }
 0x496   : > { %v8756_v52 = vpop.permute.xlu1 %3469 }
 0x497   : > { %v3244_v2 = vpop.permute.xlu0 %3243 }
 0x498   : > { %v3251_v58 = vsel %vm654_vm15, %v3244_v2, %v9791_v18  ;;  %v3257_v43 = vadd.f32 %v3244_v2, %v3063_v47  ;;  %v5702_v2 = vpack.c.bf16 %v3674_v4, %v3673_v38  ;;  %v2941_v47 = vadd.f32 %v8649_v13, %v8642_v6  ;;  %v3679_v6 = vld [vmem:[%s9427_s6 + $0x70] sm:$0xff] }
 0x499   : > { %v3258_v39 = vadd.f32 %v3251_v58, %v3064_v59  ;;  %v3427_v59 = vsel %vm2129_vm6, %v9794_v44, %v9793_v51  ;;  %v3675_v58 = vld [vmem:[%s9427_s6 + $0x50] sm:$0xff] }
 0x49a   : > { %v1760_v8 = vpop.permute.xlu1 %1759  ;;  %5703 = vmatprep.subr.bf16.mxu0 %v5702_v2  ;;  %v5706_v50 = vpack.c.bf16 %v3676_v29, %v3675_v58  ;;  %v9802_v58 = vld [vmem:[#allocation45_spill] sm:$0xff] }
 0x49b   : > { %v3433_v55 = vadd.f32 %v3421_v53, %v3258_v39  ;;  %v3248_v30 = vpop.permute.xlu0 %3247  ;;  %v9795_v39 = vld [vmem:[#allocation32_spill] sm:$0xff]  ;;  %5705 = vmatpush3.bf16.msra.mxu0 %v5702_v2  ;;  %v9801_v2 = vld [vmem:[#allocation46_spill] sm:$0xff] }
 0x49c   : > { %v3252_v12 = vsel %vm654_vm15, %v3248_v30, %v9792_v48  ;;  %v3259_v25 = vadd.f32 %v3248_v30, %v3065_v57  ;;  %5707 = vmatprep.subr.bf16.mxu0 %v5706_v50  ;;  %v9799_v57 = vld [vmem:[#allocation16_spill] sm:$0xff]  ;;  %v3476_v29 = vsel %vm2129_vm6, %v9802_v58, %v9801_v2 }
 0x49d   : > { %v3260_v40 = vadd.f32 %v3252_v12, %v3066_v32  ;;  %3588 = vrot.lane.b32.xlu1 %v3433_v55, %s9644_s23  ;;  %v1546_v32 = vmul.f32 %v8278_v27, %v8785_v16  ;;  %v9797_v12 = vld [vmem:[#allocation61_spill] sm:$0xff] }
 0x49e   : > { %v3434_v18 = vadd.f32 %v3427_v59, %v3259_v25  ;;  %v1952_v35 = vpop.permute.xlu1 %1951  ;;  %v2933_v5 = vsel %vm1613_vm13, %v8652_v24, %v9797_v12  ;;  %v5714_v24 = vpack.c.bf16 %v3680_v11, %v3679_v6  ;;  %v3649_v25 = vld [vmem:[%s9426_s5] sm:$0xff] }
 0x49f   : > { %v3435_v37 = vadd.f32 %v9793_v51, %v3260_v40  ;;  %v8740_v28 = vpop.permute.xlu0 %3280  ;;  %v9798_v40 = vld [vmem:[#allocation6_spill] sm:$0xff]  ;;  %v2940_v23 = vadd.f32 %v2933_v5, %v8575_v34  ;;  %5709 = vmatpush3.bf16.msra.mxu0 %v5706_v50  ;;  %v3106_v34 = vsel %vm753_vm1, %v8667_v46, %v8679_v15  ;;  %v4961_v50 = vld [vmem:[%s9424_s3 + $0x1c] ss:$0 sm:$0xff]  ;;  %v9806_v6 = vld [vmem:[#allocation53_spill] sm:$0xff] }
 0x4a0   : > { %v2934_v21 = vsel %vm1613_vm13, %v8649_v13, %v9798_v40  ;;  %5711 = vmatprep.subr.bf16.mxu0 %v5710_v61  ;;  %v3112_v46 = vadd.f32 %v3106_v34, %v2939_v7  ;;  %v2664_v58 = vmul.f32 %v8708_v1, %v4961_v50 }
 0x4a1   : > { %3592 = vrot.lane.b32.xlu1 %v3435_v37, %s9644_s23  ;;  %v2942_v33 = vadd.f32 %v2934_v21, %v8632_v9  ;;  %v3113_v41 = vadd.f32 %v8679_v15, %v2940_v23  ;;  %v3114_v15 = vadd.f32 %v3107_v22, %v2941_v47 }
 0x4a2   : > { %v2128_v45 = vpop.permute.xlu1 %2127 }
 0x4a3   : > { %v3419_v0 = vpop.permute.xlu0 %3418  ;;  %v3115_v9 = vadd.f32 %v8702_v3, %v2942_v33  ;;  %v3287_v31 = vadd.f32 %v8740_v28, %v3113_v41  ;;  %5713 = vmatpush3.bf16.msra.mxu0 %v5710_v61 }
 0x4a4   : > { %v3426_v60 = vsel %vm2129_vm6, %v3419_v0, %v3421_v53  ;;  %v1615_v53 = vsel %vm1613_vm13, %v9796_v49, %v9795_v39  ;;  %5715 = vmatprep.subr.bf16.mxu0 %v5714_v24 }
 0x4a5   : > { %v3432_v42 = vadd.f32 %v3426_v60, %v3257_v43  ;;  %v1619_v62 = vadd.f32 %v1615_v53, %v1546_v32  ;;  %v3289_v3 = vadd.f32 %v9800_v14, %v3115_v9  ;;  %v3286_v60 = vadd.f32 %v8740_v28, %v3112_v46  ;;  %v9804_v46 = vld [vmem:[#allocation18_spill] sm:$0xff] }
 0x4a6   : > { %v3482_v20 = vadd.f32 %v8756_v52, %v3287_v31  ;;  %v6106_v31 = vld [vmem:[#allocation3] sm:$0xff] }
 0x4a7   : > { %3586 = vrot.lane.b32.xlu0 %v3432_v42, %s9644_s23  ;;  %v3468_v17 = vpop.permute.xlu0 %3467  ;;  %v3650_v42 = vld [vmem:[%s9426_s5 + $0x8] sm:$0xff]  ;;  %5717 = vmatpush3.bf16.msra.mxu0 %v5714_v24 }
 0x4a8   : > { %v3475_v13 = vsel %vm2129_vm6, %v3468_v17, %v8756_v52  ;;  %v8842_v4 = vpack.c.bf16 %v3650_v42, %v3649_v25  ;;  %v9809_v42 = vld [vmem:[#allocation70_spill] sm:$0xff] }
 0x4a9   : > { %v3481_v17 = vadd.f32 %v3475_v13, %v3286_v60 }
 0x4aa   : > { %5719 = vmatprep.subr.bf16.mxu0 %v8842_v4 }
 0x4ab   : > { %3590 = vrot.lane.b32.xlu0 %v3434_v18, %s9644_s23  ;;  %v1758_v55 = vpop.permute.xlu0 %1757  ;;  %v3484_v18 = vadd.f32 %v9801_v2, %v3289_v3  ;;  %v9808_v3 = vld [vmem:[#allocation56_spill] sm:$0xff] }
 0x4ac   : > { %v1762_v30 = vsel %vm753_vm1, %v1758_v55, %v1760_v8  ;;  %v3288_v8 = vadd.f32 %v9800_v14, %v3114_v15  ;;  %v9807_v14 = vld [vmem:[#allocation68_spill] sm:$0xff] }
 0x4ad   : > { %v1766_v10 = vadd.f32 %v1762_v30, %v1619_v62  ;;  %v1953_v60 = vsel %vm654_vm15, %v9808_v3, %v9807_v14 }
 0x4ae   : > { %v3483_v53 = vadd.f32 %v3476_v29, %v3288_v8 }
 0x4af   : > { %v1950_v48 = vpop.permute.xlu0 %1949 }
 0x4b0   : > { %v1954_v26 = vsel %vm654_vm15, %v1950_v48, %v1952_v35  ;;  %v2665_v35 = vmul.f32 %v8441_v63, %v4961_v50 }
 0x4b1   : > { %v1958_v27 = vadd.f32 %v1954_v26, %v1766_v10  ;;  %v6105_v10 = vld [vmem:[#allocation3 + $0x48] sm:$0xf] }
 0x4b2   : > { %v2666_v48 = vmul.f32 %v6105_v10, %v4961_v50  ;;  %v2671_v26 = vrot.slane %v2665_v35, 4 }
 0x4b3   : > { %v2126_v51 = vpop.permute.xlu0 %2125 }
 0x4b4   : > { %v2131_v37 = vsel %vm2129_vm6, %v2126_v51, %v2128_v45 }
 0x4b5   : > { %v2135_v56 = vadd.f32 %v2131_v37, %v1958_v27  ;;  %v2673_v27 = vrot.slane %v2666_v48, 4 }
 0x4b7   : > { %v2321_v36 = vpop.permute.xlu0 %2320  ;;  %v2674_v45 = vsel %vm1270_vm14, %v2671_v26, %v2673_v27 }
 0x4b8   : > { %v2325_v43 = vsel %vm928_vm2, %v2321_v36, %v9799_v57  ;;  %v1545_v36 = vmul.f32 %v6106_v31, %v8785_v16 }
 0x4b9   : > { %v2329_v0 = vadd.f32 %v2325_v43, %v2135_v56  ;;  %v9803_v43 = vld [vmem:[#allocation5_spill] sm:$0xff] }
 0x4ba   : > { %v1614_v15 = vsel %vm1613_vm13, %v9804_v46, %v9803_v43 }
 0x4bb   : > { %v1618_v13 = vadd.f32 %v1614_v15, %v1545_v36 }
 0x4bc   : > { %v3607_v38 = vpop.permute.xlu1 %3606 }
 0x4bd   : > { %v3619_v44 = vadd.f32 %v3607_v38, %v3482_v20  ;;  %v3605_v59 = vpop.permute.xlu0 %3604 }
 0x4be   : > { %v3612_v28 = vsel %vm753_vm1, %v3605_v59, %v3607_v38  ;;  %v9810_v38 = vld [vmem:[#allocation69_spill] sm:$0xff] }
 0x4bf   : > { %v3618_v52 = vadd.f32 %v3612_v28, %v3481_v17  ;;  %3628 = vrot.lane.b32.xlu1 %v3619_v44, %s6129_s28  ;;  %v2130_v16 = vsel %vm2129_vm6, %v9810_v38, %v9809_v42  ;;  %v9811_v28 = vld [vmem:[#allocation17_spill] sm:$0xff]  ;;  %v9813_v42 = vld [vmem:[#allocation7_spill] sm:$0xff] }
 0x4c0   : > { %v3611_v39 = vpop.permute.xlu1 %3610 }
 0x4c1   : > { %v3621_v49 = vadd.f32 %v3611_v39, %v3484_v18  ;;  %3626 = vrot.lane.b32.xlu0 %v3618_v52, %s6129_s28  ;;  %v3609_v32 = vpop.permute.xlu0 %3608  ;;  %v9812_v52 = vld [vmem:[#allocation71_spill] sm:$0xff] }
 0x4c2   : > { %v3613_v55 = vsel %vm753_vm1, %v3609_v32, %v3611_v39  ;;  %v2324_v2 = vsel %vm928_vm2, %v9812_v52, %v9811_v28  ;;  %v3659_v28 = vld [vmem:[%s9426_s5 + $0x50] sm:$0xff]  ;;  %v3660_v52 = vld [vmem:[%s9426_s5 + $0x58] sm:$0xff] }
 0x4c3   : > { %v3620_v30 = vadd.f32 %v3613_v55, %v3483_v53  ;;  %3632 = vrot.lane.b32.xlu1 %v3621_v49, %s6129_s28  ;;  %v2670_v53 = vrot.slane %v2664_v58, 4  ;;  %v3662_v58 = vld [vmem:[%s9426_s5 + $0x68] sm:$0xff] }
 0x4c4   : > { %v2495_v62 = vpop.permute.xlu1 %2494 }
 0x4c5   : > { %3630 = vrot.lane.b32.xlu0 %v3620_v30, %s6129_s28  ;;  %v2493_v12 = vpop.permute.xlu0 %2492  ;;  %v2672_v55 = vsel %vm1270_vm14, %v2670_v53, %v2671_v26 }
 0x4c6   : > { %v2501_v18 = vsel %vm2500_vm8, %v2493_v12, %v2495_v62 }
 0x4c8   : > { %v2499_v5 = vpop.permute.xlu1 %2498 }
 0x4c9   : > { %v2497_v40 = vpop.permute.xlu0 %2496 }
 0x4ca   : > { %v2502_v21 = vsel %vm2500_vm8, %v2497_v40, %v2499_v5 }
 0x4cb   : > { %v2506_v23 = vadd.f32 %v2502_v21, %v2329_v0  ;;  %v9805_v0 = vld [vmem:[#allocation47_spill] sm:$0xff] }
 0x4cc   : > { %v2832_v37 = vpop.permute.xlu1 %2831  ;;  %v1761_v11 = vsel %vm753_vm1, %v9806_v6, %v9805_v0 }
 0x4cd   : > { %v2678_v51 = vadd.f32 %v2674_v45, %v2506_v23  ;;  %v2830_v54 = vpop.permute.xlu0 %2829  ;;  %v1765_v20 = vadd.f32 %v1761_v11, %v1618_v13  ;;  %v3651_v13 = vld [vmem:[%s9426_s5 + $0x10] sm:$0xff] }
 0x4ce   : > { %v2837_v30 = vsel %vm1613_vm13, %v2830_v54, %v2832_v37 }
 0x4cf   : > { %v1957_v8 = vadd.f32 %v1953_v60, %v1765_v20  ;;  %v3653_v20 = vld [vmem:[%s9426_s5 + $0x20] sm:$0xff] }
 0x4d0   : > { %v2836_v19 = vpop.permute.xlu1 %2835 }
 0x4d1   : > { %v2834_v33 = vpop.permute.xlu0 %2833  ;;  %v2134_v17 = vadd.f32 %v2130_v16, %v1957_v8  ;;  %v3655_v16 = vld [vmem:[%s9426_s5 + $0x30] sm:$0xff]  ;;  %v3656_v8 = vld [vmem:[%s9426_s5 + $0x38] sm:$0xff] }
 0x4d2   : > { %v2838_v40 = vsel %vm1613_vm13, %v2834_v33, %v2836_v19 }
 0x4d3   : > { %v2328_v29 = vadd.f32 %v2324_v2, %v2134_v17  ;;  %v2842_v21 = vadd.f32 %v2838_v40, %v2678_v51  ;;  %v5730_v17 = vpack.c.bf16 %v3656_v8, %v3655_v16  ;;  %v5738_v2 = vpack.c.bf16 %v3660_v52, %v3659_v28  ;;  %v3857_v40 = vld [vmem:[%s9429_s8 + $0x28] sm:$0xff]  ;;  %v5015_v16 = vld [vmem:[%s9430_s9 + $0x110] sm:$0xff]  ;;  %v5016_v8 = vld [vmem:[%s9430_s9 + $0x118] sm:$0xff] }
 0x4d4   : > { %v3007_v63 = vpop.permute.xlu1 %3006  ;;  %v5018_v28 = vld [vmem:[%s9430_s9 + $0x128] sm:$0xff] }
 0x4d5   : > { %v3005_v41 = vpop.permute.xlu0 %3004  ;;  %v2505_v39 = vadd.f32 %v2501_v18, %v2328_v29  ;;  %v3661_v18 = vld [vmem:[%s9426_s5 + $0x60] sm:$0xff] }
 0x4d6   : > { %v3012_v48 = vsel %vm753_vm1, %v3005_v41, %v3007_v63  ;;  %v5742_v29 = vpack.c.bf16 %v3662_v58, %v3661_v18  ;;  %v4065_v18 = vld [vmem:[%s9430_s9 + $0x30] sm:$0xff]  ;;  %v4066_v58 = vld [vmem:[%s9430_s9 + $0x38] sm:$0xff] }
 0x4d7   : > { %v2677_v35 = vadd.f32 %v2672_v55, %v2505_v39  ;;  %v3663_v39 = vld [vmem:[%s9426_s5 + $0x70] sm:$0xff]  ;;  %v3852_v55 = vld [vmem:[%s9429_s8] sm:$0xff] }
 0x4d8   : > { %v3011_v56 = vpop.permute.xlu1 %3010 }
 0x4d9   : > { %v3009_v61 = vpop.permute.xlu0 %3008  ;;  %v2841_v5 = vadd.f32 %v2837_v30, %v2677_v35  ;;  %v3853_v30 = vld [vmem:[%s9429_s8 + $0x8] sm:$0xff]  ;;  %v3854_v35 = vld [vmem:[%s9429_s8 + $0x10] sm:$0xff] }
 0x4da   : > { %v3013_v50 = vsel %vm753_vm1, %v3009_v61, %v3011_v56 }
 0x4db   : > { %v3016_v1 = vadd.f32 %v3012_v48, %v2841_v5  ;;  %v3017_v54 = vadd.f32 %v3013_v50, %v2842_v21  ;;  %v3855_v48 = vld [vmem:[%s9429_s8 + $0x18] sm:$0xff]  ;;  %v4986_v21 = vld [vmem:[%s9429_s8 + $0x40] sm:$0xff] }
 0x4dc   : > { %v3199_v34 = vpop.permute.xlu1 %3198  ;;  %v5754_v5 = vpack.c.bf16 %v3855_v48, %v3854_v35  ;;  %v3859_v50 = vld [vmem:[%s9429_s8 + $0x38] sm:$0xff]  ;;  %v5022_v35 = vld [vmem:[%s9430_s9 + $0x148] sm:$0xff] }
 0x4dd   : > { %v3197_v22 = vpop.permute.xlu0 %3196 }
 0x4de   : > { %v3204_v62 = vsel %vm654_vm15, %v3197_v22, %v3199_v34 }
 0x4df   : > { %v3208_v23 = vadd.f32 %v3204_v62, %v3016_v1  ;;  %v3858_v1 = vld [vmem:[%s9429_s8 + $0x30] sm:$0xff] }
 0x4e0   : > { %v3203_v47 = vpop.permute.xlu1 %3202 }
 0x4e1   : > { %v3201_v7 = vpop.permute.xlu0 %3200 }
 0x4e2   : > { %v3205_v45 = vsel %vm654_vm15, %v3201_v7, %v3203_v47  ;;  %v4982_v7 = vld [vmem:[%s9425_s4] ss:$0 sm:$0xff] }
 0x4e3   : > { %v3209_v33 = vadd.f32 %v3205_v45, %v3017_v54 }
 0x4e4   : > { %v3376_v9 = vpop.permute.xlu1 %3375 }
 0x4e5   : > { %v3374_v57 = vpop.permute.xlu0 %3373 }
 0x4e6   : > { %v3381_v12 = vsel %vm2129_vm6, %v3374_v57, %v3376_v9 }
 0x4e7   : > { %v3385_v63 = vadd.f32 %v3381_v12, %v3208_v23  ;;  %v5762_v12 = vpack.c.bf16 %v3859_v50, %v3858_v1  ;;  %v4987_v23 = vld [vmem:[%s9429_s8 + $0x48] sm:$0xff] }
 0x4e8   : > { %v3380_v24 = vpop.permute.xlu1 %3379  ;;  %v5766_v45 = vpack.c.bf16 %v4987_v23, %v4986_v21  ;;  %v4072_v21 = vld [vmem:[%s9430_s9 + $0x68] sm:$0xff]  ;;  %v5025_v23 = vld [vmem:[%s9430_s9 + $0x160] sm:$0xff] }
 0x4e9   : > { %v3378_v25 = vpop.permute.xlu0 %3377 }
 0x4ea   : > { %v3382_v31 = vsel %vm2129_vm6, %v3378_v25, %v3380_v24  ;;  %v3652_v24 = vld [vmem:[%s9426_s5 + $0x18] sm:$0xff]  ;;  %v3654_v25 = vld [vmem:[%s9426_s5 + $0x28] sm:$0xff]  ;;  %5767 = vmatprep.subr.bf16.mxu1 %v5766_v45 }
 0x4eb   : > { %v3386_v61 = vadd.f32 %v3382_v31, %v3209_v33  ;;  %v5722_v60 = vpack.c.bf16 %v3652_v24, %v3651_v13  ;;  %v5726_v38 = vpack.c.bf16 %v3654_v25, %v3653_v20  ;;  %v4983_v31 = vld [vmem:[%s9428_s7] ss:$0 sm:$0xff]  ;;  %5769 = vmatpush3.bf16.msra.mxu1 %v5766_v45  ;;  %v4060_v24 = vld [vmem:[%s9430_s9 + $0x8] sm:$0xff]  ;;  %v4061_v20 = vld [vmem:[%s9430_s9 + $0x10] sm:$0xff] }
 0x4ec   : > { %v3571_v44 = vpop.permute.xlu1 %3570  ;;  %v4059_v13 = vld [vmem:[%s9430_s9] sm:$0xff]  ;;  %v4062_v25 = vld [vmem:[%s9430_s9 + $0x18] sm:$0xff]  ;;  %v5026_v45 = vld [vmem:[%s9430_s9 + $0x168] sm:$0xff] }
 0x4ed   : > { %v3569_v59 = vpop.permute.xlu0 %3568 }
 0x4ee   : > { %v3576_v37 = vsel %vm928_vm2, %v3569_v59, %v3571_v44  ;;  %v3657_v44 = vld [vmem:[%s9426_s5 + $0x40] sm:$0xff] }
 0x4ef   : > { %v3580_v34 = vadd.f32 %v3576_v37, %v3385_v63  ;;  %v4989_v37 = vld [vmem:[%s9429_s8 + $0x58] sm:$0xff]  ;;  %v4990_v63 = vld [vmem:[%s9429_s8 + $0x60] sm:$0xff] }
 0x4f0   : > { %v3575_v49 = vpop.permute.xlu1 %3574 }
 0x4f1   : > { %v3573_v32 = vpop.permute.xlu0 %3572 }
 0x4f2   : > { %v3577_v56 = vsel %vm928_vm2, %v3573_v32, %v3575_v49  ;;  %v3664_v49 = vld [vmem:[%s9426_s5 + $0x78] sm:$0xff]  ;;  %v9814_v32 = vld [vmem:[#allocation22_spill] sm:$0xff] }
 0x4f3   : > { %v3581_v57 = vadd.f32 %v3577_v56, %v3386_v61  ;;  %v5746_v53 = vpack.c.bf16 %v3664_v49, %v3663_v39  ;;  %v5020_v39 = vld [vmem:[%s9430_s9 + $0x138] sm:$0xff]  ;;  %v5794_v49 = vpack.c.bf16 %v4066_v58, %v4065_v18  ;;  %v5035_v18 = vld [vmem:[%s9430_s9 + $0x1b0] sm:$0xff] }
 0x4f4   : > { %v5036_v58 = vld [vmem:[%s9430_s9 + $0x1b8] sm:$0xff] }
 0x50f   : > { %v3589_v10 = vpop.permute.xlu1 %3588 }
 0x513   : > { %v3593_v26 = vpop.permute.xlu1 %3592 }
 0x519   : > { %v3587_v27 = vpop.permute.xlu0 %3586 }
 0x51a   : > { %v3594_v19 = vsel %vm753_vm1, %v3587_v27, %v3589_v10  ;;  %v5750_v10 = vpack.c.bf16 %v3853_v30, %v3852_v55  ;;  %v3856_v27 = vld [vmem:[%s9429_s8 + $0x20] sm:$0xff]  ;;  %v4068_v55 = vld [vmem:[%s9430_s9 + $0x48] sm:$0xff] }
 0x51b   : > { %v3598_v51 = vadd.f32 %v3594_v19, %v3580_v34  ;;  %v5758_v62 = vpack.c.bf16 %v3857_v40, %v3856_v27  ;;  %v5021_v30 = vld [vmem:[%s9430_s9 + $0x140] sm:$0xff]  ;;  %v4070_v27 = vld [vmem:[%s9430_s9 + $0x58] sm:$0xff]  ;;  %v5023_v40 = vld [vmem:[%s9430_s9 + $0x150] sm:$0xff] }
 0x51c   : > { %v5862_v48 = vpack.c.bf16 %v5022_v35, %v5021_v30 }
 0x51d   : > { %v3591_v41 = vpop.permute.xlu0 %3590 }
 0x51e   : > { %v3595_v36 = vsel %vm753_vm1, %v3591_v41, %v3593_v26  ;;  %v4988_v26 = vld [vmem:[%s9429_s8 + $0x50] sm:$0xff]  ;;  %v4991_v41 = vld [vmem:[%s9429_s8 + $0x68] sm:$0xff] }
 0x51f   : > { %v3599_v46 = vadd.f32 %v3595_v36, %v3581_v57  ;;  %v5770_v54 = vpack.c.bf16 %v4989_v37, %v4988_v26  ;;  %v5774_v19 = vpack.c.bf16 %v4991_v41, %v4990_v63  ;;  %v4992_v57 = vld [vmem:[%s9429_s8 + $0x70] sm:$0xff]  ;;  %v5870_v63 = vpack.c.bf16 %v5026_v45, %v5025_v23 }
 0x520   : > { %v4073_v37 = vld [vmem:[%s9430_s9 + $0x70] sm:$0xff] }
 0x521   : > { %5771 = vmatprep.subr.bf16.mxu1 %v5770_v54  ;;  %v5011_v45 = vld [vmem:[%s9430_s9 + $0xf0] sm:$0xff] }
 0x522   : > { %5773 = vmatpush3.bf16.msra.mxu1 %v5770_v54  ;;  %v4074_v54 = vld [vmem:[%s9430_s9 + $0x78] sm:$0xff] }
 0x523   : > { %5775 = vmatprep.subr.bf16.mxu1 %v5774_v19  ;;  %v5810_v41 = vpack.c.bf16 %v4074_v54, %v4073_v37  ;;  %v5012_v37 = vld [vmem:[%s9430_s9 + $0xf8] sm:$0xff]  ;;  %v5043_v54 = vld [vmem:[%s9430_s9 + $0x1f0] sm:$0xff] }
 0x526   : > { %5777 = vmatpush3.bf16.msra.mxu1 %v5774_v19  ;;  %v5028_v19 = vld [vmem:[%s9430_s9 + $0x178] sm:$0xff] }
 0x531   : > { %v3629_v22 = vpop.permute.xlu1 %3628 }
 0x533   : > { %v3627_v9 = vpop.permute.xlu0 %3626 }
 0x534   : > { %v3634_v47 = vsel %vm2129_vm6, %v3627_v9, %v3629_v22 }
 0x535   : > { %v3638_v43 = vadd.f32 %v3634_v47, %v3598_v51  ;;  %v3633_v15 = vpop.permute.xlu1 %3632 }
 0x537   : > { %v3631_v0 = vpop.permute.xlu0 %3630  ;;  %v3647_v6 = vadd.f32 %v4982_v7, %v3638_v43  ;;  %v4993_v43 = vld [vmem:[%s9429_s8 + $0x78] sm:$0xff] }
 0x538   : > { %v3635_v11 = vsel %vm2129_vm6, %v3631_v0, %v3633_v15 }
 0x539   : > { %v3639_v14 = vadd.f32 %v3635_v11, %v3599_v46  ;;  %5330 = vmatprep.mubr.f32.mxu0 %v3647_v6  ;;  %v5778_v46 = vpack.c.bf16 %v4993_v43, %v4992_v57 }
 0x53b   : > { %v3648_v3 = vadd.f32 %v4982_v7, %v3639_v14  ;;  %5779 = vmatprep.subr.bf16.mxu1 %v5778_v46  ;;  %v5013_v14 = vld [vmem:[%s9430_s9 + $0x100] sm:$0xff] }
 0x53c   : > { %5781 = vmatpush3.bf16.msra.mxu1 %v5778_v46 }
 0x53d   : > { %5331 = vmatmul.mubr.f32.vlgmr.msra.gmra.mrb[0].mxu0 %v3648_v3  ;;  %v5782_v3 = vpack.c.bf16 %v4060_v24, %v4059_v13  ;;  %v4999_v13 = vld [vmem:[%s9430_s9 + $0x90] sm:$0xff]  ;;  %v5032_v24 = vld [vmem:[%s9430_s9 + $0x198] sm:$0xff] }
 0x53e   : > { %5721 = vmatpush3.bf16.msra.mxu0 %v8842_v4  ;;  %5365 = vmatprep.mubr.f32.mxu0 %v9813_v42  ;;  %v3658_v4 = vld [vmem:[%s9426_s5 + $0x48] sm:$0xff] }
 0x53f   : > { %5723 = vmatprep.subr.bf16.mxu0 %v5722_v60  ;;  %v5734_v59 = vpack.c.bf16 %v3658_v4, %v3657_v44  ;;  %v5850_v44 = vpack.c.bf16 %v5016_v8, %v5015_v16  ;;  %v4064_v4 = vld [vmem:[%s9430_s9 + $0x28] sm:$0xff]  ;;  %v5033_v8 = vld [vmem:[%s9430_s9 + $0x1a0] sm:$0xff] }
 0x542   : > { %5725 = vmatpush3.bf16.msra.mxu0 %v5722_v60  ;;  %v5014_v60 = vld [vmem:[%s9430_s9 + $0x108] sm:$0xff] }
 0x543   : > { %5727 = vmatprep.subr.bf16.mxu0 %v5726_v38  ;;  %v5846_v42 = vpack.c.bf16 %v5014_v60, %v5013_v14  ;;  %v5001_v14 = vld [vmem:[%s9430_s9 + $0xa0] sm:$0xff] }
 0x545   : > { %5847 = vmatprep.subr.bf16.mxu1 %v5846_v42 }
 0x546   : > { %5729 = vmatpush3.bf16.msra.mxu0 %v5726_v38  ;;  %v5786_v38 = vpack.c.bf16 %v4062_v25, %v4061_v20 }
 0x547   : > { %5731 = vmatprep.subr.bf16.mxu0 %v5730_v17 }
 0x54a   : > { %5733 = vmatpush3.bf16.msra.mxu0 %v5730_v17  ;;  %v4063_v17 = vld [vmem:[%s9430_s9 + $0x20] sm:$0xff] }
 0x54b   : > { %5735 = vmatprep.subr.bf16.mxu0 %v5734_v59  ;;  %v5790_v52 = vpack.c.bf16 %v4064_v4, %v4063_v17  ;;  %v5034_v17 = vld [vmem:[%s9430_s9 + $0x1a8] sm:$0xff] }
 0x54e   : > { %5737 = vmatpush3.bf16.msra.mxu0 %v5734_v59  ;;  %v5017_v59 = vld [vmem:[%s9430_s9 + $0x120] sm:$0xff] }
 0x54f   : > { %5739 = vmatprep.subr.bf16.mxu0 %v5738_v2 }
 0x552   : > { %5741 = vmatpush3.bf16.msra.mxu0 %v5738_v2  ;;  %v5854_v2 = vpack.c.bf16 %v5018_v28, %v5017_v59  ;;  %v5886_v28 = vpack.c.bf16 %v5034_v17, %v5033_v8  ;;  %v5061_v17 = vld [vmem:[%s9430_s9 + $0x280] sm:$0xff] }
 0x553   : > { %5743 = vmatprep.subr.bf16.mxu0 %v5742_v29 }
 0x556   : > { %5745 = vmatpush3.bf16.msra.mxu0 %v5742_v29  ;;  %v5019_v29 = vld [vmem:[%s9430_s9 + $0x130] sm:$0xff] }
 0x557   : > { %5747 = vmatprep.subr.bf16.mxu0 %v5746_v53 }
 0x55a   : > { %5749 = vmatpush3.bf16.msra.mxu0 %v5746_v53  ;;  %v5858_v53 = vpack.c.bf16 %v5020_v39, %v5019_v29  ;;  %v5890_v39 = vpack.c.bf16 %v5036_v58, %v5035_v18  ;;  %v5065_v18 = vld [vmem:[%s9430_s9 + $0x2a0] sm:$0xff]  ;;  %v5066_v58 = vld [vmem:[%s9430_s9 + $0x2a8] sm:$0xff] }
 0x55b   : > { %5751 = vmatprep.subr.bf16.mxu0 %v5750_v10 }
 0x55d   : > { %5366 = vmatmul.mubr.f32.vlgmr.msra.gmra.mrb[0].mxu0 %v9814_v32  ;;  %v4067_v32 = vld [vmem:[%s9430_s9 + $0x40] sm:$0xff] }
 0x55e   : > { %5753 = vmatpush3.bf16.msra.mxu0 %v5750_v10  ;;  %v5798_v10 = vpack.c.bf16 %v4068_v55, %v4067_v32  ;;  %v5037_v32 = vld [vmem:[%s9430_s9 + $0x1c0] sm:$0xff]  ;;  %v5038_v55 = vld [vmem:[%s9430_s9 + $0x1c8] sm:$0xff] }
 0x55f   : > { %5755 = vmatprep.subr.bf16.mxu0 %v5754_v5  ;;  %v5894_v35 = vpack.c.bf16 %v5038_v55, %v5037_v32  ;;  %v5069_v55 = vld [vmem:[%s9430_s9 + $0x2c0] sm:$0xff] }
 0x562   : > { %5757 = vmatpush3.bf16.msra.mxu0 %v5754_v5  ;;  %v4069_v5 = vld [vmem:[%s9430_s9 + $0x50] sm:$0xff] }
 0x563   : > { %5759 = vmatprep.subr.bf16.mxu0 %v5758_v62  ;;  %v5802_v1 = vpack.c.bf16 %v4070_v27, %v4069_v5  ;;  %v5039_v5 = vld [vmem:[%s9430_s9 + $0x1d0] sm:$0xff]  ;;  %v5040_v27 = vld [vmem:[%s9430_s9 + $0x1d8] sm:$0xff] }
 0x566   : > { %5761 = vmatpush3.bf16.msra.mxu0 %v5758_v62  ;;  %v5024_v62 = vld [vmem:[%s9430_s9 + $0x158] sm:$0xff] }
 0x567   : > { %5763 = vmatprep.subr.bf16.mxu0 %v5762_v12  ;;  %v5866_v50 = vpack.c.bf16 %v5024_v62, %v5023_v40  ;;  %v5898_v62 = vpack.c.bf16 %v5040_v27, %v5039_v5  ;;  %v5073_v27 = vld [vmem:[%s9430_s9 + $0x2e0] sm:$0xff] }
 0x56a   : > { %5765 = vmatpush3.bf16.msra.mxu0 %v5762_v12  ;;  %v4071_v12 = vld [vmem:[%s9430_s9 + $0x60] sm:$0xff] }
 0x56b   : > { %5783 = vmatprep.subr.bf16.mxu0 %v5782_v3  ;;  %v5806_v26 = vpack.c.bf16 %v4072_v21, %v4071_v12  ;;  %v5041_v12 = vld [vmem:[%s9430_s9 + $0x1e0] sm:$0xff]  ;;  %v5042_v21 = vld [vmem:[%s9430_s9 + $0x1e8] sm:$0xff] }
 0x630   : > { %v5367_v33 = vpop.f32.mrb[0].mxu0 }
 0x631   : > { %v8988_v34 = vadd.f32 %v5367_v33, %v4983_v31  ;;  %v3822_v22 = vpop.f32.mrb[1].mxu0 }
 0x632   : > { %v8990_v56 = vadd.f32 %v4983_v31, %v3822_v22  ;;  %v5027_v31 = vld [vmem:[%s9430_s9 + $0x170] sm:$0xff]  ;;  %v4997_v22 = vld [vmem:[%s9430_s9 + $0x80] sm:$0xff] }
 0x633   : > { %3844 = vrot.lane.b32.xlu1 %v8988_v34, %s6130_s20  ;;  %v5874_v33 = vpack.c.bf16 %v5028_v19, %v5027_v31  ;;  %v5045_v19 = vld [vmem:[%s9430_s9 + $0x200] sm:$0xff] }
 0x634   : > { %3842 = vrot.lane.b32.xlu0 %v8990_v56, %s6130_s20 }
 0x6a5   : > { %v3845_v61 = vpop.permute.xlu1 %3844 }
 0x6a6   : > { %v3849_v51 = vadd.f32 %v3845_v61, %v8988_v34  ;;  %v3843_v9 = vpop.permute.xlu0 %3842  ;;  %v3851_v7 = vmax.f32 %v8988_v34, %v3845_v61  ;;  %v4998_v61 = vld [vmem:[%s9430_s9 + $0x88] sm:$0xff] }
 0x6a7   : > { %v3848_v36 = vadd.f32 %v3843_v9, %v8990_v56  ;;  %v3850_v47 = vmax.f32 %v8990_v56, %v3843_v9 }
 0x6a8   : > { %4037 = vst.msk [vmem:[#allocation4 + $0xb] sm:$0xff] %vm3860_vm4, %v3849_v51  ;;  %v5029_v51 = vld [vmem:[%s9430_s9 + $0x180] sm:$0xff] }
 0x6a9   : > { %4036 = vst.msk [vmem:[#allocation4 + $0x3] sm:$0xff] %vm3860_vm4, %v3848_v36  ;;  %5384 = vmatprep.mubr.msk.f32.mxu0 %vm3860_vm4, %v3850_v47  ;;  %v5814_v36 = vpack.c.bf16 %v4998_v61, %v4997_v22  ;;  %v5047_v61 = vld [vmem:[%s9430_s9 + $0x210] sm:$0xff] }
 0x6aa   : > { %5385 = vmatmul.mubr.msk.f32.vlgmr.msra.gmra.mrb[2].mxu0 %vm3860_vm4, %v3851_v7 }
 0x6ab   : > { %5785 = vmatpush3.bf16.msra.mxu0 %v5782_v3  ;;  %v5002_v3 = vld [vmem:[%s9430_s9 + $0xa8] sm:$0xff] }
 0x6ac   : > { %5787 = vmatprep.subr.bf16.mxu0 %v5786_v38  ;;  %v5822_v59 = vpack.c.bf16 %v5002_v3, %v5001_v14  ;;  %v5055_v14 = vld [vmem:[%s9430_s9 + $0x250] sm:$0xff]  ;;  %v5056_v3 = vld [vmem:[%s9430_s9 + $0x258] sm:$0xff] }
 0x6af   : > { %5789 = vmatpush3.bf16.msra.mxu0 %v5786_v38 }
 0x6b0   : > { %5791 = vmatprep.subr.bf16.mxu0 %v5790_v52 }
 0x6b3   : > { %5793 = vmatpush3.bf16.msra.mxu0 %v5790_v52  ;;  %v5003_v52 = vld [vmem:[%s9430_s9 + $0xb0] sm:$0xff] }
 0x6b4   : > { %5795 = vmatprep.subr.bf16.mxu0 %v5794_v49 }
 0x6b7   : > { %5797 = vmatpush3.bf16.msra.mxu0 %v5794_v49  ;;  %v5005_v49 = vld [vmem:[%s9430_s9 + $0xc0] sm:$0xff] }
 0x6b8   : > { %5799 = vmatprep.subr.bf16.mxu0 %v5798_v10 }
 0x6bb   : > { %5801 = vmatpush3.bf16.msra.mxu0 %v5798_v10  ;;  %v5007_v10 = vld [vmem:[%s9430_s9 + $0xd0] sm:$0xff] }
 0x6bc   : > { %5803 = vmatprep.subr.bf16.mxu0 %v5802_v1 }
 0x6bf   : > { %5805 = vmatpush3.bf16.msra.mxu0 %v5802_v1  ;;  %v5009_v1 = vld [vmem:[%s9430_s9 + $0xe0] sm:$0xff] }
 0x6c0   : > { %5807 = vmatprep.subr.bf16.mxu0 %v5806_v26 }
 0x6c3   : > { %5809 = vmatpush3.bf16.msra.mxu0 %v5806_v26  ;;  %v5902_v26 = vpack.c.bf16 %v5042_v21, %v5041_v12  ;;  %v5077_v21 = vld [vmem:[%s9430_s9 + $0x300] sm:$0xff] }
 0x6c4   : > { %5811 = vmatprep.subr.bf16.mxu0 %v5810_v41 }
 0x6c7   : > { %5813 = vmatpush3.bf16.msra.mxu0 %v5810_v41  ;;  %v5842_v41 = vpack.c.bf16 %v5012_v37, %v5011_v45  ;;  %v5079_v45 = vld [vmem:[%s9430_s9 + $0x310] sm:$0xff]  ;;  %v5080_v37 = vld [vmem:[%s9430_s9 + $0x318] sm:$0xff] }
 0x6c8   : > { %5815 = vmatprep.subr.bf16.mxu0 %v5814_v36 }
 0x77d   : > { %v5386_v15 = vpop.f32.mrb[2].mxu0 }
 0x77e   : > { %v3933_v0 = vpop.f32.mrb[3].mxu0  ;;  %v9012_v11 = vmax.f32 %v3851_v7, %v5386_v15 }
 0x77f   : > { %v9010_v6 = vmax.f32 %v3850_v47, %v3933_v0  ;;  %v5030_v47 = vld [vmem:[%s9430_s9 + $0x188] sm:$0xff] }
 0x780   : > { %v5878_v43 = vpack.c.bf16 %v5030_v47, %v5029_v51  ;;  %v5048_v51 = vld [vmem:[%s9430_s9 + $0x218] sm:$0xff] }
 0x781   : > { %5403 = vmatprep.mubr.msk.f32.mxu1 %vm3860_vm4, %v9010_v6 }
 0x782   : > { %5404 = vmatmul.mubr.msk.f32.vlgmr.msra.gmra.mrb[0].mxu1 %vm3860_vm4, %v9012_v11 }
 0x783   : > { %5849 = vmatpush3.bf16.msra.mxu1 %v5846_v42 }
 0x784   : > { %5851 = vmatprep.subr.bf16.mxu1 %v5850_v44 }
 0x787   : > { %5853 = vmatpush3.bf16.msra.mxu1 %v5850_v44 }
 0x788   : > { %5855 = vmatprep.subr.bf16.mxu1 %v5854_v2 }
 0x78b   : > { %5857 = vmatpush3.bf16.msra.mxu1 %v5854_v2  ;;  %v5004_v2 = vld [vmem:[%s9430_s9 + $0xb8] sm:$0xff] }
 0x78c   : > { %5859 = vmatprep.subr.bf16.mxu1 %v5858_v53  ;;  %v5826_v29 = vpack.c.bf16 %v5004_v2, %v5003_v52 }
 0x78f   : > { %5861 = vmatpush3.bf16.msra.mxu1 %v5858_v53  ;;  %v5006_v53 = vld [vmem:[%s9430_s9 + $0xc8] sm:$0xff] }
 0x790   : > { %5863 = vmatprep.subr.bf16.mxu1 %v5862_v48  ;;  %v5830_v30 = vpack.c.bf16 %v5006_v53, %v5005_v49  ;;  %v5067_v49 = vld [vmem:[%s9430_s9 + $0x2b0] sm:$0xff]  ;;  %v5068_v53 = vld [vmem:[%s9430_s9 + $0x2b8] sm:$0xff] }
 0x791   : > { %v5954_v32 = vpack.c.bf16 %v5068_v53, %v5067_v49  ;;  %v4752_v49 = vld [vmem:[%s9432_s11 + $0x60] sm:$0xff]  ;;  %v4753_v53 = vld [vmem:[%s9432_s11 + $0x68] sm:$0xff] }
 0x793   : > { %5865 = vmatpush3.bf16.msra.mxu1 %v5862_v48  ;;  %v5008_v48 = vld [vmem:[%s9430_s9 + $0xd8] sm:$0xff] }
 0x794   : > { %5867 = vmatprep.subr.bf16.mxu1 %v5866_v50  ;;  %v5834_v40 = vpack.c.bf16 %v5008_v48, %v5007_v10  ;;  %v5071_v10 = vld [vmem:[%s9430_s9 + $0x2d0] sm:$0xff]  ;;  %v5072_v48 = vld [vmem:[%s9430_s9 + $0x2d8] sm:$0xff] }
 0x795   : > { %v5962_v5 = vpack.c.bf16 %v5072_v48, %v5071_v10  ;;  %v4996_v10 = vld [vmem:[%s9431_s10] ss:$0 sm:$0xff] }
 0x797   : > { %5869 = vmatpush3.bf16.msra.mxu1 %v5866_v50  ;;  %v5010_v50 = vld [vmem:[%s9430_s9 + $0xe8] sm:$0xff] }
 0x798   : > { %5871 = vmatprep.subr.bf16.mxu1 %v5870_v63  ;;  %v5838_v23 = vpack.c.bf16 %v5010_v50, %v5009_v1  ;;  %v5075_v1 = vld [vmem:[%s9430_s9 + $0x2f0] sm:$0xff]  ;;  %v5076_v50 = vld [vmem:[%s9430_s9 + $0x2f8] sm:$0xff] }
 0x799   : > { %v5970_v12 = vpack.c.bf16 %v5076_v50, %v5075_v1 }
 0x79b   : > { %5873 = vmatpush3.bf16.msra.mxu1 %v5870_v63  ;;  %v5044_v63 = vld [vmem:[%s9430_s9 + $0x1f8] sm:$0xff] }
 0x79c   : > { %5875 = vmatprep.subr.bf16.mxu1 %v5874_v33  ;;  %v5906_v31 = vpack.c.bf16 %v5044_v63, %v5043_v54  ;;  %v5978_v54 = vpack.c.bf16 %v5080_v37, %v5079_v45 }
 0x79f   : > { %5877 = vmatpush3.bf16.msra.mxu1 %v5874_v33  ;;  %v5046_v33 = vld [vmem:[%s9430_s9 + $0x208] sm:$0xff] }
 0x7a0   : > { %5879 = vmatprep.subr.bf16.mxu1 %v5878_v43  ;;  %v5910_v22 = vpack.c.bf16 %v5046_v33, %v5045_v19 }
 0x855   : > { %v5405_v9 = vpop.f32.mrb[0].mxu1 }
 0x856   : > { %v4035_v7 = vmax.f32 %v9012_v11, %v5405_v9  ;;  %v4025_v57 = vpop.f32.mrb[1].mxu1  ;;  %v5000_v11 = vld [vmem:[%s9430_s9 + $0x98] sm:$0xff]  ;;  %v5914_v9 = vpack.c.bf16 %v5048_v51, %v5047_v61 }
 0x857   : > { %v4034_v46 = vmax.f32 %v9010_v6, %v4025_v57  ;;  %v5031_v6 = vld [vmem:[%s9430_s9 + $0x190] sm:$0xff]  ;;  %v5818_v38 = vpack.c.bf16 %v5000_v11, %v4999_v13  ;;  %v5050_v57 = vld [vmem:[%s9430_s9 + $0x228] sm:$0xff]  ;;  %v5053_v11 = vld [vmem:[%s9430_s9 + $0x240] sm:$0xff] }
 0x858   : > { %4042 = vrot.lane.b32.xlu1 %v4035_v7, %s6130_s20  ;;  %v5882_v16 = vpack.c.bf16 %v5032_v24, %v5031_v6  ;;  %v5054_v6 = vld [vmem:[%s9430_s9 + $0x248] sm:$0xff]  ;;  %v5084_v61 = vld [vmem:[%s9430_s9 + $0x338] sm:$0xff] }
 0x859   : > { %4040 = vrot.lane.b32.xlu0 %v4034_v46, %s6130_s20  ;;  %v5926_v24 = vpack.c.bf16 %v5054_v6, %v5053_v11  ;;  %v5092_v11 = vld [vmem:[%s9430_s9 + $0x378] sm:$0xff] }
 0x8ca   : > { %v4043_v15 = vpop.permute.xlu1 %4042 }
 0x8cb   : > { %4048 = vst.msk [vmem:[#allocation4 + $0xb] sm:$0xff] %vm4046_vm11, %v4043_v15  ;;  %v4041_v0 = vpop.permute.xlu0 %4040  ;;  %v5051_v15 = vld [vmem:[%s9430_s9 + $0x230] sm:$0xff] }
 0x8cc   : > { %4047 = vst.msk [vmem:[#allocation4 + $0x3] sm:$0xff] %vm4046_vm11, %v4041_v0  ;;  %v5052_v0 = vld [vmem:[%s9430_s9 + $0x238] sm:$0xff] }
 0x8cd   : > { %v5922_v13 = vpack.c.bf16 %v5052_v0, %v5051_v15  ;;  %v5090_v15 = vld [vmem:[%s9430_s9 + $0x368] sm:$0xff] }
 0x8d2   : > { %v4345_v7 = vld [vmem:[#allocation4 + $0xb] sm:$0xff] }
 0x8d3   : > { %v4057_v60 = vld [vmem:[#allocation4] sm:$0xff]  ;;  %v4058_v25 = vld [vmem:[#allocation4 + $0x8] sm:$0xff] }
 0x8d4   : > { %v4248_v20 = vld [vmem:[#allocation4 + $0x2] sm:$0xff]  ;;  %5438 = vmatprep.mubr.f32.mxu0 %v4057_v60  ;;  %v4249_v42 = vld [vmem:[#allocation4 + $0xa] sm:$0xff]  ;;  %v5930_v60 = vpack.c.bf16 %v5056_v3, %v5055_v14  ;;  %v4740_v14 = vld [vmem:[%s9432_s11] sm:$0xff] }
 0x8d5   : > { %5508 = vmatprep.mubr.f32.mxu1 %v4248_v20  ;;  %5439 = vmatmul.mubr.f32.vlgmr.msra.gmra.mrb[4].mxu0 %v4058_v25  ;;  %v4152_v44 = vld [vmem:[#allocation4 + $0x1] sm:$0xff]  ;;  %v4153_v47 = vld [vmem:[#allocation4 + $0x9] sm:$0xff]  ;;  %v5057_v20 = vld [vmem:[%s9430_s9 + $0x260] sm:$0xff] }
 0x8d6   : > { %5509 = vmatmul.mubr.f32.vlgmr.msra.gmra.mrb[2].mxu1 %v4249_v42  ;;  %5817 = vmatpush3.bf16.msra.mxu0 %v5814_v36  ;;  %v4344_v4 = vld [vmem:[#allocation4 + $0x3] sm:$0xff]  ;;  %v5049_v36 = vld [vmem:[%s9430_s9 + $0x220] sm:$0xff]  ;;  %v4441_v2 = vld [vmem:[#allocation4 + $0xc] sm:$0xff] }
 0x8d7   : > { %5881 = vmatpush3.bf16.msra.mxu1 %v5878_v43  ;;  %5473 = vmatprep.mubr.f32.mxu0 %v4152_v44  ;;  %v4440_v43 = vld [vmem:[#allocation4 + $0x4] sm:$0xff]  ;;  %v5918_v46 = vpack.c.bf16 %v5050_v57, %v5049_v36  ;;  %v4537_v63 = vld [vmem:[#allocation4 + $0xd] sm:$0xff] }
 0x8d8   : > { %5543 = vmatprep.mubr.f32.mxu1 %v4344_v4  ;;  %5819 = vmatprep.subr.bf16.mxu0 %v5818_v38  ;;  %v5058_v25 = vld [vmem:[%s9430_s9 + $0x268] sm:$0xff]  ;;  %v5088_v57 = vld [vmem:[%s9430_s9 + $0x358] sm:$0xff] }
 0x8d9   : > { %5883 = vmatprep.subr.bf16.mxu1 %v5882_v16  ;;  %v5934_v42 = vpack.c.bf16 %v5058_v25, %v5057_v20  ;;  %v5062_v44 = vld [vmem:[%s9430_s9 + $0x288] sm:$0xff]  ;;  %v4743_v25 = vld [vmem:[%s9432_s11 + $0x18] sm:$0xff] }
 0x8da   : > { %5821 = vmatpush3.bf16.msra.mxu0 %v5818_v38  ;;  %v5059_v38 = vld [vmem:[%s9430_s9 + $0x270] sm:$0xff]  ;;  %v5942_v4 = vpack.c.bf16 %v5062_v44, %v5061_v17  ;;  %v5086_v36 = vld [vmem:[%s9430_s9 + $0x348] sm:$0xff]  ;;  %v4747_v44 = vld [vmem:[%s9432_s11 + $0x38] sm:$0xff] }
 0x8db   : > { %5885 = vmatpush3.bf16.msra.mxu1 %v5882_v16  ;;  %5823 = vmatprep.subr.bf16.mxu0 %v5822_v59  ;;  %v5060_v16 = vld [vmem:[%s9430_s9 + $0x278] sm:$0xff]  ;;  %v4632_v19 = vld [vmem:[#allocation4 + $0x6] sm:$0xff] }
 0x8dc   : > { %5887 = vmatprep.subr.bf16.mxu1 %v5886_v28  ;;  %v5938_v8 = vpack.c.bf16 %v5060_v16, %v5059_v38  ;;  %v4741_v3 = vld [vmem:[%s9432_s11 + $0x8] sm:$0xff]  ;;  %v4744_v38 = vld [vmem:[%s9432_s11 + $0x20] sm:$0xff]  ;;  %v4746_v17 = vld [vmem:[%s9432_s11 + $0x30] sm:$0xff] }
 0x8dd   : > { %v6006_v20 = vpack.c.bf16 %v4741_v3, %v4740_v14  ;;  %v4745_v16 = vld [vmem:[%s9432_s11 + $0x28] sm:$0xff] }
 0x8de   : > { %5825 = vmatpush3.bf16.msra.mxu0 %v5822_v59  ;;  %v5063_v59 = vld [vmem:[%s9430_s9 + $0x290] sm:$0xff] }
 0x8df   : > { %5889 = vmatpush3.bf16.msra.mxu1 %v5886_v28  ;;  %5827 = vmatprep.subr.bf16.mxu0 %v5826_v29  ;;  %v5064_v28 = vld [vmem:[%s9430_s9 + $0x298] sm:$0xff] }
 0x8e0   : > { %5891 = vmatprep.subr.bf16.mxu1 %v5890_v39  ;;  %v5946_v52 = vpack.c.bf16 %v5064_v28, %v5063_v59  ;;  %v4748_v59 = vld [vmem:[%s9432_s11 + $0x40] sm:$0xff]  ;;  %v4749_v28 = vld [vmem:[%s9432_s11 + $0x48] sm:$0xff] }
 0x8e2   : > { %5829 = vmatpush3.bf16.msra.mxu0 %v5826_v29  ;;  %v4536_v29 = vld [vmem:[#allocation4 + $0x5] sm:$0xff] }
 0x8e3   : > { %5893 = vmatpush3.bf16.msra.mxu1 %v5890_v39  ;;  %5831 = vmatprep.subr.bf16.mxu0 %v5830_v30  ;;  %v5950_v39 = vpack.c.bf16 %v5066_v58, %v5065_v18  ;;  %v6022_v18 = vpack.c.bf16 %v4749_v28, %v4748_v59  ;;  %v4750_v58 = vld [vmem:[%s9432_s11 + $0x50] sm:$0xff] }
 0x8e4   : > { %5895 = vmatprep.subr.bf16.mxu1 %v5894_v35 }
 0x8e6   : > { %5833 = vmatpush3.bf16.msra.mxu0 %v5830_v30  ;;  %v5070_v30 = vld [vmem:[%s9430_s9 + $0x2c8] sm:$0xff] }
 0x8e7   : > { %5897 = vmatpush3.bf16.msra.mxu1 %v5894_v35  ;;  %5835 = vmatprep.subr.bf16.mxu0 %v5834_v40  ;;  %v5958_v35 = vpack.c.bf16 %v5070_v30, %v5069_v55  ;;  %v4754_v55 = vld [vmem:[%s9432_s11 + $0x70] sm:$0xff]  ;;  %v4755_v30 = vld [vmem:[%s9432_s11 + $0x78] sm:$0xff] }
 0x8e8   : > { %5899 = vmatprep.subr.bf16.mxu1 %v5898_v62 }
 0x8ea   : > { %5837 = vmatpush3.bf16.msra.mxu0 %v5834_v40  ;;  %v5074_v40 = vld [vmem:[%s9430_s9 + $0x2e8] sm:$0xff] }
 0x8eb   : > { %5901 = vmatpush3.bf16.msra.mxu1 %v5898_v62  ;;  %5839 = vmatprep.subr.bf16.mxu0 %v5838_v23  ;;  %v5966_v62 = vpack.c.bf16 %v5074_v40, %v5073_v27 }
 0x8ec   : > { %5903 = vmatprep.subr.bf16.mxu1 %v5902_v26 }
 0x8ee   : > { %5841 = vmatpush3.bf16.msra.mxu0 %v5838_v23  ;;  %v5078_v23 = vld [vmem:[%s9430_s9 + $0x308] sm:$0xff] }
 0x8ef   : > { %5905 = vmatpush3.bf16.msra.mxu1 %v5902_v26  ;;  %5843 = vmatprep.subr.bf16.mxu0 %v5842_v41  ;;  %v5974_v26 = vpack.c.bf16 %v5078_v23, %v5077_v21 }
 0x8f0   : > { %5907 = vmatprep.subr.bf16.mxu1 %v5906_v31 }
 0x8f2   : > { %5845 = vmatpush3.bf16.msra.mxu0 %v5842_v41  ;;  %v5081_v41 = vld [vmem:[%s9430_s9 + $0x320] sm:$0xff] }
 0x8f3   : > { %5909 = vmatpush3.bf16.msra.mxu1 %v5906_v31  ;;  %v5082_v31 = vld [vmem:[%s9430_s9 + $0x328] sm:$0xff]  ;;  %6007 = vmatprep.subr.bf16.mxu0 %v6006_v20 }
 0x8f4   : > { %5911 = vmatprep.subr.bf16.mxu1 %v5910_v22  ;;  %v5982_v33 = vpack.c.bf16 %v5082_v31, %v5081_v41 }
 0x8f5   : > { %5474 = vmatmul.mubr.f32.vlgmr.msra.gmra.mrb[4].mxu0 %v4153_v47 }
 0x8f6   : > { %5544 = vmatmul.mubr.f32.vlgmr.msra.gmra.mrb[2].mxu1 %v4345_v7  ;;  %v5087_v7 = vld [vmem:[%s9430_s9 + $0x350] sm:$0xff]  ;;  %6009 = vmatpush3.bf16.msra.mxu0 %v6006_v20 }
 0x8f7   : > { %5913 = vmatpush3.bf16.msra.mxu1 %v5910_v22  ;;  %5578 = vmatprep.mubr.f32.mxu1 %v4440_v43  ;;  %v5083_v22 = vld [vmem:[%s9430_s9 + $0x330] sm:$0xff]  ;;  %v5994_v43 = vpack.c.bf16 %v5088_v57, %v5087_v7  ;;  %v6108_v7 = vld [vmem:[%s6212_s14] sm:$0xff] }
 0x8f8   : > { %5915 = vmatprep.subr.bf16.mxu1 %v5914_v9  ;;  %v5986_v51 = vpack.c.bf16 %v5084_v61, %v5083_v22 }
 0x8fb   : > { %5917 = vmatpush3.bf16.msra.mxu1 %v5914_v9  ;;  %v5085_v9 = vld [vmem:[%s9430_s9 + $0x340] sm:$0xff] }
 0x8fc   : > { %5919 = vmatprep.subr.bf16.mxu1 %v5918_v46  ;;  %v5990_v47 = vpack.c.bf16 %v5086_v36, %v5085_v9  ;;  %v6107_v36 = vld [vmem:[%s6212_s14 + $0x8] sm:$0xff] }
 0x8ff   : > { %5921 = vmatpush3.bf16.msra.mxu1 %v5918_v46  ;;  %v5089_v46 = vld [vmem:[%s9430_s9 + $0x360] sm:$0xff] }
 0x900   : > { %5923 = vmatprep.subr.bf16.mxu1 %v5922_v13  ;;  %v5998_v0 = vpack.c.bf16 %v5090_v15, %v5089_v46 }
 0x903   : > { %5925 = vmatpush3.bf16.msra.mxu1 %v5922_v13  ;;  %v5091_v13 = vld [vmem:[%s9430_s9 + $0x370] sm:$0xff] }
 0x904   : > { %5927 = vmatprep.subr.bf16.mxu1 %v5926_v24  ;;  %v6002_v6 = vpack.c.bf16 %v5092_v11, %v5091_v13 }
 0x907   : > { %5929 = vmatpush3.bf16.msra.mxu1 %v5926_v24  ;;  %v4633_v24 = vld [vmem:[#allocation4 + $0xe] sm:$0xff] }
 0x908   : > { %5931 = vmatprep.subr.bf16.mxu1 %v5930_v60 }
 0x90b   : > { %5933 = vmatpush3.bf16.msra.mxu1 %v5930_v60  ;;  %v4742_v60 = vld [vmem:[%s9432_s11 + $0x10] sm:$0xff] }
 0x90c   : > { %5935 = vmatprep.subr.bf16.mxu1 %v5934_v42 }
 0x90f   : > { %5937 = vmatpush3.bf16.msra.mxu1 %v5934_v42  ;;  %v6010_v42 = vpack.c.bf16 %v4743_v25, %v4742_v60 }
 0x910   : > { %5939 = vmatprep.subr.bf16.mxu1 %v5938_v8 }
 0x911   : > { %6011 = vmatprep.subr.bf16.mxu0 %v6010_v42 }
 0x912   : > { %6013 = vmatpush3.bf16.msra.mxu0 %v6010_v42 }
 0x913   : > { %5941 = vmatpush3.bf16.msra.mxu1 %v5938_v8  ;;  %v6014_v8 = vpack.c.bf16 %v4745_v16, %v4744_v38 }
 0x914   : > { %5943 = vmatprep.subr.bf16.mxu1 %v5942_v4 }
 0x915   : > { %6015 = vmatprep.subr.bf16.mxu0 %v6014_v8 }
 0x916   : > { %5579 = vmatmul.mubr.f32.vlgmr.msra.gmra.mrb[2].mxu1 %v4441_v2  ;;  %6017 = vmatpush3.bf16.msra.mxu0 %v6014_v8 }
 0x917   : > { %5945 = vmatpush3.bf16.msra.mxu1 %v5942_v4  ;;  %5613 = vmatprep.mubr.f32.mxu1 %v4536_v29  ;;  %v6018_v4 = vpack.c.bf16 %v4747_v44, %v4746_v17  ;;  %v4751_v29 = vld [vmem:[%s9432_s11 + $0x58] sm:$0xff] }
 0x918   : > { %5947 = vmatprep.subr.bf16.mxu1 %v5946_v52 }
 0x919   : > { %6019 = vmatprep.subr.bf16.mxu0 %v6018_v4 }
 0x91a   : > { %6021 = vmatpush3.bf16.msra.mxu0 %v6018_v4 }
 0x91b   : > { %5949 = vmatpush3.bf16.msra.mxu1 %v5946_v52  ;;  %6023 = vmatprep.subr.bf16.mxu0 %v6022_v18 }
 0x91c   : > { %5951 = vmatprep.subr.bf16.mxu1 %v5950_v39 }
 0x91e   : > { %6025 = vmatpush3.bf16.msra.mxu0 %v6022_v18 }
 0x91f   : > { %5953 = vmatpush3.bf16.msra.mxu1 %v5950_v39  ;;  %v6026_v39 = vpack.c.bf16 %v4751_v29, %v4750_v58 }
 0x920   : > { %5955 = vmatprep.subr.bf16.mxu1 %v5954_v32 }
 0x921   : > { %6027 = vmatprep.subr.bf16.mxu0 %v6026_v39 }
 0x922   : > { %6029 = vmatpush3.bf16.msra.mxu0 %v6026_v39 }
 0x923   : > { %5957 = vmatpush3.bf16.msra.mxu1 %v5954_v32  ;;  %v6030_v32 = vpack.c.bf16 %v4753_v53, %v4752_v49 }
 0x924   : > { %5959 = vmatprep.subr.bf16.mxu1 %v5958_v35 }
 0x925   : > { %6031 = vmatprep.subr.bf16.mxu0 %v6030_v32 }
 0x926   : > { %6033 = vmatpush3.bf16.msra.mxu0 %v6030_v32 }
 0x927   : > { %5961 = vmatpush3.bf16.msra.mxu1 %v5958_v35  ;;  %v6034_v35 = vpack.c.bf16 %v4755_v30, %v4754_v55 }
 0x928   : > { %5963 = vmatprep.subr.bf16.mxu1 %v5962_v5 }
 0x929   : > { %6035 = vmatprep.subr.bf16.mxu0 %v6034_v35 }
 0x92a   : > { %6037 = vmatpush3.bf16.msra.mxu0 %v6034_v35 }
 0x92b   : > { %5965 = vmatpush3.bf16.msra.mxu1 %v5962_v5 }
 0x92c   : > { %5967 = vmatprep.subr.bf16.mxu1 %v5966_v62 }
 0x92f   : > { %5969 = vmatpush3.bf16.msra.mxu1 %v5966_v62 }
 0x930   : > { %5971 = vmatprep.subr.bf16.mxu1 %v5970_v12 }
 0x933   : > { %5973 = vmatpush3.bf16.msra.mxu1 %v5970_v12 }
 0x934   : > { %5975 = vmatprep.subr.bf16.mxu1 %v5974_v26 }
 0x936   : > { %5614 = vmatmul.mubr.f32.vlgmr.msra.gmra.mrb[2].mxu1 %v4537_v63 }
 0x937   : > { %5977 = vmatpush3.bf16.msra.mxu1 %v5974_v26  ;;  %5648 = vmatprep.mubr.f32.mxu1 %v4632_v19 }
 0x938   : > { %5979 = vmatprep.subr.bf16.mxu1 %v5978_v54 }
 0x93b   : > { %5981 = vmatpush3.bf16.msra.mxu1 %v5978_v54 }
 0x93c   : > { %5983 = vmatprep.subr.bf16.mxu1 %v5982_v33 }
 0x93f   : > { %5985 = vmatpush3.bf16.msra.mxu1 %v5982_v33  ;;  %v5093_v33 = vld [vmem:[%s9433_s12] ss:$0 sm:$0xff] }
 0x940   : > { %5987 = vmatprep.subr.bf16.mxu1 %v5986_v51 }
 0x943   : > { %5989 = vmatpush3.bf16.msra.mxu1 %v5986_v51 }
 0x944   : > { %5991 = vmatprep.subr.bf16.mxu1 %v5990_v47 }
 0x947   : > { %5993 = vmatpush3.bf16.msra.mxu1 %v5990_v47 }
 0x948   : > { %5995 = vmatprep.subr.bf16.mxu1 %v5994_v43 }
 0x94b   : > { %5997 = vmatpush3.bf16.msra.mxu1 %v5994_v43 }
 0x94c   : > { %5999 = vmatprep.subr.bf16.mxu1 %v5998_v0 }
 0x94f   : > { %6001 = vmatpush3.bf16.msra.mxu1 %v5998_v0 }
 0x950   : > { %6003 = vmatprep.subr.bf16.mxu1 %v6002_v6 }
 0x953   : > { %6005 = vmatpush3.bf16.msra.mxu1 %v6002_v6 }
 0x956   : > { %5649 = vmatmul.mubr.f32.vlgmr.msra.gmra.mrb[2].mxu1 %v4633_v24 }
 0x9c8   : > { %v5475_v52 = vpop.f32.mrb[4].mxu0 }
 0x9c9   : > { %v4237_v2 = vpop.f32.mrb[5].mxu0  ;;  %v6038_v48 = vadd.f32 %v5475_v52, %v4996_v10 }
 0x9ca   : > { %v6040_v5 = vadd.f32 %v4996_v10, %v4237_v2 }
 0xa29   : > { %v5650_v27 = vpop.f32.mrb[2].mxu1 }
 0xa2a   : > { %v6039_v40 = vadd.f32 %v6038_v48, %v5650_v27  ;;  %v4717_v62 = vpop.f32.mrb[3].mxu1 }
 0xa2b   : > { %v6041_v1 = vadd.f32 %v6040_v5, %v4717_v62 }
 0xa2c   : > { %v4729_v50 = vsub.f32 0.0, %v6039_v40 }
 0xa2d   : > { %v4728_v12 = vsub.f32 0.0, %v6041_v1 }
 0xa2e   : > { %v4732_v21 = vmul.f32 1.442695, %v4729_v50 }
 0xa2f   : > { %v4730_v23 = vmul.f32 1.442695, %v4728_v12 }
 0xa30   : > { %6076 = vpow2.f32 %v4732_v21 }
 0xa31   : > { %6078 = vpow2.f32 %v4730_v23 }
 0xa3a   : > { %v6077_v26 = vpop.eup %6076 }
 0xa3b   : > { %v6079_v45 = vpop.eup %6078  ;;  %v4735_v37 = vadd.f32 1.0, %v6077_v26 }
 0xa3c   : > { %v4734_v54 = vadd.f32 1.0, %v6079_v45 }
 0xa3d   : > { %6080 = vrcp.f32 %v4735_v37 }
 0xa3e   : > { %6082 = vrcp.f32 %v4734_v54 }
 0xa47   : > { %v6081_v63 = vpop.eup %6080 }
 0xa48   : > { %v6083_v41 = vpop.eup %6082  ;;  %v4739_v19 = vmul.f32 %v6081_v63, %v8988_v34 }
 0xa49   : > { %v4738_v31 = vmul.f32 %v6083_v41, %v8990_v56 }
 0xa4b   : > { %5683 = vmatprep.mubr.f32.mxu0 %v4738_v31 }
 0xa4c   : > { %5684 = vmatmul.mubr.f32.vlgmr.msra.gmra.mrb[6].mxu0 %v4739_v19 }
 0xb1f   : > { %v5685_v22 = vpop.f32.mrb[6].mxu0 }
 0xb20   : > { %v4835_v61 = vadd.f32 %v5685_v22, %v5093_v33  ;;  %v4829_v51 = vpop.f32.mrb[7].mxu0 }
 0xb21   : > { %v4830_v9 = vadd.f32 %v5093_v33, %v4829_v51 }
 0xb22   : > { %v4839_v47 = vmul.f32 %v6107_v36, %v4835_v61 }
 0xb23   : > { %v4838_v57 = vmul.f32 %v6108_v7, %v4830_v9 }
 0xb24   : > { %4841 = vst [vmem:[%s6217_s17 + $0x8] sm:$0xff] %v4839_v47 }
 0xb25   : > { %4840 = vst [vmem:[%s6217_s17] sm:$0xff] %v4838_v57 }
 0xb26 PF: > { %s23_s25 = sadd.s32 1, %s6115_s25  }
 0xb27   : > { %p20_p5 = scmp.ge.s32.totalorder %s23_s25, 4  }
 0xb29   :  { %22 = sbr.rel (!%p20_p5) target bundleno = 1 (0x1), region = 113 }

</bundles_post_ra>
